<compile_context>
chip_gen: v7x
topology: tpu7x:2x2x1
jax: 0.10.0
libtpu: 0.0.40
codegen_flags: <defaults>
</compile_context>

<pallas_src>
import functools
import math

import numpy as np
import jax
import jax.numpy as jnp
from jax import lax
from jax.experimental import pallas as pl
from jax.experimental.pallas import tpu as pltpu

C_IN = 38          # c_in is hard-coded to 38 in TokenEmbedding / final Linear
WINDOW = 16        # sequence length T
D_MODEL = 32       # num_hiddens
FFN_HIDDEN = 64    # ffn_num_hiddens
NUM_HEADS = 4      # num_heads
NUM_LAYERS = 2     # num_layers
LN_EPS = 1e-5      # torch.nn.LayerNorm default eps


def _full(shape):
    """BlockSpec covering a whole (un-tiled) parameter array for every grid step."""
    zeros = (0,) * len(shape)
    return pl.BlockSpec(shape, lambda b, _z=zeros: _z)


def _pick_block_batch(B, T):
    """Batch elements per grid step.

    Target >=128 rows per step (fills an MXU pass on every generation), cap at 256
    rows (v6e/v7x MXU width).  If a single step would cover the whole batch, try to
    split into >=2 steps of >=128 rows so v7x's two TensorCores both get work.
    Always returns a divisor of B (no padding / masking needed).
    """
    best = 1
    for bb in (16, 8, 4, 2, 1):
        if B % bb == 0:
            best = bb
            break
    if B // best == 1 and B > 1:
        for bb in (8, 4, 2, 1):
            if B % bb == 0 and B // bb >= 2 and bb * T >= 128:
                return bb
    return best


def _layer_norm(x, gamma, beta):
    mu = jnp.mean(x, axis=-1, keepdims=True)
    var = jnp.mean(jnp.square(x - mu), axis=-1, keepdims=True)
    return (x - mu) * lax.rsqrt(var + LN_EPS) * gamma + beta


# ---------------------------------------------------------------------------
# Fused kernel: TokenEmbedding + PositionalEncoding + N EncoderBlocks + Linear.
# One grid step = one batch-block of `bb` sequences (independent -> "parallel").
# ---------------------------------------------------------------------------
def _encoder_kernel(x_ref, pe_ref, wemb_ref, wqkv_ref, wo_ref,
                    g1_ref, be1_ref, w1_ref, bf1_ref, w2_ref, bf2_ref,
                    g2_ref, be2_ref, wout_ref, bout_ref,
                    out_ref, *, num_layers, num_heads, head_dim, bb, seq_len,
                    d_model):
    f32 = jnp.float32
    T = seq_len
    D = d_model
    R = bb * T                                # rows per step (flattened batch*time)

    # --- TokenEmbedding: circular Conv1d(k=3, pad=1) as 3 accumulated matmuls.
    x = x_ref[...]                                                    # (bb, T, C)
    C = x.shape[-1]
    # circular taps along the time axis: row t of x_prev holds x[t-1], x_next x[t+1]
    x_prev = jnp.concatenate([x[:, T - 1:T, :], x[:, :T - 1, :]], axis=1)
    x_next = jnp.concatenate([x[:, 1:T, :], x[:, 0:1, :]], axis=1)
    xf = x.reshape(R, C)
    xpf = x_prev.reshape(R, C)
    xnf = x_next.reshape(R, C)
    emb = (jnp.dot(xpf, wemb_ref[0], preferred_element_type=f32)
           + jnp.dot(xf, wemb_ref[1], preferred_element_type=f32)
           + jnp.dot(xnf, wemb_ref[2], preferred_element_type=f32))   # (R, D)

    # --- positional encoding (+ folded conv bias), broadcast over the batch block
    pe = pe_ref[...]                                                  # (T, D)
    X = emb + jnp.broadcast_to(pe[None], (bb, T, D)).reshape(R, D)    # (R, D)

    inv_sqrt_dh = 1.0 / math.sqrt(head_dim)
    for l in range(num_layers):
        # --- MultiHeadAttention (use_bias=False): one fused QKV matmul per layer.
        qkv = jnp.dot(X, wqkv_ref[l], preferred_element_type=f32)     # (R, 3D)
        wo_l = wo_ref[l]                                              # (D, D)
        att = None
        for h in range(num_heads):
            lo = h * head_dim
            qh = qkv[:, lo:lo + head_dim].reshape(bb, T, head_dim)
            kh = qkv[:, D + lo:D + lo + head_dim].reshape(bb, T, head_dim)
            vh = qkv[:, 2 * D + lo:2 * D + lo + head_dim].reshape(bb, T, head_dim)
            s = jnp.einsum('bqd,bkd->bqk', qh, kh,
                           preferred_element_type=f32) * inv_sqrt_dh  # (bb, T, T)
            m = jnp.max(s, axis=-1, keepdims=True)
            p = jnp.exp(s - m)
            attn = p * pl.reciprocal(jnp.sum(p, axis=-1, keepdims=True), approx=True)
            oh = jnp.einsum('bqk,bkd->bqd', attn, vh,
                            preferred_element_type=f32)               # (bb, T, dh)
            # concat(heads) @ W_o  ==  sum_h head_h @ W_o[h*dh:(h+1)*dh, :]
            contrib = jnp.dot(oh.reshape(R, head_dim),
                              wo_l[lo:lo + head_dim, :],
                              preferred_element_type=f32)             # (R, D)
            att = contrib if att is None else att + contrib

        # --- AddNorm1 (dropout = identity at eval), LayerNorm over num_hiddens
        Y = _layer_norm(att + X, g1_ref[l], be1_ref[l])

        # --- PositionWiseFFN: Linear -> ReLU -> Linear
        h1 = jnp.maximum(
            jnp.dot(Y, w1_ref[l], preferred_element_type=f32) + bf1_ref[l], 0.0)
        Fo = jnp.dot(h1, w2_ref[l], preferred_element_type=f32) + bf2_ref[l]

        # --- AddNorm2
        X = _layer_norm(Fo + Y, g2_ref[l], be2_ref[l])

    # --- final Linear(num_hiddens, 38), zero-padded to 128 lanes (lane-dense store)
    out_ref[...] = (jnp.dot(X, wout_ref[...], preferred_element_type=f32)
                    + bout_ref[...])


# ---------------------------------------------------------------------------
# Wrapper
# ---------------------------------------------------------------------------
_WEIGHT_ORDER = ["wqkv", "wo", "g1", "be1", "w1", "bf1", "w2", "bf2", "g2", "be2"]


def transformer_encoder_forward(x, params, *, num_heads=NUM_HEADS):
    B, T, C = x.shape
    D = params["w_emb"].shape[-1]
    L = params["wqkv"].shape[0]
    head_dim = D // num_heads

    bb = _pick_block_batch(B, T)
    R = bb * T

    # Lane-dense output: pad the 38-wide head to 128 output lanes; slice afterwards.
    c_out = params["w_out"].shape[-1]
    c_pad = ((c_out + 127) // 128) * 128
    w_out_p = jnp.pad(params["w_out"], ((0, 0), (0, c_pad - c_out)))
    b_out_p = jnp.pad(params["b_out"], ((0, 0), (0, c_pad - c_out)))

    # Fold the Conv1d bias into the positional-encoding table (both are additive
    # per-(t, d) constants): one fewer kernel input and one fewer in-kernel add.
    pe_b = params["pe"] + params["b_emb"]                             # (T, D)

    kernel = functools.partial(_encoder_kernel, num_layers=L, num_heads=num_heads,
                               head_dim=head_dim, bb=bb, seq_len=T, d_model=D)

    weights = ([pe_b, params["w_emb"]]
               + [params[name] for name in _WEIGHT_ORDER]
               + [w_out_p, b_out_p])
    in_specs = ([pl.BlockSpec((bb, T, C), lambda b: (b, 0, 0))]
                + [_full(w.shape) for w in weights])

    out = pl.pallas_call(
        kernel,
        out_shape=jax.ShapeDtypeStruct((B * T, c_pad), jnp.float32),
        grid=(B // bb,),
        in_specs=in_specs,
        out_specs=pl.BlockSpec((R, c_pad), lambda b: (b, 0)),
        compiler_params=pltpu.CompilerParams(dimension_semantics=("parallel",)),
    )(x, *weights)

    return out.reshape(B, T, c_pad)[:, :, :c_out]


# ---------------------------------------------------------------------------
# Deterministic synthetic parameters matching the module's shapes.
# All weights are stored pre-transposed for row-major (act @ W) matmuls.
# ---------------------------------------------------------------------------
def init_params(key, T, c_in, d_model, ffn_hidden, num_layers):
    keys = jax.random.split(key, 3 + num_layers)

    # PositionalEncoding buffer pe[:T, :d_model]
    pos = np.arange(T, dtype=np.float32)[:, None]
    div = np.exp(np.arange(0, d_model, 2, dtype=np.float32)
                 * (-math.log(10000.0) / d_model))
    pe = np.zeros((T, d_model), dtype=np.float32)
    pe[:, 0::2] = np.sin(pos * div)
    pe[:, 1::2] = np.cos(pos * div)

    params = {
        "pe": jnp.asarray(pe),
        # Conv1d(d_model, c_in, 3) weight (d_model, c_in, 3) stored as (3, c_in, d_model):
        # w_emb[k, c, d] = W_torch[d, c, k]; tap k=0 hits x[t-1], k=1 x[t], k=2 x[t+1].
        "w_emb": jax.random.normal(keys[0], (3, c_in, d_model), jnp.float32)
                 * math.sqrt(2.0 / (3 * c_in)),
        "b_emb": jax.random.normal(keys[1], (1, d_model), jnp.float32) * 0.02,
        "w_out": jax.random.normal(keys[2], (d_model, c_in), jnp.float32)
                 / math.sqrt(d_model),
        "b_out": jnp.zeros((1, c_in), jnp.float32),
    }

    layer_keys = keys[3:]
    s = 1.0 / math.sqrt(d_model)

    def mk(i, n, shape, scale):
        return jax.random.normal(jax.random.fold_in(layer_keys[i], n),
                                 shape, jnp.float32) * scale

    def stack(gen):
        return jnp.stack([gen(i) for i in range(num_layers)], axis=0)

    params.update({
        # Fused MHA projections (use_bias=False): [W_q | W_k | W_v] -> (L, D, 3D).
        "wqkv": stack(lambda i: jnp.concatenate(
            [mk(i, 0, (d_model, d_model), s),
             mk(i, 1, (d_model, d_model), s),
             mk(i, 2, (d_model, d_model), s)], axis=-1)),
        "wo": stack(lambda i: mk(i, 3, (d_model, d_model), s)),
        # AddNorm1 LayerNorm(d_model)
        "g1": jnp.ones((num_layers, 1, d_model), jnp.float32),
        "be1": jnp.zeros((num_layers, 1, d_model), jnp.float32),
        # PositionWiseFFN
        "w1": stack(lambda i: mk(i, 4, (d_model, ffn_hidden), s)),
        "bf1": stack(lambda i: mk(i, 5, (1, ffn_hidden), 0.02)),
        "w2": stack(lambda i: mk(i, 6, (ffn_hidden, d_model),
                                 1.0 / math.sqrt(ffn_hidden))),
        "bf2": stack(lambda i: mk(i, 7, (1, d_model), 0.02)),
        # AddNorm2 LayerNorm(d_model)
        "g2": jnp.ones((num_layers, 1, d_model), jnp.float32),
        "be2": jnp.zeros((num_layers, 1, d_model), jnp.float32),
    })
    return params


if __name__ == "__main__":
    B, T = 2, WINDOW
    key = jax.random.PRNGKey(0)
    kx, kp = jax.random.split(key)
    x = jax.random.normal(kx, (B, T, C_IN), jnp.float32)   # (batch, window, 38)
    params = init_params(kp, T, C_IN, D_MODEL, FFN_HIDDEN, NUM_LAYERS)

    out = jax.jit(transformer_encoder_forward)(x, params)
    out = jax.block_until_ready(out)
    assert out.shape == (B, T, C_IN) and out.dtype == jnp.float32
    assert bool(jnp.all(jnp.isfinite(out)))
    print("KERNEL_OK")
</pallas_src>

<mosaic_0001>
module attributes {stable_mosaic.version = 11 : i64} {
  func.func @_encoder_kernel(%arg0: i32, %arg1: memref<2x16x38xf32, #tpu.memory_space<vmem>>, %arg2: memref<16x32xf32, #tpu.memory_space<vmem>>, %arg3: memref<3x38x32xf32, #tpu.memory_space<vmem>>, %arg4: memref<2x32x96xf32, #tpu.memory_space<vmem>>, %arg5: memref<2x32x32xf32, #tpu.memory_space<vmem>>, %arg6: memref<2x1x32xf32, #tpu.memory_space<vmem>>, %arg7: memref<2x1x32xf32, #tpu.memory_space<vmem>>, %arg8: memref<2x32x64xf32, #tpu.memory_space<vmem>>, %arg9: memref<2x1x64xf32, #tpu.memory_space<vmem>>, %arg10: memref<2x64x32xf32, #tpu.memory_space<vmem>>, %arg11: memref<2x1x32xf32, #tpu.memory_space<vmem>>, %arg12: memref<2x1x32xf32, #tpu.memory_space<vmem>>, %arg13: memref<2x1x32xf32, #tpu.memory_space<vmem>>, %arg14: memref<32x128xf32, #tpu.memory_space<vmem>>, %arg15: memref<1x128xf32, #tpu.memory_space<vmem>>, %arg16: memref<32x128xf32, #tpu.memory_space<vmem>>) attributes {dimension_semantics = [#tpu.dimension_semantics<parallel>], iteration_bounds = array<i64: 1>, scalar_prefetch = 0 : i64, scratch_operands = 0 : i64, tpu.core_type = #tpu.core_type<tc>, window_params = [{transform_indices = @transform_0, window_bounds = array<i64: 2, 16, 38>}, {pipeline_mode = #tpu.pipeline_mode<synchronous>, transform_indices = @transform_1, window_bounds = array<i64: 16, 32>}, {pipeline_mode = #tpu.pipeline_mode<synchronous>, transform_indices = @transform_2, window_bounds = array<i64: 3, 38, 32>}, {pipeline_mode = #tpu.pipeline_mode<synchronous>, transform_indices = @transform_3, window_bounds = array<i64: 2, 32, 96>}, {pipeline_mode = #tpu.pipeline_mode<synchronous>, transform_indices = @transform_4, window_bounds = array<i64: 2, 32, 32>}, {pipeline_mode = #tpu.pipeline_mode<synchronous>, transform_indices = @transform_5, window_bounds = array<i64: 2, 1, 32>}, {pipeline_mode = #tpu.pipeline_mode<synchronous>, transform_indices = @transform_6, window_bounds = array<i64: 2, 1, 32>}, {pipeline_mode = #tpu.pipeline_mode<synchronous>, transform_indices = @transform_7, window_bounds = array<i64: 2, 32, 64>}, {pipeline_mode = #tpu.pipeline_mode<synchronous>, transform_indices = @transform_8, window_bounds = array<i64: 2, 1, 64>}, {pipeline_mode = #tpu.pipeline_mode<synchronous>, transform_indices = @transform_9, window_bounds = array<i64: 2, 64, 32>}, {pipeline_mode = #tpu.pipeline_mode<synchronous>, transform_indices = @transform_10, window_bounds = array<i64: 2, 1, 32>}, {pipeline_mode = #tpu.pipeline_mode<synchronous>, transform_indices = @transform_11, window_bounds = array<i64: 2, 1, 32>}, {pipeline_mode = #tpu.pipeline_mode<synchronous>, transform_indices = @transform_12, window_bounds = array<i64: 2, 1, 32>}, {pipeline_mode = #tpu.pipeline_mode<synchronous>, transform_indices = @transform_13, window_bounds = array<i64: 32, 128>}, {pipeline_mode = #tpu.pipeline_mode<synchronous>, transform_indices = @transform_14, window_bounds = array<i64: 1, 128>}, {transform_indices = @transform_15, window_bounds = array<i64: 32, 128>}]} {
    %c0 = arith.constant 0 : index
    %c0_0 = arith.constant 0 : index
    %c0_1 = arith.constant 0 : index
    %0 = vector.load %arg1[%c0, %c0_0, %c0_1] : memref<2x16x38xf32, #tpu.memory_space<vmem>>, vector<2x16x38xf32>
    %1 = vector.extract_strided_slice %0 {offsets = [0, 15, 0], sizes = [2, 1, 38], strides = [1, 1, 1]} : vector<2x16x38xf32> to vector<2x1x38xf32>
    %2 = vector.extract_strided_slice %0 {offsets = [0, 0, 0], sizes = [2, 15, 38], strides = [1, 1, 1]} : vector<2x16x38xf32> to vector<2x15x38xf32>
    %3 = tpu.concatenate %1, %2 in 1 : vector<2x1x38xf32>, vector<2x15x38xf32> -> vector<2x16x38xf32>
    %4 = vector.extract_strided_slice %0 {offsets = [0, 1, 0], sizes = [2, 15, 38], strides = [1, 1, 1]} : vector<2x16x38xf32> to vector<2x15x38xf32>
    %5 = vector.extract_strided_slice %0 {offsets = [0, 0, 0], sizes = [2, 1, 38], strides = [1, 1, 1]} : vector<2x16x38xf32> to vector<2x1x38xf32>
    %6 = tpu.concatenate %4, %5 in 1 : vector<2x15x38xf32>, vector<2x1x38xf32> -> vector<2x16x38xf32>
    %7 = vector.shape_cast %0 : vector<2x16x38xf32> to vector<32x38xf32>
    %8 = vector.shape_cast %3 : vector<2x16x38xf32> to vector<32x38xf32>
    %9 = vector.shape_cast %6 : vector<2x16x38xf32> to vector<32x38xf32>
    %c0_2 = arith.constant 0 : index
    %c0_3 = arith.constant 0 : index
    %c0_4 = arith.constant 0 : index
    %10 = vector.load %arg3[%c0_2, %c0_3, %c0_4] : memref<3x38x32xf32, #tpu.memory_space<vmem>>, vector<1x38x32xf32>
    %11 = vector.shape_cast %10 : vector<1x38x32xf32> to vector<38x32xf32>
    %cst = arith.constant dense<0.000000e+00> : vector<32x32xf32>
    %12 = tpu.matmul %8, %11, %cst {dimension_numbers = #tpu.dot_dimension_numbers<[1], [0], [0], [1], [0, 0, 1, 1], [], []>} : vector<32x38xf32>, vector<38x32xf32>, vector<32x32xf32> -> vector<32x32xf32>
    %c1 = arith.constant 1 : index
    %c0_5 = arith.constant 0 : index
    %c0_6 = arith.constant 0 : index
    %13 = vector.load %arg3[%c1, %c0_5, %c0_6] : memref<3x38x32xf32, #tpu.memory_space<vmem>>, vector<1x38x32xf32>
    %14 = vector.shape_cast %13 : vector<1x38x32xf32> to vector<38x32xf32>
    %cst_7 = arith.constant dense<0.000000e+00> : vector<32x32xf32>
    %15 = tpu.matmul %7, %14, %cst_7 {dimension_numbers = #tpu.dot_dimension_numbers<[1], [0], [0], [1], [0, 0, 1, 1], [], []>} : vector<32x38xf32>, vector<38x32xf32>, vector<32x32xf32> -> vector<32x32xf32>
    %16 = arith.addf %12, %15 : vector<32x32xf32>
    %c2 = arith.constant 2 : index
    %c0_8 = arith.constant 0 : index
    %c0_9 = arith.constant 0 : index
    %17 = vector.load %arg3[%c2, %c0_8, %c0_9] : memref<3x38x32xf32, #tpu.memory_space<vmem>>, vector<1x38x32xf32>
    %18 = vector.shape_cast %17 : vector<1x38x32xf32> to vector<38x32xf32>
    %cst_10 = arith.constant dense<0.000000e+00> : vector<32x32xf32>
    %19 = tpu.matmul %9, %18, %cst_10 {dimension_numbers = #tpu.dot_dimension_numbers<[1], [0], [0], [1], [0, 0, 1, 1], [], []>} : vector<32x38xf32>, vector<38x32xf32>, vector<32x32xf32> -> vector<32x32xf32>
    %20 = arith.addf %16, %19 : vector<32x32xf32>
    %c0_11 = arith.constant 0 : index
    %c0_12 = arith.constant 0 : index
    %21 = vector.load %arg2[%c0_11, %c0_12] : memref<16x32xf32, #tpu.memory_space<vmem>>, vector<16x32xf32>
    %22 = vector.shape_cast %21 : vector<16x32xf32> to vector<1x16x32xf32>
    %23 = vector.shape_cast %22 : vector<1x16x32xf32> to vector<1x16x32xf32>
    %24 = vector.broadcast %23 : vector<1x16x32xf32> to vector<2x16x32xf32>
    %25 = vector.shape_cast %24 : vector<2x16x32xf32> to vector<32x32xf32>
    %26 = arith.addf %20, %25 : vector<32x32xf32>
    %c0_13 = arith.constant 0 : index
    %c0_14 = arith.constant 0 : index
    %c0_15 = arith.constant 0 : index
    %27 = vector.load %arg4[%c0_13, %c0_14, %c0_15] : memref<2x32x96xf32, #tpu.memory_space<vmem>>, vector<1x32x96xf32>
    %28 = vector.shape_cast %27 : vector<1x32x96xf32> to vector<32x96xf32>
    %cst_16 = arith.constant dense<0.000000e+00> : vector<32x96xf32>
    %29 = tpu.matmul %26, %28, %cst_16 {dimension_numbers = #tpu.dot_dimension_numbers<[1], [0], [0], [1], [0, 0, 1, 1], [], []>} : vector<32x32xf32>, vector<32x96xf32>, vector<32x96xf32> -> vector<32x96xf32>
    %c0_17 = arith.constant 0 : index
    %c0_18 = arith.constant 0 : index
    %c0_19 = arith.constant 0 : index
    %30 = vector.load %arg5[%c0_17, %c0_18, %c0_19] : memref<2x32x32xf32, #tpu.memory_space<vmem>>, vector<1x32x32xf32>
    %31 = vector.shape_cast %30 : vector<1x32x32xf32> to vector<32x32xf32>
    %32 = vector.extract_strided_slice %29 {offsets = [0, 0], sizes = [32, 8], strides = [1, 1]} : vector<32x96xf32> to vector<32x8xf32>
    %33 = vector.shape_cast %32 : vector<32x8xf32> to vector<2x16x8xf32>
    %34 = vector.extract_strided_slice %29 {offsets = [0, 32], sizes = [32, 8], strides = [1, 1]} : vector<32x96xf32> to vector<32x8xf32>
    %35 = vector.shape_cast %34 : vector<32x8xf32> to vector<2x16x8xf32>
    %36 = vector.extract_strided_slice %29 {offsets = [0, 64], sizes = [32, 8], strides = [1, 1]} : vector<32x96xf32> to vector<32x8xf32>
    %37 = vector.shape_cast %36 : vector<32x8xf32> to vector<2x16x8xf32>
    "tpu.trace_start"() <{level = 10 : i32, message = "bqd,bkd->bqk"}> : () -> ()
    %cst_20 = arith.constant dense<0.000000e+00> : vector<2x16x16xf32>
    %38 = tpu.matmul %33, %35, %cst_20 {dimension_numbers = #tpu.dot_dimension_numbers<[2], [2], [1], [1], [0, 0, 0, 1, 1, 1], [0], [0]>} : vector<2x16x8xf32>, vector<2x16x8xf32>, vector<2x16x16xf32> -> vector<2x16x16xf32>
    "tpu.trace_stop"() : () -> ()
    %cst_21 = arith.constant 0.353553385 : f32
    %39 = vector.broadcast %cst_21 : f32 to vector<2x16x16xf32>
    %40 = arith.mulf %38, %39 : vector<2x16x16xf32>
    %cst_22 = arith.constant dense<0xFF800000> : vector<2x16xf32>
    %41 = vector.multi_reduction <maximumf>, %40, %cst_22 [2] : vector<2x16x16xf32> to vector<2x16xf32>
    %42 = vector.shape_cast %41 : vector<2x16xf32> to vector<2x16x1xf32>
    %43 = vector.broadcast %42 : vector<2x16x1xf32> to vector<2x16x16xf32>
    %44 = arith.subf %40, %43 : vector<2x16x16xf32>
    %45 = math.exp %44 : vector<2x16x16xf32>
    %cst_23 = arith.constant dense<0.000000e+00> : vector<2x16xf32>
    %46 = vector.multi_reduction <add>, %45, %cst_23 [2] : vector<2x16x16xf32> to vector<2x16xf32>
    %47 = vector.shape_cast %46 : vector<2x16xf32> to vector<2x16x1xf32>
    %48 = tpu.reciprocal %47 {approx = true} : vector<2x16x1xf32> -> vector<2x16x1xf32>
    %49 = vector.broadcast %48 : vector<2x16x1xf32> to vector<2x16x16xf32>
    %50 = arith.mulf %45, %49 : vector<2x16x16xf32>
    "tpu.trace_start"() <{level = 10 : i32, message = "bqk,bkd->bqd"}> : () -> ()
    %cst_24 = arith.constant dense<0.000000e+00> : vector<2x16x8xf32>
    %51 = tpu.matmul %50, %37, %cst_24 {dimension_numbers = #tpu.dot_dimension_numbers<[2], [1], [1], [2], [0, 0, 0, 1, 1, 2], [0], [0]>} : vector<2x16x16xf32>, vector<2x16x8xf32>, vector<2x16x8xf32> -> vector<2x16x8xf32>
    "tpu.trace_stop"() : () -> ()
    %52 = vector.shape_cast %51 : vector<2x16x8xf32> to vector<32x8xf32>
    %53 = vector.extract_strided_slice %31 {offsets = [0, 0], sizes = [8, 32], strides = [1, 1]} : vector<32x32xf32> to vector<8x32xf32>
    %cst_25 = arith.constant dense<0.000000e+00> : vector<32x32xf32>
    %54 = tpu.matmul %52, %53, %cst_25 {dimension_numbers = #tpu.dot_dimension_numbers<[1], [0], [0], [1], [0, 0, 1, 1], [], []>} : vector<32x8xf32>, vector<8x32xf32>, vector<32x32xf32> -> vector<32x32xf32>
    %55 = vector.extract_strided_slice %29 {offsets = [0, 8], sizes = [32, 8], strides = [1, 1]} : vector<32x96xf32> to vector<32x8xf32>
    %56 = vector.shape_cast %55 : vector<32x8xf32> to vector<2x16x8xf32>
    %57 = vector.extract_strided_slice %29 {offsets = [0, 40], sizes = [32, 8], strides = [1, 1]} : vector<32x96xf32> to vector<32x8xf32>
    %58 = vector.shape_cast %57 : vector<32x8xf32> to vector<2x16x8xf32>
    %59 = vector.extract_strided_slice %29 {offsets = [0, 72], sizes = [32, 8], strides = [1, 1]} : vector<32x96xf32> to vector<32x8xf32>
    %60 = vector.shape_cast %59 : vector<32x8xf32> to vector<2x16x8xf32>
    "tpu.trace_start"() <{level = 10 : i32, message = "bqd,bkd->bqk"}> : () -> ()
    %cst_26 = arith.constant dense<0.000000e+00> : vector<2x16x16xf32>
    %61 = tpu.matmul %56, %58, %cst_26 {dimension_numbers = #tpu.dot_dimension_numbers<[2], [2], [1], [1], [0, 0, 0, 1, 1, 1], [0], [0]>} : vector<2x16x8xf32>, vector<2x16x8xf32>, vector<2x16x16xf32> -> vector<2x16x16xf32>
    "tpu.trace_stop"() : () -> ()
    %cst_27 = arith.constant 0.353553385 : f32
    %62 = vector.broadcast %cst_27 : f32 to vector<2x16x16xf32>
    %63 = arith.mulf %61, %62 : vector<2x16x16xf32>
    %cst_28 = arith.constant dense<0xFF800000> : vector<2x16xf32>
    %64 = vector.multi_reduction <maximumf>, %63, %cst_28 [2] : vector<2x16x16xf32> to vector<2x16xf32>
    %65 = vector.shape_cast %64 : vector<2x16xf32> to vector<2x16x1xf32>
    %66 = vector.broadcast %65 : vector<2x16x1xf32> to vector<2x16x16xf32>
    %67 = arith.subf %63, %66 : vector<2x16x16xf32>
    %68 = math.exp %67 : vector<2x16x16xf32>
    %cst_29 = arith.constant dense<0.000000e+00> : vector<2x16xf32>
    %69 = vector.multi_reduction <add>, %68, %cst_29 [2] : vector<2x16x16xf32> to vector<2x16xf32>
    %70 = vector.shape_cast %69 : vector<2x16xf32> to vector<2x16x1xf32>
    %71 = tpu.reciprocal %70 {approx = true} : vector<2x16x1xf32> -> vector<2x16x1xf32>
    %72 = vector.broadcast %71 : vector<2x16x1xf32> to vector<2x16x16xf32>
    %73 = arith.mulf %68, %72 : vector<2x16x16xf32>
    "tpu.trace_start"() <{level = 10 : i32, message = "bqk,bkd->bqd"}> : () -> ()
    %cst_30 = arith.constant dense<0.000000e+00> : vector<2x16x8xf32>
    %74 = tpu.matmul %73, %60, %cst_30 {dimension_numbers = #tpu.dot_dimension_numbers<[2], [1], [1], [2], [0, 0, 0, 1, 1, 2], [0], [0]>} : vector<2x16x16xf32>, vector<2x16x8xf32>, vector<2x16x8xf32> -> vector<2x16x8xf32>
    "tpu.trace_stop"() : () -> ()
    %75 = vector.shape_cast %74 : vector<2x16x8xf32> to vector<32x8xf32>
    %76 = vector.extract_strided_slice %31 {offsets = [8, 0], sizes = [8, 32], strides = [1, 1]} : vector<32x32xf32> to vector<8x32xf32>
    %cst_31 = arith.constant dense<0.000000e+00> : vector<32x32xf32>
    %77 = tpu.matmul %75, %76, %cst_31 {dimension_numbers = #tpu.dot_dimension_numbers<[1], [0], [0], [1], [0, 0, 1, 1], [], []>} : vector<32x8xf32>, vector<8x32xf32>, vector<32x32xf32> -> vector<32x32xf32>
    %78 = arith.addf %54, %77 : vector<32x32xf32>
    %79 = vector.extract_strided_slice %29 {offsets = [0, 16], sizes = [32, 8], strides = [1, 1]} : vector<32x96xf32> to vector<32x8xf32>
    %80 = vector.shape_cast %79 : vector<32x8xf32> to vector<2x16x8xf32>
    %81 = vector.extract_strided_slice %29 {offsets = [0, 48], sizes = [32, 8], strides = [1, 1]} : vector<32x96xf32> to vector<32x8xf32>
    %82 = vector.shape_cast %81 : vector<32x8xf32> to vector<2x16x8xf32>
    %83 = vector.extract_strided_slice %29 {offsets = [0, 80], sizes = [32, 8], strides = [1, 1]} : vector<32x96xf32> to vector<32x8xf32>
    %84 = vector.shape_cast %83 : vector<32x8xf32> to vector<2x16x8xf32>
    "tpu.trace_start"() <{level = 10 : i32, message = "bqd,bkd->bqk"}> : () -> ()
    %cst_32 = arith.constant dense<0.000000e+00> : vector<2x16x16xf32>
    %85 = tpu.matmul %80, %82, %cst_32 {dimension_numbers = #tpu.dot_dimension_numbers<[2], [2], [1], [1], [0, 0, 0, 1, 1, 1], [0], [0]>} : vector<2x16x8xf32>, vector<2x16x8xf32>, vector<2x16x16xf32> -> vector<2x16x16xf32>
    "tpu.trace_stop"() : () -> ()
    %cst_33 = arith.constant 0.353553385 : f32
    %86 = vector.broadcast %cst_33 : f32 to vector<2x16x16xf32>
    %87 = arith.mulf %85, %86 : vector<2x16x16xf32>
    %cst_34 = arith.constant dense<0xFF800000> : vector<2x16xf32>
    %88 = vector.multi_reduction <maximumf>, %87, %cst_34 [2] : vector<2x16x16xf32> to vector<2x16xf32>
    %89 = vector.shape_cast %88 : vector<2x16xf32> to vector<2x16x1xf32>
    %90 = vector.broadcast %89 : vector<2x16x1xf32> to vector<2x16x16xf32>
    %91 = arith.subf %87, %90 : vector<2x16x16xf32>
    %92 = math.exp %91 : vector<2x16x16xf32>
    %cst_35 = arith.constant dense<0.000000e+00> : vector<2x16xf32>
    %93 = vector.multi_reduction <add>, %92, %cst_35 [2] : vector<2x16x16xf32> to vector<2x16xf32>
    %94 = vector.shape_cast %93 : vector<2x16xf32> to vector<2x16x1xf32>
    %95 = tpu.reciprocal %94 {approx = true} : vector<2x16x1xf32> -> vector<2x16x1xf32>
    %96 = vector.broadcast %95 : vector<2x16x1xf32> to vector<2x16x16xf32>
    %97 = arith.mulf %92, %96 : vector<2x16x16xf32>
    "tpu.trace_start"() <{level = 10 : i32, message = "bqk,bkd->bqd"}> : () -> ()
    %cst_36 = arith.constant dense<0.000000e+00> : vector<2x16x8xf32>
    %98 = tpu.matmul %97, %84, %cst_36 {dimension_numbers = #tpu.dot_dimension_numbers<[2], [1], [1], [2], [0, 0, 0, 1, 1, 2], [0], [0]>} : vector<2x16x16xf32>, vector<2x16x8xf32>, vector<2x16x8xf32> -> vector<2x16x8xf32>
    "tpu.trace_stop"() : () -> ()
    %99 = vector.shape_cast %98 : vector<2x16x8xf32> to vector<32x8xf32>
    %100 = vector.extract_strided_slice %31 {offsets = [16, 0], sizes = [8, 32], strides = [1, 1]} : vector<32x32xf32> to vector<8x32xf32>
    %cst_37 = arith.constant dense<0.000000e+00> : vector<32x32xf32>
    %101 = tpu.matmul %99, %100, %cst_37 {dimension_numbers = #tpu.dot_dimension_numbers<[1], [0], [0], [1], [0, 0, 1, 1], [], []>} : vector<32x8xf32>, vector<8x32xf32>, vector<32x32xf32> -> vector<32x32xf32>
    %102 = arith.addf %78, %101 : vector<32x32xf32>
    %103 = vector.extract_strided_slice %29 {offsets = [0, 24], sizes = [32, 8], strides = [1, 1]} : vector<32x96xf32> to vector<32x8xf32>
    %104 = vector.shape_cast %103 : vector<32x8xf32> to vector<2x16x8xf32>
    %105 = vector.extract_strided_slice %29 {offsets = [0, 56], sizes = [32, 8], strides = [1, 1]} : vector<32x96xf32> to vector<32x8xf32>
    %106 = vector.shape_cast %105 : vector<32x8xf32> to vector<2x16x8xf32>
    %107 = vector.extract_strided_slice %29 {offsets = [0, 88], sizes = [32, 8], strides = [1, 1]} : vector<32x96xf32> to vector<32x8xf32>
    %108 = vector.shape_cast %107 : vector<32x8xf32> to vector<2x16x8xf32>
    "tpu.trace_start"() <{level = 10 : i32, message = "bqd,bkd->bqk"}> : () -> ()
    %cst_38 = arith.constant dense<0.000000e+00> : vector<2x16x16xf32>
    %109 = tpu.matmul %104, %106, %cst_38 {dimension_numbers = #tpu.dot_dimension_numbers<[2], [2], [1], [1], [0, 0, 0, 1, 1, 1], [0], [0]>} : vector<2x16x8xf32>, vector<2x16x8xf32>, vector<2x16x16xf32> -> vector<2x16x16xf32>
    "tpu.trace_stop"() : () -> ()
    %cst_39 = arith.constant 0.353553385 : f32
    %110 = vector.broadcast %cst_39 : f32 to vector<2x16x16xf32>
    %111 = arith.mulf %109, %110 : vector<2x16x16xf32>
    %cst_40 = arith.constant dense<0xFF800000> : vector<2x16xf32>
    %112 = vector.multi_reduction <maximumf>, %111, %cst_40 [2] : vector<2x16x16xf32> to vector<2x16xf32>
    %113 = vector.shape_cast %112 : vector<2x16xf32> to vector<2x16x1xf32>
    %114 = vector.broadcast %113 : vector<2x16x1xf32> to vector<2x16x16xf32>
    %115 = arith.subf %111, %114 : vector<2x16x16xf32>
    %116 = math.exp %115 : vector<2x16x16xf32>
    %cst_41 = arith.constant dense<0.000000e+00> : vector<2x16xf32>
    %117 = vector.multi_reduction <add>, %116, %cst_41 [2] : vector<2x16x16xf32> to vector<2x16xf32>
    %118 = vector.shape_cast %117 : vector<2x16xf32> to vector<2x16x1xf32>
    %119 = tpu.reciprocal %118 {approx = true} : vector<2x16x1xf32> -> vector<2x16x1xf32>
    %120 = vector.broadcast %119 : vector<2x16x1xf32> to vector<2x16x16xf32>
    %121 = arith.mulf %116, %120 : vector<2x16x16xf32>
    "tpu.trace_start"() <{level = 10 : i32, message = "bqk,bkd->bqd"}> : () -> ()
    %cst_42 = arith.constant dense<0.000000e+00> : vector<2x16x8xf32>
    %122 = tpu.matmul %121, %108, %cst_42 {dimension_numbers = #tpu.dot_dimension_numbers<[2], [1], [1], [2], [0, 0, 0, 1, 1, 2], [0], [0]>} : vector<2x16x16xf32>, vector<2x16x8xf32>, vector<2x16x8xf32> -> vector<2x16x8xf32>
    "tpu.trace_stop"() : () -> ()
    %123 = vector.shape_cast %122 : vector<2x16x8xf32> to vector<32x8xf32>
    %124 = vector.extract_strided_slice %31 {offsets = [24, 0], sizes = [8, 32], strides = [1, 1]} : vector<32x32xf32> to vector<8x32xf32>
    %cst_43 = arith.constant dense<0.000000e+00> : vector<32x32xf32>
    %125 = tpu.matmul %123, %124, %cst_43 {dimension_numbers = #tpu.dot_dimension_numbers<[1], [0], [0], [1], [0, 0, 1, 1], [], []>} : vector<32x8xf32>, vector<8x32xf32>, vector<32x32xf32> -> vector<32x32xf32>
    %126 = arith.addf %102, %125 : vector<32x32xf32>
    %127 = arith.addf %126, %26 : vector<32x32xf32>
    %c0_44 = arith.constant 0 : index
    %c0_45 = arith.constant 0 : index
    %c0_46 = arith.constant 0 : index
    %128 = vector.load %arg6[%c0_44, %c0_45, %c0_46] : memref<2x1x32xf32, #tpu.memory_space<vmem>>, vector<1x1x32xf32>
    %129 = vector.shape_cast %128 : vector<1x1x32xf32> to vector<1x32xf32>
    %c0_47 = arith.constant 0 : index
    %c0_48 = arith.constant 0 : index
    %c0_49 = arith.constant 0 : index
    %130 = vector.load %arg7[%c0_47, %c0_48, %c0_49] : memref<2x1x32xf32, #tpu.memory_space<vmem>>, vector<1x1x32xf32>
    %131 = vector.shape_cast %130 : vector<1x1x32xf32> to vector<1x32xf32>
    %cst_50 = arith.constant dense<0.000000e+00> : vector<32xf32>
    %132 = vector.multi_reduction <add>, %127, %cst_50 [1] : vector<32x32xf32> to vector<32xf32>
    %133 = vector.shape_cast %132 : vector<32xf32> to vector<32x1xf32>
    %cst_51 = arith.constant 3.200000e+01 : f32
    %134 = vector.broadcast %cst_51 : f32 to vector<32x1xf32>
    %135 = arith.divf %133, %134 : vector<32x1xf32>
    %136 = vector.broadcast %135 : vector<32x1xf32> to vector<32x32xf32>
    %137 = arith.subf %127, %136 : vector<32x32xf32>
    %138 = arith.mulf %137, %137 : vector<32x32xf32>
    %cst_52 = arith.constant dense<0.000000e+00> : vector<32xf32>
    %139 = vector.multi_reduction <add>, %138, %cst_52 [1] : vector<32x32xf32> to vector<32xf32>
    %140 = vector.shape_cast %139 : vector<32xf32> to vector<32x1xf32>
    %cst_53 = arith.constant 3.200000e+01 : f32
    %141 = vector.broadcast %cst_53 : f32 to vector<32x1xf32>
    %142 = arith.divf %140, %141 : vector<32x1xf32>
    %143 = vector.broadcast %135 : vector<32x1xf32> to vector<32x32xf32>
    %144 = arith.subf %127, %143 : vector<32x32xf32>
    %cst_54 = arith.constant 9.99999974E-6 : f32
    %145 = vector.broadcast %cst_54 : f32 to vector<32x1xf32>
    %146 = arith.addf %142, %145 : vector<32x1xf32>
    %147 = math.rsqrt %146 : vector<32x1xf32>
    %148 = vector.broadcast %147 : vector<32x1xf32> to vector<32x32xf32>
    %149 = arith.mulf %144, %148 : vector<32x32xf32>
    %150 = vector.broadcast %129 : vector<1x32xf32> to vector<32x32xf32>
    %151 = arith.mulf %149, %150 : vector<32x32xf32>
    %152 = vector.broadcast %131 : vector<1x32xf32> to vector<32x32xf32>
    %153 = arith.addf %151, %152 : vector<32x32xf32>
    %c0_55 = arith.constant 0 : index
    %c0_56 = arith.constant 0 : index
    %c0_57 = arith.constant 0 : index
    %154 = vector.load %arg8[%c0_55, %c0_56, %c0_57] : memref<2x32x64xf32, #tpu.memory_space<vmem>>, vector<1x32x64xf32>
    %155 = vector.shape_cast %154 : vector<1x32x64xf32> to vector<32x64xf32>
    %cst_58 = arith.constant dense<0.000000e+00> : vector<32x64xf32>
    %156 = tpu.matmul %153, %155, %cst_58 {dimension_numbers = #tpu.dot_dimension_numbers<[1], [0], [0], [1], [0, 0, 1, 1], [], []>} : vector<32x32xf32>, vector<32x64xf32>, vector<32x64xf32> -> vector<32x64xf32>
    %c0_59 = arith.constant 0 : index
    %c0_60 = arith.constant 0 : index
    %c0_61 = arith.constant 0 : index
    %157 = vector.load %arg9[%c0_59, %c0_60, %c0_61] : memref<2x1x64xf32, #tpu.memory_space<vmem>>, vector<1x1x64xf32>
    %158 = vector.shape_cast %157 : vector<1x1x64xf32> to vector<1x64xf32>
    %159 = vector.broadcast %158 : vector<1x64xf32> to vector<32x64xf32>
    %160 = arith.addf %156, %159 : vector<32x64xf32>
    %cst_62 = arith.constant 0.000000e+00 : f32
    %161 = vector.broadcast %cst_62 : f32 to vector<32x64xf32>
    %162 = arith.maximumf %160, %161 : vector<32x64xf32>
    %c0_63 = arith.constant 0 : index
    %c0_64 = arith.constant 0 : index
    %c0_65 = arith.constant 0 : index
    %163 = vector.load %arg10[%c0_63, %c0_64, %c0_65] : memref<2x64x32xf32, #tpu.memory_space<vmem>>, vector<1x64x32xf32>
    %164 = vector.shape_cast %163 : vector<1x64x32xf32> to vector<64x32xf32>
    %cst_66 = arith.constant dense<0.000000e+00> : vector<32x32xf32>
    %165 = tpu.matmul %162, %164, %cst_66 {dimension_numbers = #tpu.dot_dimension_numbers<[1], [0], [0], [1], [0, 0, 1, 1], [], []>} : vector<32x64xf32>, vector<64x32xf32>, vector<32x32xf32> -> vector<32x32xf32>
    %c0_67 = arith.constant 0 : index
    %c0_68 = arith.constant 0 : index
    %c0_69 = arith.constant 0 : index
    %166 = vector.load %arg11[%c0_67, %c0_68, %c0_69] : memref<2x1x32xf32, #tpu.memory_space<vmem>>, vector<1x1x32xf32>
    %167 = vector.shape_cast %166 : vector<1x1x32xf32> to vector<1x32xf32>
    %168 = vector.broadcast %167 : vector<1x32xf32> to vector<32x32xf32>
    %169 = arith.addf %165, %168 : vector<32x32xf32>
    %170 = arith.addf %169, %153 : vector<32x32xf32>
    %c0_70 = arith.constant 0 : index
    %c0_71 = arith.constant 0 : index
    %c0_72 = arith.constant 0 : index
    %171 = vector.load %arg12[%c0_70, %c0_71, %c0_72] : memref<2x1x32xf32, #tpu.memory_space<vmem>>, vector<1x1x32xf32>
    %172 = vector.shape_cast %171 : vector<1x1x32xf32> to vector<1x32xf32>
    %c0_73 = arith.constant 0 : index
    %c0_74 = arith.constant 0 : index
    %c0_75 = arith.constant 0 : index
    %173 = vector.load %arg13[%c0_73, %c0_74, %c0_75] : memref<2x1x32xf32, #tpu.memory_space<vmem>>, vector<1x1x32xf32>
    %174 = vector.shape_cast %173 : vector<1x1x32xf32> to vector<1x32xf32>
    %cst_76 = arith.constant dense<0.000000e+00> : vector<32xf32>
    %175 = vector.multi_reduction <add>, %170, %cst_76 [1] : vector<32x32xf32> to vector<32xf32>
    %176 = vector.shape_cast %175 : vector<32xf32> to vector<32x1xf32>
    %cst_77 = arith.constant 3.200000e+01 : f32
    %177 = vector.broadcast %cst_77 : f32 to vector<32x1xf32>
    %178 = arith.divf %176, %177 : vector<32x1xf32>
    %179 = vector.broadcast %178 : vector<32x1xf32> to vector<32x32xf32>
    %180 = arith.subf %170, %179 : vector<32x32xf32>
    %181 = arith.mulf %180, %180 : vector<32x32xf32>
    %cst_78 = arith.constant dense<0.000000e+00> : vector<32xf32>
    %182 = vector.multi_reduction <add>, %181, %cst_78 [1] : vector<32x32xf32> to vector<32xf32>
    %183 = vector.shape_cast %182 : vector<32xf32> to vector<32x1xf32>
    %cst_79 = arith.constant 3.200000e+01 : f32
    %184 = vector.broadcast %cst_79 : f32 to vector<32x1xf32>
    %185 = arith.divf %183, %184 : vector<32x1xf32>
    %186 = vector.broadcast %178 : vector<32x1xf32> to vector<32x32xf32>
    %187 = arith.subf %170, %186 : vector<32x32xf32>
    %cst_80 = arith.constant 9.99999974E-6 : f32
    %188 = vector.broadcast %cst_80 : f32 to vector<32x1xf32>
    %189 = arith.addf %185, %188 : vector<32x1xf32>
    %190 = math.rsqrt %189 : vector<32x1xf32>
    %191 = vector.broadcast %190 : vector<32x1xf32> to vector<32x32xf32>
    %192 = arith.mulf %187, %191 : vector<32x32xf32>
    %193 = vector.broadcast %172 : vector<1x32xf32> to vector<32x32xf32>
    %194 = arith.mulf %192, %193 : vector<32x32xf32>
    %195 = vector.broadcast %174 : vector<1x32xf32> to vector<32x32xf32>
    %196 = arith.addf %194, %195 : vector<32x32xf32>
    %c1_81 = arith.constant 1 : index
    %c0_82 = arith.constant 0 : index
    %c0_83 = arith.constant 0 : index
    %197 = vector.load %arg4[%c1_81, %c0_82, %c0_83] : memref<2x32x96xf32, #tpu.memory_space<vmem>>, vector<1x32x96xf32>
    %198 = vector.shape_cast %197 : vector<1x32x96xf32> to vector<32x96xf32>
    %cst_84 = arith.constant dense<0.000000e+00> : vector<32x96xf32>
    %199 = tpu.matmul %196, %198, %cst_84 {dimension_numbers = #tpu.dot_dimension_numbers<[1], [0], [0], [1], [0, 0, 1, 1], [], []>} : vector<32x32xf32>, vector<32x96xf32>, vector<32x96xf32> -> vector<32x96xf32>
    %c1_85 = arith.constant 1 : index
    %c0_86 = arith.constant 0 : index
    %c0_87 = arith.constant 0 : index
    %200 = vector.load %arg5[%c1_85, %c0_86, %c0_87] : memref<2x32x32xf32, #tpu.memory_space<vmem>>, vector<1x32x32xf32>
    %201 = vector.shape_cast %200 : vector<1x32x32xf32> to vector<32x32xf32>
    %202 = vector.extract_strided_slice %199 {offsets = [0, 0], sizes = [32, 8], strides = [1, 1]} : vector<32x96xf32> to vector<32x8xf32>
    %203 = vector.shape_cast %202 : vector<32x8xf32> to vector<2x16x8xf32>
    %204 = vector.extract_strided_slice %199 {offsets = [0, 32], sizes = [32, 8], strides = [1, 1]} : vector<32x96xf32> to vector<32x8xf32>
    %205 = vector.shape_cast %204 : vector<32x8xf32> to vector<2x16x8xf32>
    %206 = vector.extract_strided_slice %199 {offsets = [0, 64], sizes = [32, 8], strides = [1, 1]} : vector<32x96xf32> to vector<32x8xf32>
    %207 = vector.shape_cast %206 : vector<32x8xf32> to vector<2x16x8xf32>
    "tpu.trace_start"() <{level = 10 : i32, message = "bqd,bkd->bqk"}> : () -> ()
    %cst_88 = arith.constant dense<0.000000e+00> : vector<2x16x16xf32>
    %208 = tpu.matmul %203, %205, %cst_88 {dimension_numbers = #tpu.dot_dimension_numbers<[2], [2], [1], [1], [0, 0, 0, 1, 1, 1], [0], [0]>} : vector<2x16x8xf32>, vector<2x16x8xf32>, vector<2x16x16xf32> -> vector<2x16x16xf32>
    "tpu.trace_stop"() : () -> ()
    %cst_89 = arith.constant 0.353553385 : f32
    %209 = vector.broadcast %cst_89 : f32 to vector<2x16x16xf32>
    %210 = arith.mulf %208, %209 : vector<2x16x16xf32>
    %cst_90 = arith.constant dense<0xFF800000> : vector<2x16xf32>
    %211 = vector.multi_reduction <maximumf>, %210, %cst_90 [2] : vector<2x16x16xf32> to vector<2x16xf32>
    %212 = vector.shape_cast %211 : vector<2x16xf32> to vector<2x16x1xf32>
    %213 = vector.broadcast %212 : vector<2x16x1xf32> to vector<2x16x16xf32>
    %214 = arith.subf %210, %213 : vector<2x16x16xf32>
    %215 = math.exp %214 : vector<2x16x16xf32>
    %cst_91 = arith.constant dense<0.000000e+00> : vector<2x16xf32>
    %216 = vector.multi_reduction <add>, %215, %cst_91 [2] : vector<2x16x16xf32> to vector<2x16xf32>
    %217 = vector.shape_cast %216 : vector<2x16xf32> to vector<2x16x1xf32>
    %218 = tpu.reciprocal %217 {approx = true} : vector<2x16x1xf32> -> vector<2x16x1xf32>
    %219 = vector.broadcast %218 : vector<2x16x1xf32> to vector<2x16x16xf32>
    %220 = arith.mulf %215, %219 : vector<2x16x16xf32>
    "tpu.trace_start"() <{level = 10 : i32, message = "bqk,bkd->bqd"}> : () -> ()
    %cst_92 = arith.constant dense<0.000000e+00> : vector<2x16x8xf32>
    %221 = tpu.matmul %220, %207, %cst_92 {dimension_numbers = #tpu.dot_dimension_numbers<[2], [1], [1], [2], [0, 0, 0, 1, 1, 2], [0], [0]>} : vector<2x16x16xf32>, vector<2x16x8xf32>, vector<2x16x8xf32> -> vector<2x16x8xf32>
    "tpu.trace_stop"() : () -> ()
    %222 = vector.shape_cast %221 : vector<2x16x8xf32> to vector<32x8xf32>
    %223 = vector.extract_strided_slice %201 {offsets = [0, 0], sizes = [8, 32], strides = [1, 1]} : vector<32x32xf32> to vector<8x32xf32>
    %cst_93 = arith.constant dense<0.000000e+00> : vector<32x32xf32>
    %224 = tpu.matmul %222, %223, %cst_93 {dimension_numbers = #tpu.dot_dimension_numbers<[1], [0], [0], [1], [0, 0, 1, 1], [], []>} : vector<32x8xf32>, vector<8x32xf32>, vector<32x32xf32> -> vector<32x32xf32>
    %225 = vector.extract_strided_slice %199 {offsets = [0, 8], sizes = [32, 8], strides = [1, 1]} : vector<32x96xf32> to vector<32x8xf32>
    %226 = vector.shape_cast %225 : vector<32x8xf32> to vector<2x16x8xf32>
    %227 = vector.extract_strided_slice %199 {offsets = [0, 40], sizes = [32, 8], strides = [1, 1]} : vector<32x96xf32> to vector<32x8xf32>
    %228 = vector.shape_cast %227 : vector<32x8xf32> to vector<2x16x8xf32>
    %229 = vector.extract_strided_slice %199 {offsets = [0, 72], sizes = [32, 8], strides = [1, 1]} : vector<32x96xf32> to vector<32x8xf32>
    %230 = vector.shape_cast %229 : vector<32x8xf32> to vector<2x16x8xf32>
    "tpu.trace_start"() <{level = 10 : i32, message = "bqd,bkd->bqk"}> : () -> ()
    %cst_94 = arith.constant dense<0.000000e+00> : vector<2x16x16xf32>
    %231 = tpu.matmul %226, %228, %cst_94 {dimension_numbers = #tpu.dot_dimension_numbers<[2], [2], [1], [1], [0, 0, 0, 1, 1, 1], [0], [0]>} : vector<2x16x8xf32>, vector<2x16x8xf32>, vector<2x16x16xf32> -> vector<2x16x16xf32>
    "tpu.trace_stop"() : () -> ()
    %cst_95 = arith.constant 0.353553385 : f32
    %232 = vector.broadcast %cst_95 : f32 to vector<2x16x16xf32>
    %233 = arith.mulf %231, %232 : vector<2x16x16xf32>
    %cst_96 = arith.constant dense<0xFF800000> : vector<2x16xf32>
    %234 = vector.multi_reduction <maximumf>, %233, %cst_96 [2] : vector<2x16x16xf32> to vector<2x16xf32>
    %235 = vector.shape_cast %234 : vector<2x16xf32> to vector<2x16x1xf32>
    %236 = vector.broadcast %235 : vector<2x16x1xf32> to vector<2x16x16xf32>
    %237 = arith.subf %233, %236 : vector<2x16x16xf32>
    %238 = math.exp %237 : vector<2x16x16xf32>
    %cst_97 = arith.constant dense<0.000000e+00> : vector<2x16xf32>
    %239 = vector.multi_reduction <add>, %238, %cst_97 [2] : vector<2x16x16xf32> to vector<2x16xf32>
    %240 = vector.shape_cast %239 : vector<2x16xf32> to vector<2x16x1xf32>
    %241 = tpu.reciprocal %240 {approx = true} : vector<2x16x1xf32> -> vector<2x16x1xf32>
    %242 = vector.broadcast %241 : vector<2x16x1xf32> to vector<2x16x16xf32>
    %243 = arith.mulf %238, %242 : vector<2x16x16xf32>
    "tpu.trace_start"() <{level = 10 : i32, message = "bqk,bkd->bqd"}> : () -> ()
    %cst_98 = arith.constant dense<0.000000e+00> : vector<2x16x8xf32>
    %244 = tpu.matmul %243, %230, %cst_98 {dimension_numbers = #tpu.dot_dimension_numbers<[2], [1], [1], [2], [0, 0, 0, 1, 1, 2], [0], [0]>} : vector<2x16x16xf32>, vector<2x16x8xf32>, vector<2x16x8xf32> -> vector<2x16x8xf32>
    "tpu.trace_stop"() : () -> ()
    %245 = vector.shape_cast %244 : vector<2x16x8xf32> to vector<32x8xf32>
    %246 = vector.extract_strided_slice %201 {offsets = [8, 0], sizes = [8, 32], strides = [1, 1]} : vector<32x32xf32> to vector<8x32xf32>
    %cst_99 = arith.constant dense<0.000000e+00> : vector<32x32xf32>
    %247 = tpu.matmul %245, %246, %cst_99 {dimension_numbers = #tpu.dot_dimension_numbers<[1], [0], [0], [1], [0, 0, 1, 1], [], []>} : vector<32x8xf32>, vector<8x32xf32>, vector<32x32xf32> -> vector<32x32xf32>
    %248 = arith.addf %224, %247 : vector<32x32xf32>
    %249 = vector.extract_strided_slice %199 {offsets = [0, 16], sizes = [32, 8], strides = [1, 1]} : vector<32x96xf32> to vector<32x8xf32>
    %250 = vector.shape_cast %249 : vector<32x8xf32> to vector<2x16x8xf32>
    %251 = vector.extract_strided_slice %199 {offsets = [0, 48], sizes = [32, 8], strides = [1, 1]} : vector<32x96xf32> to vector<32x8xf32>
    %252 = vector.shape_cast %251 : vector<32x8xf32> to vector<2x16x8xf32>
    %253 = vector.extract_strided_slice %199 {offsets = [0, 80], sizes = [32, 8], strides = [1, 1]} : vector<32x96xf32> to vector<32x8xf32>
    %254 = vector.shape_cast %253 : vector<32x8xf32> to vector<2x16x8xf32>
    "tpu.trace_start"() <{level = 10 : i32, message = "bqd,bkd->bqk"}> : () -> ()
    %cst_100 = arith.constant dense<0.000000e+00> : vector<2x16x16xf32>
    %255 = tpu.matmul %250, %252, %cst_100 {dimension_numbers = #tpu.dot_dimension_numbers<[2], [2], [1], [1], [0, 0, 0, 1, 1, 1], [0], [0]>} : vector<2x16x8xf32>, vector<2x16x8xf32>, vector<2x16x16xf32> -> vector<2x16x16xf32>
    "tpu.trace_stop"() : () -> ()
    %cst_101 = arith.constant 0.353553385 : f32
    %256 = vector.broadcast %cst_101 : f32 to vector<2x16x16xf32>
    %257 = arith.mulf %255, %256 : vector<2x16x16xf32>
    %cst_102 = arith.constant dense<0xFF800000> : vector<2x16xf32>
    %258 = vector.multi_reduction <maximumf>, %257, %cst_102 [2] : vector<2x16x16xf32> to vector<2x16xf32>
    %259 = vector.shape_cast %258 : vector<2x16xf32> to vector<2x16x1xf32>
    %260 = vector.broadcast %259 : vector<2x16x1xf32> to vector<2x16x16xf32>
    %261 = arith.subf %257, %260 : vector<2x16x16xf32>
    %262 = math.exp %261 : vector<2x16x16xf32>
    %cst_103 = arith.constant dense<0.000000e+00> : vector<2x16xf32>
    %263 = vector.multi_reduction <add>, %262, %cst_103 [2] : vector<2x16x16xf32> to vector<2x16xf32>
    %264 = vector.shape_cast %263 : vector<2x16xf32> to vector<2x16x1xf32>
    %265 = tpu.reciprocal %264 {approx = true} : vector<2x16x1xf32> -> vector<2x16x1xf32>
    %266 = vector.broadcast %265 : vector<2x16x1xf32> to vector<2x16x16xf32>
    %267 = arith.mulf %262, %266 : vector<2x16x16xf32>
    "tpu.trace_start"() <{level = 10 : i32, message = "bqk,bkd->bqd"}> : () -> ()
    %cst_104 = arith.constant dense<0.000000e+00> : vector<2x16x8xf32>
    %268 = tpu.matmul %267, %254, %cst_104 {dimension_numbers = #tpu.dot_dimension_numbers<[2], [1], [1], [2], [0, 0, 0, 1, 1, 2], [0], [0]>} : vector<2x16x16xf32>, vector<2x16x8xf32>, vector<2x16x8xf32> -> vector<2x16x8xf32>
    "tpu.trace_stop"() : () -> ()
    %269 = vector.shape_cast %268 : vector<2x16x8xf32> to vector<32x8xf32>
    %270 = vector.extract_strided_slice %201 {offsets = [16, 0], sizes = [8, 32], strides = [1, 1]} : vector<32x32xf32> to vector<8x32xf32>
    %cst_105 = arith.constant dense<0.000000e+00> : vector<32x32xf32>
    %271 = tpu.matmul %269, %270, %cst_105 {dimension_numbers = #tpu.dot_dimension_numbers<[1], [0], [0], [1], [0, 0, 1, 1], [], []>} : vector<32x8xf32>, vector<8x32xf32>, vector<32x32xf32> -> vector<32x32xf32>
    %272 = arith.addf %248, %271 : vector<32x32xf32>
    %273 = vector.extract_strided_slice %199 {offsets = [0, 24], sizes = [32, 8], strides = [1, 1]} : vector<32x96xf32> to vector<32x8xf32>
    %274 = vector.shape_cast %273 : vector<32x8xf32> to vector<2x16x8xf32>
    %275 = vector.extract_strided_slice %199 {offsets = [0, 56], sizes = [32, 8], strides = [1, 1]} : vector<32x96xf32> to vector<32x8xf32>
    %276 = vector.shape_cast %275 : vector<32x8xf32> to vector<2x16x8xf32>
    %277 = vector.extract_strided_slice %199 {offsets = [0, 88], sizes = [32, 8], strides = [1, 1]} : vector<32x96xf32> to vector<32x8xf32>
    %278 = vector.shape_cast %277 : vector<32x8xf32> to vector<2x16x8xf32>
    "tpu.trace_start"() <{level = 10 : i32, message = "bqd,bkd->bqk"}> : () -> ()
    %cst_106 = arith.constant dense<0.000000e+00> : vector<2x16x16xf32>
    %279 = tpu.matmul %274, %276, %cst_106 {dimension_numbers = #tpu.dot_dimension_numbers<[2], [2], [1], [1], [0, 0, 0, 1, 1, 1], [0], [0]>} : vector<2x16x8xf32>, vector<2x16x8xf32>, vector<2x16x16xf32> -> vector<2x16x16xf32>
    "tpu.trace_stop"() : () -> ()
    %cst_107 = arith.constant 0.353553385 : f32
    %280 = vector.broadcast %cst_107 : f32 to vector<2x16x16xf32>
    %281 = arith.mulf %279, %280 : vector<2x16x16xf32>
    %cst_108 = arith.constant dense<0xFF800000> : vector<2x16xf32>
    %282 = vector.multi_reduction <maximumf>, %281, %cst_108 [2] : vector<2x16x16xf32> to vector<2x16xf32>
    %283 = vector.shape_cast %282 : vector<2x16xf32> to vector<2x16x1xf32>
    %284 = vector.broadcast %283 : vector<2x16x1xf32> to vector<2x16x16xf32>
    %285 = arith.subf %281, %284 : vector<2x16x16xf32>
    %286 = math.exp %285 : vector<2x16x16xf32>
    %cst_109 = arith.constant dense<0.000000e+00> : vector<2x16xf32>
    %287 = vector.multi_reduction <add>, %286, %cst_109 [2] : vector<2x16x16xf32> to vector<2x16xf32>
    %288 = vector.shape_cast %287 : vector<2x16xf32> to vector<2x16x1xf32>
    %289 = tpu.reciprocal %288 {approx = true} : vector<2x16x1xf32> -> vector<2x16x1xf32>
    %290 = vector.broadcast %289 : vector<2x16x1xf32> to vector<2x16x16xf32>
    %291 = arith.mulf %286, %290 : vector<2x16x16xf32>
    "tpu.trace_start"() <{level = 10 : i32, message = "bqk,bkd->bqd"}> : () -> ()
    %cst_110 = arith.constant dense<0.000000e+00> : vector<2x16x8xf32>
    %292 = tpu.matmul %291, %278, %cst_110 {dimension_numbers = #tpu.dot_dimension_numbers<[2], [1], [1], [2], [0, 0, 0, 1, 1, 2], [0], [0]>} : vector<2x16x16xf32>, vector<2x16x8xf32>, vector<2x16x8xf32> -> vector<2x16x8xf32>
    "tpu.trace_stop"() : () -> ()
    %293 = vector.shape_cast %292 : vector<2x16x8xf32> to vector<32x8xf32>
    %294 = vector.extract_strided_slice %201 {offsets = [24, 0], sizes = [8, 32], strides = [1, 1]} : vector<32x32xf32> to vector<8x32xf32>
    %cst_111 = arith.constant dense<0.000000e+00> : vector<32x32xf32>
    %295 = tpu.matmul %293, %294, %cst_111 {dimension_numbers = #tpu.dot_dimension_numbers<[1], [0], [0], [1], [0, 0, 1, 1], [], []>} : vector<32x8xf32>, vector<8x32xf32>, vector<32x32xf32> -> vector<32x32xf32>
    %296 = arith.addf %272, %295 : vector<32x32xf32>
    %297 = arith.addf %296, %196 : vector<32x32xf32>
    %c1_112 = arith.constant 1 : index
    %c0_113 = arith.constant 0 : index
    %c0_114 = arith.constant 0 : index
    %298 = vector.load %arg6[%c1_112, %c0_113, %c0_114] : memref<2x1x32xf32, #tpu.memory_space<vmem>>, vector<1x1x32xf32>
    %299 = vector.shape_cast %298 : vector<1x1x32xf32> to vector<1x32xf32>
    %c1_115 = arith.constant 1 : index
    %c0_116 = arith.constant 0 : index
    %c0_117 = arith.constant 0 : index
    %300 = vector.load %arg7[%c1_115, %c0_116, %c0_117] : memref<2x1x32xf32, #tpu.memory_space<vmem>>, vector<1x1x32xf32>
    %301 = vector.shape_cast %300 : vector<1x1x32xf32> to vector<1x32xf32>
    %cst_118 = arith.constant dense<0.000000e+00> : vector<32xf32>
    %302 = vector.multi_reduction <add>, %297, %cst_118 [1] : vector<32x32xf32> to vector<32xf32>
    %303 = vector.shape_cast %302 : vector<32xf32> to vector<32x1xf32>
    %cst_119 = arith.constant 3.200000e+01 : f32
    %304 = vector.broadcast %cst_119 : f32 to vector<32x1xf32>
    %305 = arith.divf %303, %304 : vector<32x1xf32>
    %306 = vector.broadcast %305 : vector<32x1xf32> to vector<32x32xf32>
    %307 = arith.subf %297, %306 : vector<32x32xf32>
    %308 = arith.mulf %307, %307 : vector<32x32xf32>
    %cst_120 = arith.constant dense<0.000000e+00> : vector<32xf32>
    %309 = vector.multi_reduction <add>, %308, %cst_120 [1] : vector<32x32xf32> to vector<32xf32>
    %310 = vector.shape_cast %309 : vector<32xf32> to vector<32x1xf32>
    %cst_121 = arith.constant 3.200000e+01 : f32
    %311 = vector.broadcast %cst_121 : f32 to vector<32x1xf32>
    %312 = arith.divf %310, %311 : vector<32x1xf32>
    %313 = vector.broadcast %305 : vector<32x1xf32> to vector<32x32xf32>
    %314 = arith.subf %297, %313 : vector<32x32xf32>
    %cst_122 = arith.constant 9.99999974E-6 : f32
    %315 = vector.broadcast %cst_122 : f32 to vector<32x1xf32>
    %316 = arith.addf %312, %315 : vector<32x1xf32>
    %317 = math.rsqrt %316 : vector<32x1xf32>
    %318 = vector.broadcast %317 : vector<32x1xf32> to vector<32x32xf32>
    %319 = arith.mulf %314, %318 : vector<32x32xf32>
    %320 = vector.broadcast %299 : vector<1x32xf32> to vector<32x32xf32>
    %321 = arith.mulf %319, %320 : vector<32x32xf32>
    %322 = vector.broadcast %301 : vector<1x32xf32> to vector<32x32xf32>
    %323 = arith.addf %321, %322 : vector<32x32xf32>
    %c1_123 = arith.constant 1 : index
    %c0_124 = arith.constant 0 : index
    %c0_125 = arith.constant 0 : index
    %324 = vector.load %arg8[%c1_123, %c0_124, %c0_125] : memref<2x32x64xf32, #tpu.memory_space<vmem>>, vector<1x32x64xf32>
    %325 = vector.shape_cast %324 : vector<1x32x64xf32> to vector<32x64xf32>
    %cst_126 = arith.constant dense<0.000000e+00> : vector<32x64xf32>
    %326 = tpu.matmul %323, %325, %cst_126 {dimension_numbers = #tpu.dot_dimension_numbers<[1], [0], [0], [1], [0, 0, 1, 1], [], []>} : vector<32x32xf32>, vector<32x64xf32>, vector<32x64xf32> -> vector<32x64xf32>
    %c1_127 = arith.constant 1 : index
    %c0_128 = arith.constant 0 : index
    %c0_129 = arith.constant 0 : index
    %327 = vector.load %arg9[%c1_127, %c0_128, %c0_129] : memref<2x1x64xf32, #tpu.memory_space<vmem>>, vector<1x1x64xf32>
    %328 = vector.shape_cast %327 : vector<1x1x64xf32> to vector<1x64xf32>
    %329 = vector.broadcast %328 : vector<1x64xf32> to vector<32x64xf32>
    %330 = arith.addf %326, %329 : vector<32x64xf32>
    %cst_130 = arith.constant 0.000000e+00 : f32
    %331 = vector.broadcast %cst_130 : f32 to vector<32x64xf32>
    %332 = arith.maximumf %330, %331 : vector<32x64xf32>
    %c1_131 = arith.constant 1 : index
    %c0_132 = arith.constant 0 : index
    %c0_133 = arith.constant 0 : index
    %333 = vector.load %arg10[%c1_131, %c0_132, %c0_133] : memref<2x64x32xf32, #tpu.memory_space<vmem>>, vector<1x64x32xf32>
    %334 = vector.shape_cast %333 : vector<1x64x32xf32> to vector<64x32xf32>
    %cst_134 = arith.constant dense<0.000000e+00> : vector<32x32xf32>
    %335 = tpu.matmul %332, %334, %cst_134 {dimension_numbers = #tpu.dot_dimension_numbers<[1], [0], [0], [1], [0, 0, 1, 1], [], []>} : vector<32x64xf32>, vector<64x32xf32>, vector<32x32xf32> -> vector<32x32xf32>
    %c1_135 = arith.constant 1 : index
    %c0_136 = arith.constant 0 : index
    %c0_137 = arith.constant 0 : index
    %336 = vector.load %arg11[%c1_135, %c0_136, %c0_137] : memref<2x1x32xf32, #tpu.memory_space<vmem>>, vector<1x1x32xf32>
    %337 = vector.shape_cast %336 : vector<1x1x32xf32> to vector<1x32xf32>
    %338 = vector.broadcast %337 : vector<1x32xf32> to vector<32x32xf32>
    %339 = arith.addf %335, %338 : vector<32x32xf32>
    %340 = arith.addf %339, %323 : vector<32x32xf32>
    %c1_138 = arith.constant 1 : index
    %c0_139 = arith.constant 0 : index
    %c0_140 = arith.constant 0 : index
    %341 = vector.load %arg12[%c1_138, %c0_139, %c0_140] : memref<2x1x32xf32, #tpu.memory_space<vmem>>, vector<1x1x32xf32>
    %342 = vector.shape_cast %341 : vector<1x1x32xf32> to vector<1x32xf32>
    %c1_141 = arith.constant 1 : index
    %c0_142 = arith.constant 0 : index
    %c0_143 = arith.constant 0 : index
    %343 = vector.load %arg13[%c1_141, %c0_142, %c0_143] : memref<2x1x32xf32, #tpu.memory_space<vmem>>, vector<1x1x32xf32>
    %344 = vector.shape_cast %343 : vector<1x1x32xf32> to vector<1x32xf32>
    %cst_144 = arith.constant dense<0.000000e+00> : vector<32xf32>
    %345 = vector.multi_reduction <add>, %340, %cst_144 [1] : vector<32x32xf32> to vector<32xf32>
    %346 = vector.shape_cast %345 : vector<32xf32> to vector<32x1xf32>
    %cst_145 = arith.constant 3.200000e+01 : f32
    %347 = vector.broadcast %cst_145 : f32 to vector<32x1xf32>
    %348 = arith.divf %346, %347 : vector<32x1xf32>
    %349 = vector.broadcast %348 : vector<32x1xf32> to vector<32x32xf32>
    %350 = arith.subf %340, %349 : vector<32x32xf32>
    %351 = arith.mulf %350, %350 : vector<32x32xf32>
    %cst_146 = arith.constant dense<0.000000e+00> : vector<32xf32>
    %352 = vector.multi_reduction <add>, %351, %cst_146 [1] : vector<32x32xf32> to vector<32xf32>
    %353 = vector.shape_cast %352 : vector<32xf32> to vector<32x1xf32>
    %cst_147 = arith.constant 3.200000e+01 : f32
    %354 = vector.broadcast %cst_147 : f32 to vector<32x1xf32>
    %355 = arith.divf %353, %354 : vector<32x1xf32>
    %356 = vector.broadcast %348 : vector<32x1xf32> to vector<32x32xf32>
    %357 = arith.subf %340, %356 : vector<32x32xf32>
    %cst_148 = arith.constant 9.99999974E-6 : f32
    %358 = vector.broadcast %cst_148 : f32 to vector<32x1xf32>
    %359 = arith.addf %355, %358 : vector<32x1xf32>
    %360 = math.rsqrt %359 : vector<32x1xf32>
    %361 = vector.broadcast %360 : vector<32x1xf32> to vector<32x32xf32>
    %362 = arith.mulf %357, %361 : vector<32x32xf32>
    %363 = vector.broadcast %342 : vector<1x32xf32> to vector<32x32xf32>
    %364 = arith.mulf %362, %363 : vector<32x32xf32>
    %365 = vector.broadcast %344 : vector<1x32xf32> to vector<32x32xf32>
    %366 = arith.addf %364, %365 : vector<32x32xf32>
    %c0_149 = arith.constant 0 : index
    %c0_150 = arith.constant 0 : index
    %367 = vector.load %arg14[%c0_149, %c0_150] : memref<32x128xf32, #tpu.memory_space<vmem>>, vector<32x128xf32>
    %cst_151 = arith.constant dense<0.000000e+00> : vector<32x128xf32>
    %368 = tpu.matmul %366, %367, %cst_151 {dimension_numbers = #tpu.dot_dimension_numbers<[1], [0], [0], [1], [0, 0, 1, 1], [], []>} : vector<32x32xf32>, vector<32x128xf32>, vector<32x128xf32> -> vector<32x128xf32>
    %c0_152 = arith.constant 0 : index
    %c0_153 = arith.constant 0 : index
    %369 = vector.load %arg15[%c0_152, %c0_153] : memref<1x128xf32, #tpu.memory_space<vmem>>, vector<1x128xf32>
    %370 = vector.broadcast %369 : vector<1x128xf32> to vector<32x128xf32>
    %371 = arith.addf %368, %370 : vector<32x128xf32>
    %c0_154 = arith.constant 0 : index
    %c0_155 = arith.constant 0 : index
    %372 = vector.load %arg16[%c0_154, %c0_155] : memref<32x128xf32, #tpu.memory_space<vmem>>, vector<32x128xf32>
    tpu.vector_store %arg16[%c0_154, %c0_155], %371 {strides = array<i32>} : memref<32x128xf32, #tpu.memory_space<vmem>>, vector<32x128xf32>,
    return
  }
  func.func @transform_0(%arg0: i32) -> (i32, i32, i32) {
    %c0_i32 = arith.constant 0 : i32
    %c0_i32_0 = arith.constant 0 : i32
    %c0_i32_1 = arith.constant 0 : i32
    return %arg0, %c0_i32, %c0_i32_0 : i32, i32, i32
  }
  func.func @transform_1(%arg0: i32) -> (i32, i32) {
    %c0_i32 = arith.constant 0 : i32
    %c0_i32_0 = arith.constant 0 : i32
    %c0_i32_1 = arith.constant 0 : i32
    return %c0_i32, %c0_i32_0 : i32, i32
  }
  func.func @transform_2(%arg0: i32) -> (i32, i32, i32) {
    %c0_i32 = arith.constant 0 : i32
    %c0_i32_0 = arith.constant 0 : i32
    %c0_i32_1 = arith.constant 0 : i32
    %c0_i32_2 = arith.constant 0 : i32
    return %c0_i32, %c0_i32_0, %c0_i32_1 : i32, i32, i32
  }
  func.func @transform_3(%arg0: i32) -> (i32, i32, i32) {
    %c0_i32 = arith.constant 0 : i32
    %c0_i32_0 = arith.constant 0 : i32
    %c0_i32_1 = arith.constant 0 : i32
    %c0_i32_2 = arith.constant 0 : i32
    return %c0_i32, %c0_i32_0, %c0_i32_1 : i32, i32, i32
  }
  func.func @transform_4(%arg0: i32) -> (i32, i32, i32) {
    %c0_i32 = arith.constant 0 : i32
    %c0_i32_0 = arith.constant 0 : i32
    %c0_i32_1 = arith.constant 0 : i32
    %c0_i32_2 = arith.constant 0 : i32
    return %c0_i32, %c0_i32_0, %c0_i32_1 : i32, i32, i32
  }
  func.func @transform_5(%arg0: i32) -> (i32, i32, i32) {
    %c0_i32 = arith.constant 0 : i32
    %c0_i32_0 = arith.constant 0 : i32
    %c0_i32_1 = arith.constant 0 : i32
    %c0_i32_2 = arith.constant 0 : i32
    return %c0_i32, %c0_i32_0, %c0_i32_1 : i32, i32, i32
  }
  func.func @transform_6(%arg0: i32) -> (i32, i32, i32) {
    %c0_i32 = arith.constant 0 : i32
    %c0_i32_0 = arith.constant 0 : i32
    %c0_i32_1 = arith.constant 0 : i32
    %c0_i32_2 = arith.constant 0 : i32
    return %c0_i32, %c0_i32_0, %c0_i32_1 : i32, i32, i32
  }
  func.func @transform_7(%arg0: i32) -> (i32, i32, i32) {
    %c0_i32 = arith.constant 0 : i32
    %c0_i32_0 = arith.constant 0 : i32
    %c0_i32_1 = arith.constant 0 : i32
    %c0_i32_2 = arith.constant 0 : i32
    return %c0_i32, %c0_i32_0, %c0_i32_1 : i32, i32, i32
  }
  func.func @transform_8(%arg0: i32) -> (i32, i32, i32) {
    %c0_i32 = arith.constant 0 : i32
    %c0_i32_0 = arith.constant 0 : i32
    %c0_i32_1 = arith.constant 0 : i32
    %c0_i32_2 = arith.constant 0 : i32
    return %c0_i32, %c0_i32_0, %c0_i32_1 : i32, i32, i32
  }
  func.func @transform_9(%arg0: i32) -> (i32, i32, i32) {
    %c0_i32 = arith.constant 0 : i32
    %c0_i32_0 = arith.constant 0 : i32
    %c0_i32_1 = arith.constant 0 : i32
    %c0_i32_2 = arith.constant 0 : i32
    return %c0_i32, %c0_i32_0, %c0_i32_1 : i32, i32, i32
  }
  func.func @transform_10(%arg0: i32) -> (i32, i32, i32) {
    %c0_i32 = arith.constant 0 : i32
    %c0_i32_0 = arith.constant 0 : i32
    %c0_i32_1 = arith.constant 0 : i32
    %c0_i32_2 = arith.constant 0 : i32
    return %c0_i32, %c0_i32_0, %c0_i32_1 : i32, i32, i32
  }
  func.func @transform_11(%arg0: i32) -> (i32, i32, i32) {
    %c0_i32 = arith.constant 0 : i32
    %c0_i32_0 = arith.constant 0 : i32
    %c0_i32_1 = arith.constant 0 : i32
    %c0_i32_2 = arith.constant 0 : i32
    return %c0_i32, %c0_i32_0, %c0_i32_1 : i32, i32, i32
  }
  func.func @transform_12(%arg0: i32) -> (i32, i32, i32) {
    %c0_i32 = arith.constant 0 : i32
    %c0_i32_0 = arith.constant 0 : i32
    %c0_i32_1 = arith.constant 0 : i32
    %c0_i32_2 = arith.constant 0 : i32
    return %c0_i32, %c0_i32_0, %c0_i32_1 : i32, i32, i32
  }
  func.func @transform_13(%arg0: i32) -> (i32, i32) {
    %c0_i32 = arith.constant 0 : i32
    %c0_i32_0 = arith.constant 0 : i32
    %c0_i32_1 = arith.constant 0 : i32
    return %c0_i32, %c0_i32_0 : i32, i32
  }
  func.func @transform_14(%arg0: i32) -> (i32, i32) {
    %c0_i32 = arith.constant 0 : i32
    %c0_i32_0 = arith.constant 0 : i32
    %c0_i32_1 = arith.constant 0 : i32
    return %c0_i32, %c0_i32_0 : i32, i32
  }
  func.func @transform_15(%arg0: i32) -> (i32, i32) {
    %c0_i32 = arith.constant 0 : i32
    %c0_i32_0 = arith.constant 0 : i32
    return %arg0, %c0_i32 : i32, i32
  }
}

</mosaic_0001>

<bundles_post_ra>
// kernel: transformer_encoder_forward.1
= control target key start
LH: loop header
LB: loop body
LE: loop exit
PB: predicated region body
PF: predicated region fallthrough
CT: control target
= control target key end

     0   :  { %vm96_vm0 = vcmask 310272   ;;  %vm105_vm1 = vcmask 1045504   ;;  %s8020_s0 = inlined_call_operand.vmem [shape: f32[2,16,38], index: 0, kind: input, shape index: {}]   ;;  %s8021_s1 = inlined_call_operand.vmem [shape: f32[16,32], index: 1, kind: input, shape index: {}]   ;;  %s8022_s2 = inlined_call_operand.vmem [shape: f32[3,38,32], index: 2, kind: input, shape index: {}]   ;;  %s8023_s3 = inlined_call_operand.vmem [shape: f32[2,32,96], index: 3, kind: input, shape index: {}]   ;;  %s8024_s4 = inlined_call_operand.vmem [shape: f32[2,32,32], index: 4, kind: input, shape index: {}]   ;;  %s8025_s5 = inlined_call_operand.vmem [shape: f32[2,1,32], index: 5, kind: input, shape index: {}]   ;;  %s8026_s6 = inlined_call_operand.vmem [shape: f32[2,1,32], index: 6, kind: input, shape index: {}]   ;;  %s8027_s7 = inlined_call_operand.vmem [shape: f32[2,32,64], index: 7, kind: input, shape index: {}]   ;;  %s8028_s8 = inlined_call_operand.vmem [shape: f32[2,1,64], index: 8, kind: input, shape index: {}]   ;;  %s8029_s9 = inlined_call_operand.vmem [shape: f32[2,64,32], index: 9, kind: input, shape index: {}]   ;;  %s8030_s10 = inlined_call_operand.vmem [shape: f32[2,1,32], index: 10, kind: input, shape index: {}]   ;;  %s8031_s11 = inlined_call_operand.vmem [shape: f32[2,1,32], index: 11, kind: input, shape index: {}]   ;;  %s8032_s12 = inlined_call_operand.vmem [shape: f32[2,1,32], index: 12, kind: input, shape index: {}]   ;;  %s8033_s13 = inlined_call_operand.vmem [shape: f32[32,128], index: 13, kind: input, shape index: {}]   ;;  %s8034_s14 = inlined_call_operand.vmem [shape: f32[1,128], index: 14, kind: input, shape index: {}]   ;;  %s8035_s15 = inlined_call_operand.hbm [shape: f32[32,128], index: 15, kind: output, shape index: {}]  }
   0x1   :  { %v5535_v0 = vld [vmem:[%s8022_s2 + $0x28] sm:$0xff]  ;;  %v5536_v1 = vld [vmem:[%s8022_s2 + $0x30] sm:$0xff]  ;;  %v5537_v2 = vld [vmem:[%s8022_s2 + $0x38] sm:$0xff] }
   0x2   :  { %v6464_v3 = vpack.c.bf16 %v5536_v1, %v5535_v0  ;;  %v5538_v4 = vld [vmem:[%s8022_s2 + $0x40] sm:$0xff]  ;;  %v5539_v7 = vld [vmem:[%s8022_s2 + $0x48] sm:$0x3f] }
   0x3   :  { %v7219_v5 = vld [vmem:[%s8020_s0] sm:$0xff]  ;;  %v6468_v6 = vpack.c.bf16 %v5538_v4, %v5537_v2  ;;  %v86_v9 = vld [vmem:[%s8022_s2 + $0x8] sm:$0xff] }
   0x4   :  { %6024 = vmatprep.mubr.msk.f32.mxu0 %vm96_vm0, %v7219_v5  ;;  %6465 = vmatprep.subr.bf16.mxu0 %v6464_v3  ;;  %v85_v8 = vld [vmem:[%s8022_s2] sm:$0xff]  ;;  %v407_v11 = vld [vmem:[%s8023_s3 + $0x8] sm:$0xff] }
   0x5   :  { %6467 = vmatpush3.bf16.msra.mxu0 %v6464_v3  ;;  %v406_v10 = vld [vmem:[%s8023_s3] sm:$0xff] }
   0x6   :  { %6469 = vmatprep.subr.bf16.mxu0 %v6468_v6 }
   0x7   :  { %20 = vsyncpa [#allocation3], 0  ;;  %v87_v12 = vld [vmem:[%s8022_s2 + $0x10] sm:$0xff]  ;;  %v88_v13 = vld [vmem:[%s8022_s2 + $0x18] sm:$0xff]  ;;  %v6488_v14 = vpack.c.bf16 %v407_v11, %v406_v10  ;;  %v6472_v15 = vpack.c.bf16 %v86_v9, %v85_v8  ;;  %v64_v17 = vrot.slane %v7219_v5, 7  ;;  %vm63_vm2 = vcmask 1040384  }
   0x8   :  { %v52_v16 = vld [vmem:[%s8020_s0 + $0x8] sm:$0xff]  ;;  %v6476_v19 = vpack.c.bf16 %v88_v13, %v87_v12  ;;  %v53_v20 = vld [vmem:[%s8020_s0 + $0x10] sm:$0xff]  ;;  %v54_v21 = vld [vmem:[%s8020_s0 + $0x18] sm:$0xff]  ;;  %v73_v32 = vrot.slane %v7219_v5, 1  ;;  %vm72_vm3 = vcmask 1046528   ;;  %vm410_vm4 = vcmask 261120  }
   0x9   :  { %6471 = vmatpush3.bf16.msra.mxu0 %v6468_v6  ;;  %6489 = vmatprep.subr.bf16.mxu1 %v6488_v14  ;;  %v57_v18 = vrot.slane %v52_v16, 7  ;;  %v89_v23 = vld [vmem:[%s8022_s2 + $0x20] sm:$0x3f]  ;;  %v5550_v24 = vld [vmem:[%s8022_s2 + $0x50] sm:$0xff]  ;;  %v5551_v25 = vld [vmem:[%s8022_s2 + $0x58] sm:$0xff]  ;;  %v66_v26 = vrot.slane %v53_v20, 7 }
   0xa   :  { %6022 = vmatprep.subr.msk.mxu0 %vm105_vm1, %v5539_v7  ;;  %6491 = vmatpush3.bf16.msra.mxu1 %v6488_v14  ;;  %v58_v27 = vrot.slane %v54_v21, 7  ;;  %v5552_v28 = vld [vmem:[%s8022_s2 + $0x60] sm:$0xff]  ;;  %v5553_v29 = vld [vmem:[%s8022_s2 + $0x68] sm:$0xff]  ;;  %v6480_v30 = vpack.c.bf16 %v5551_v25, %v5550_v24  ;;  %v74_v33 = vrot.slane %v52_v16, 1  ;;  %v5554_v38 = vld [vmem:[%s8022_s2 + $0x70] sm:$0x3f] }
   0xb   :  { %v70_v22 = vsel %vm63_vm2, %v57_v18, %v64_v17  ;;  %v65_v31 = vsel %vm63_vm2, %v64_v17, %v57_v18  ;;  %v6484_v34 = vpack.c.bf16 %v5553_v29, %v5552_v28  ;;  %v76_v39 = vrot.slane %v53_v20, 1  ;;  %v408_v44 = vld [vmem:[%s8023_s3 + $0x10] sm:$0xff]  ;;  %v409_v45 = vld [vmem:[%s8023_s3 + $0x18] sm:$0xff]  ;;  %v400_v47 = vld [vmem:[%s8021_s1] sm:$0xff]  ;;  %s7111_s21 = smov 64   ;;  %s7112_s22 = smov 88  }
   0xc   :  { %v71_v35 = vsel %vm63_vm2, %v58_v27, %v66_v26  ;;  %v67_v36 = vsel %vm63_vm2, %v66_v26, %v58_v27  ;;  %v75_v37 = vsel %vm72_vm3, %v73_v32, %v74_v33  ;;  %v77_v40 = vrot.slane %v54_v21, 1  ;;  %v401_v49 = vld [vmem:[%s8021_s1 + $0x8] sm:$0xff]  ;;  %s7110_s1 = smov 96   ;;  %s7113_s23 = smov 120  }
   0xd   :  { %6023 = vmatpush3.msk.msra.mxu0 %vm105_vm1, %v5539_v7  ;;  %v83_v41 = vsel %vm72_vm3, %v74_v33, %v73_v32  ;;  %v6492_v46 = vpack.c.bf16 %v409_v45, %v408_v44  ;;  %vm518_vm5 = vcmask 64512   ;;  %vm695_vm7 = vcmask 130048   ;;  %s7114_s0 = smov 56   ;;  %s7115_s24 = smov 80  }
   0xe   :  { %6473 = vmatprep.subr.bf16.mxu0 %v6472_v15  ;;  %6025 = vmatmul.mubr.msk.f32.vlgmr.msra.gmra.mrb[0].mxu0 %vm96_vm0, %v52_v16  ;;  %v78_v42 = vsel %vm72_vm3, %v76_v39, %v77_v40  ;;  %v84_v43 = vsel %vm72_vm3, %v77_v40, %v76_v39  ;;  %vm7350_vm6 = vmpackc.low %vm518_vm5, %vm518_vm5  ;;  %s7116_s25 = smov 112   ;;  %s7117_s29 = smov 48   ;;  %vm2728_vm8 = vcmask 523264  }
   0xf   :  { %6475 = vmatpush3.bf16.msra.mxu0 %v6472_v15  ;;  %6027 = vmatprep.mubr.msk.f32.mxu0 %vm96_vm0, %v53_v20  ;;  %s8040_s30 = smov 72   ;;  %s8038_s16 = smov 104  }
  0x10   :  { %6477 = vmatprep.subr.bf16.mxu0 %v6476_v19  ;;  %6493 = vmatprep.subr.bf16.mxu1 %v6492_v46  ;;  %s8036_s19 = smov 40   ;;  %s8046_s17 = smov 40  }
  0x11   :  { %6495 = vmatpush3.bf16.msra.mxu1 %v6492_v46 }
  0x12   :  { %6028 = vmatmul.mubr.msk.f32.gmra.mrb[2].mxu0 %vm96_vm0, %v54_v21 }
  0x13   :  { %6479 = vmatpush3.bf16.msra.mxu0 %v6476_v19  ;;  %6040 = vmatprep.mubr.msk.f32.mxu0 %vm96_vm0, %v70_v22 }
  0x14   :  { %6038 = vmatprep.subr.msk.mxu0 %vm105_vm1, %v89_v23 }
  0x17   :  { %6039 = vmatpush3.msk.msra.mxu0 %vm105_vm1, %v89_v23 }
  0x18   :  { %6481 = vmatprep.subr.bf16.mxu0 %v6480_v30  ;;  %6041 = vmatmul.mubr.msk.f32.vlgmr.msra.gmra.mrb[0].mxu0 %vm96_vm0, %v65_v31 }
  0x19   :  { %6483 = vmatpush3.bf16.msra.mxu0 %v6480_v30  ;;  %6043 = vmatprep.mubr.msk.f32.mxu0 %vm96_vm0, %v71_v35 }
  0x1a   :  { %6485 = vmatprep.subr.bf16.mxu0 %v6484_v34 }
  0x1c   :  { %6044 = vmatmul.mubr.msk.f32.gmra.mrb[2].mxu0 %vm96_vm0, %v67_v36 }
  0x1d   :  { %6487 = vmatpush3.bf16.msra.mxu0 %v6484_v34  ;;  %6056 = vmatprep.mubr.msk.f32.mxu0 %vm96_vm0, %v75_v37 }
  0x1e   :  { %6054 = vmatprep.subr.msk.mxu0 %vm105_vm1, %v5554_v38 }
  0x21   :  { %6055 = vmatpush3.msk.msra.mxu0 %vm105_vm1, %v5554_v38 }
  0x22   :  { %6057 = vmatmul.mubr.msk.f32.vlgmr.msra.gmra.mrb[0].mxu0 %vm96_vm0, %v83_v41 }
  0x23   :  { %6059 = vmatprep.mubr.msk.f32.mxu0 %vm96_vm0, %v78_v42 }
  0x26   :  { %6060 = vmatmul.mubr.msk.f32.gmra.mrb[2].mxu0 %vm96_vm0, %v84_v43 }
  0xf5   :  { %v6058_v48 = vpop.f32.mrb[0].mxu0 }
  0xf6   :  { %v377_v50 = vpop.f32.mrb[1].mxu0  ;;  %v7312_v52 = vadd.f32 %v6058_v48, %v401_v49 }
  0xf7   :  { %v7310_v51 = vadd.f32 %v400_v47, %v377_v50 }
  0xf9   :  { %v6061_v53 = vpop.f32.mrb[2].mxu0  ;;  %6070 = vmatprep.mubr.msk.f32.mxu1 %vm410_vm4, %v7310_v51 }
  0xfa   :  { %v387_v54 = vpop.f32.mrb[3].mxu0  ;;  %6071 = vmatmul.mubr.msk.f32.vlgmr.msra.gmra.mrb[0].mxu1 %vm410_vm4, %v7312_v52  ;;  %v7320_v56 = vadd.f32 %v6061_v53, %v401_v49 }
  0xfb   :  { %v7318_v55 = vadd.f32 %v400_v47, %v387_v54 }
  0xfd   :  { %6073 = vmatprep.mubr.msk.f32.mxu1 %vm410_vm4, %v7318_v55 }
  0xfe   :  { %6074 = vmatmul.mubr.msk.f32.gmra.mrb[2].mxu1 %vm410_vm4, %v7320_v56 }
 0x1cd   :  { %v7326_v57 = vpop.f32.mrb[0].mxu1 }
 0x1ce   :  { %v7328_v58 = vpop.f32.mrb[1].mxu1 }
 0x1cf   :  { %6080 = vmatprep.mubr.msk.f32.mxu1 %vm518_vm5, %v7328_v58  ;;  %v7334_v59 = vpack.i.bf16 %v7326_v57, %v7328_v58 }
 0x1d1   :  { %6767 = vrot.lane.b32.xlu0 %v7334_v59, %s7110_s1  ;;  %v7338_v60 = vpop.f32.mrb[2].mxu1 }
 0x1d2   :  { %v7340_v61 = vpop.f32.mrb[3].mxu1 }
 0x1d3   :  { %v7344_v62 = vpack.i.bf16 %v7338_v60, %v7340_v61 }
 0x1d5   :  { %6772 = vrot.lane.b32.xlu0 %v7344_v62, %s7110_s1 }
 0x243   :  { %v6768_v63 = vpop.permute.xlu0 %6767 }
 0x244   :  { %v6770_v0 = vunpack.i.h.bf16 %v6768_v63  ;;  %v6769_v1 = vunpack.i.l.bf16 %v6768_v63 }
 0x246   :  { %v6496_v3 = vpack.c.bf16 %v6770_v0, %v6769_v1 }
 0x247   :  { %v6773_v4 = vpop.permute.xlu0 %6772 }
 0x248   :  { %v6775_v5 = vunpack.i.h.bf16 %v6773_v4  ;;  %v6774_v6 = vunpack.i.l.bf16 %v6773_v4  ;;  %6498 = vmatprep.subr.msk.bf16.mxu1 %vm7350_vm6, %v6496_v3 }
 0x249   :  { %6501 = vmatpush3.bf16.xpose.msk.msra.mxu1 %vm7350_vm6, %v6496_v3 }
 0x24a   :  { %v6502_v7 = vpack.c.bf16 %v6775_v5, %v6774_v6 }
 0x24c   :  { %6504 = vmatprep.subr.msk.bf16.mxu1 %vm7350_vm6, %v6502_v7 }
 0x250   :  { %6081 = vmatmul.mubr.msk.f32.vlgmr.msra.gmra.mrb[4].mxu1 %vm518_vm5, %v7326_v57 }
 0x251   :  { %6507 = vmatpush3.bf16.xpose.msk.msra.mxu1 %vm7350_vm6, %v6502_v7  ;;  %6087 = vmatprep.mubr.msk.f32.mxu1 %vm518_vm5, %v7340_v61 }
 0x258   :  { %6088 = vmatmul.mubr.msk.f32.vlgmr.msra.gmra.mrb[6].mxu1 %vm518_vm5, %v7338_v60 }
 0x323   :  { %v6082_v8 = vpop.f32.mrb[4].mxu1 }
 0x324   :  { %v593_v9 = vpop.f32.mrb[5].mxu1  ;;  %v692_v11 = vmul.f32 0.35355338, %v6082_v8 }
 0x325   :  { %v691_v10 = vmul.f32 0.35355338, %v593_v9 }
 0x326   :  { %v699_v14 = vsel %vm695_vm7, %v692_v11, -inf }
 0x327   :  { %v696_v12 = vsel %vm695_vm7, %v691_v10, -inf }
 0x328   :  { %697 = vmax.xlane.f32.xlu1 %v696_v12 }
 0x32b   :  { %v6089_v13 = vpop.f32.mrb[6].mxu1 }
 0x32c   :  { %v694_v15 = vmul.f32 0.35355338, %v6089_v13  ;;  %700 = vmax.xlane.f32.xlu1 %v699_v14  ;;  %v682_v16 = vpop.f32.mrb[7].mxu1 }
 0x32d   :  { %v693_v17 = vmul.f32 0.35355338, %v682_v16 }
 0x32e   :  { %v705_v18 = vsel %vm695_vm7, %v694_v15, -inf }
 0x32f   :  { %v702_v19 = vsel %vm695_vm7, %v693_v17, -inf }
 0x330   :  { %706 = vmax.xlane.f32.xlu1 %v705_v18  ;;  %703 = vmax.xlane.f32.xlu0 %v702_v19 }
 0x341   :  { %6777 = vrot.lane.b32.xlu1 %v7334_v59, %s7111_s21 }
 0x345   :  { %6787 = vrot.lane.b32.xlu1 %v7334_v59, %s7112_s22 }
 0x346   :  { %6782 = vrot.lane.b32.xlu0 %v7344_v62, %s7111_s21 }
 0x349   :  { %914 = vrot.lane.b32.xlu1 %v7328_v58, %s7113_s23 }
 0x34a   :  { %1005 = vrot.lane.b32.xlu0 %v7340_v61, %s7113_s23 }
 0x34d   :  { %6792 = vrot.lane.b32.xlu1 %v7344_v62, %s7112_s22 }
 0x351   :  { %916 = vrot.lane.b32.xlu1 %v7326_v57, %s7113_s23 }
 0x3b5   :  { %v698_v20 = vpop.xlane.xlu1 %697 }
 0x3b6   :  { %v708_v21 = vsub.f32 %v691_v10, %v698_v20 }
 0x3b8   :  { %v712_v24 = vmul.f32 1.442695, %v708_v21 }
 0x3b9   :  { %v701_v22 = vpop.xlane.xlu1 %700 }
 0x3ba   :  { %v709_v23 = vsub.f32 %v692_v11, %v701_v22 }
 0x3bc   :  { %v714_v25 = vmul.f32 1.442695, %v709_v23 }
 0x3bd   :  { %v707_v26 = vpop.xlane.xlu1 %706  ;;  %v704_v27 = vpop.xlane.xlu0 %703 }
 0x3be   :  { %6926 = vpow2.f32 %v714_v25  ;;  %v711_v28 = vsub.f32 %v694_v15, %v707_v26  ;;  %v710_v30 = vsub.f32 %v693_v17, %v704_v27 }
 0x3bf   :  { %6928 = vpow2.f32 %v712_v24 }
 0x3c0   :  { %v718_v29 = vmul.f32 1.442695, %v711_v28  ;;  %v716_v37 = vmul.f32 1.442695, %v710_v30 }
 0x3c1   :  { %v6778_v31 = vpop.permute.xlu1 %6777  ;;  %v6783_v32 = vpop.permute.xlu0 %6782 }
 0x3c2   :  { %v6780_v33 = vunpack.i.h.bf16 %v6778_v31  ;;  %v6779_v34 = vunpack.i.l.bf16 %v6778_v31  ;;  %v6785_v35 = vunpack.i.h.bf16 %v6783_v32  ;;  %v6784_v36 = vunpack.i.l.bf16 %v6783_v32 }
 0x3c3   :  { %6930 = vpow2.f32 %v718_v29 }
 0x3c4   :  { %v6508_v38 = vpack.c.bf16 %v6780_v33, %v6779_v34  ;;  %v6512_v42 = vpack.c.bf16 %v6785_v35, %v6784_v36  ;;  %6932 = vpow2.f32 %v716_v37 }
 0x3c5   :  { %v6788_v39 = vpop.permute.xlu1 %6787  ;;  %v1006_v17 = vpop.permute.xlu0 %1005 }
 0x3c6   :  { %v6790_v40 = vunpack.i.h.bf16 %v6788_v39  ;;  %v6789_v41 = vunpack.i.l.bf16 %v6788_v39  ;;  %6509 = vmatprep.subr.bf16.mxu1 %v6508_v38 }
 0x3c7   :  { %6511 = vmatpush3.bf16.msra.mxu1 %v6508_v38 }
 0x3c8   :  { %v6927_v43 = vpop.eup %6926  ;;  %v6516_v44 = vpack.c.bf16 %v6790_v40, %v6789_v41  ;;  %6513 = vmatprep.subr.bf16.mxu1 %v6512_v42 }
 0x3c9   :  { %v915_v45 = vpop.permute.xlu1 %914  ;;  %v723_v46 = vsel %vm695_vm7, %v6927_v43, 0.0  ;;  %v6929_v47 = vpop.eup %6928 }
 0x3ca   :  { %724 = vadd.xlane.f32.xlu1 %v723_v46  ;;  %6518 = vmatprep.subr.msk.bf16.mxu0 %vm7350_vm6, %v6516_v44  ;;  %v720_v49 = vsel %vm695_vm7, %v6929_v47, 0.0 }
 0x3cb   :  { %6108 = vmatprep.mubr.msk.f32.mxu0 %vm518_vm5, %v915_v45  ;;  %6521 = vmatpush3.bf16.xpose.msk.msra.mxu0 %vm7350_vm6, %v6516_v44 }
 0x3cd   :  { %v6793_v48 = vpop.permute.xlu1 %6792  ;;  %v6931_v50 = vpop.eup %6930 }
 0x3ce   :  { %721 = vadd.xlane.f32.xlu1 %v720_v49  ;;  %v729_v54 = vsel %vm695_vm7, %v6931_v50, 0.0  ;;  %v6933_v63 = vpop.eup %6932  ;;  %v6795_v8 = vunpack.i.h.bf16 %v6793_v48  ;;  %v6794_v9 = vunpack.i.l.bf16 %v6793_v48 }
 0x3cf   :  { %v726_v0 = vsel %vm695_vm7, %v6933_v63, 0.0 }
 0x3d0   :  { %v6522_v12 = vpack.c.bf16 %v6795_v8, %v6794_v9 }
 0x3d1   :  { %v917_v53 = vpop.permute.xlu1 %916 }
 0x3d2   :  { %730 = vadd.xlane.f32.xlu1 %v729_v54  ;;  %6109 = vmatmul.mubr.msk.f32.vlgmr.msra.gmra.mrb[4].mxu0 %vm518_vm5, %v917_v53 }
 0x3d6   :  { %727 = vadd.xlane.f32.xlu1 %v726_v0 }
 0x3e7   :  { %1007 = vrot.lane.b32.xlu1 %v7338_v60, %s7113_s23 }
 0x457   :  { %v725_v1 = vpop.xlane.xlu1 %724 }
 0x458   :  { %6934 = vrcp.f32 %v725_v1 }
 0x45b   :  { %v722_v3 = vpop.xlane.xlu1 %721 }
 0x45c   :  { %6936 = vrcp.f32 %v722_v3 }
 0x45f   :  { %v731_v4 = vpop.xlane.xlu1 %730 }
 0x460   :  { %6938 = vrcp.f32 %v731_v4 }
 0x462   :  { %v6935_v6 = vpop.eup %6934 }
 0x463   :  { %v728_v5 = vpop.xlane.xlu1 %727  ;;  %v737_v11 = vmul.f32 %v6935_v6, %v6927_v43 }
 0x464   :  { %6940 = vrcp.f32 %v728_v5 }
 0x466   :  { %v6937_v7 = vpop.eup %6936 }
 0x467   :  { %v736_v10 = vmul.f32 %v6937_v7, %v6929_v47  ;;  %v1008_v18 = vpop.permute.xlu1 %1007 }
 0x469   :  { %6094 = vmatprep.mubr.msk.f32.mxu1 %vm695_vm7, %v736_v10 }
 0x46a   :  { %6095 = vmatmul.mubr.msk.f32.vlgmr.msra.gmra.mrb[8].mxu1 %vm695_vm7, %v737_v11  ;;  %v6939_v13 = vpop.eup %6938 }
 0x46b   :  { %6515 = vmatpush3.bf16.msra.mxu1 %v6512_v42  ;;  %v739_v16 = vmul.f32 %v6939_v13, %v6931_v50 }
 0x46c   :  { %6524 = vmatprep.subr.msk.bf16.mxu1 %vm7350_vm6, %v6522_v12 }
 0x46e   :  { %v6941_v14 = vpop.eup %6940 }
 0x46f   :  { %v738_v15 = vmul.f32 %v6941_v14, %v6933_v63 }
 0x471   :  { %6101 = vmatprep.mubr.msk.f32.mxu1 %vm695_vm7, %v738_v15 }
 0x472   :  { %6102 = vmatmul.mubr.msk.f32.vlgmr.msra.gmra.mrb[10].mxu1 %vm695_vm7, %v739_v16 }
 0x473   :  { %6115 = vmatprep.mubr.msk.f32.mxu1 %vm518_vm5, %v1006_v17 }
 0x474   :  { %6527 = vmatpush3.bf16.xpose.msk.msra.mxu1 %vm7350_vm6, %v6522_v12  ;;  %v509_v12 = vld [vmem:[%s8024_s4 + $0x8] sm:$0xff] }
 0x475   :  { %6132 = vmatprep.subr.mxu0 %v509_v12 }
 0x476   :  { %6133 = vmatpush3.msra.mxu0 %v509_v12 }
 0x47b   :  { %6116 = vmatmul.mubr.msk.f32.vlgmr.msra.gmra.mrb[12].mxu1 %vm518_vm5, %v1008_v18 }
 0x4a5   :  { %v6110_v19 = vpop.f32.mrb[4].mxu0 }
 0x4a6   :  { %v1097_v20 = vmul.f32 0.35355338, %v6110_v19  ;;  %v996_v21 = vpop.f32.mrb[5].mxu0 }
 0x4a7   :  { %v1096_v22 = vmul.f32 0.35355338, %v996_v21 }
 0x4a8   :  { %v1103_v23 = vsel %vm695_vm7, %v1097_v20, -inf }
 0x4a9   :  { %1104 = vmax.xlane.f32.xlu1 %v1103_v23  ;;  %v1100_v24 = vsel %vm695_vm7, %v1096_v22, -inf }
 0x4aa   :  { %1101 = vmax.xlane.f32.xlu0 %v1100_v24 }
 0x536   :  { %v1105_v30 = vpop.xlane.xlu1 %1104 }
 0x537   :  { %v1102_v25 = vpop.xlane.xlu0 %1101  ;;  %v1113_v31 = vsub.f32 %v1097_v20, %v1105_v30 }
 0x538   :  { %v1112_v26 = vsub.f32 %v1096_v22, %v1102_v25 }
 0x539   :  { %v1118_v36 = vmul.f32 1.442695, %v1113_v31 }
 0x53a   :  { %v1116_v27 = vmul.f32 1.442695, %v1112_v26 }
 0x53c   :  { %6942 = vpow2.f32 %v1116_v27 }
 0x53d   :  { %v7410_v28 = vpop.f32.mrb[8].mxu1  ;;  %6944 = vpow2.f32 %v1118_v36 }
 0x53e   :  { %v7412_v29 = vpop.f32.mrb[9].mxu1 }
 0x545   :  { %v7414_v32 = vpop.f32.mrb[10].mxu1 }
 0x546   :  { %v6943_v33 = vpop.eup %6942  ;;  %v7416_v34 = vpop.f32.mrb[11].mxu1 }
 0x547   :  { %v1124_v35 = vsel %vm695_vm7, %v6943_v33, 0.0  ;;  %v6945_v43 = vpop.eup %6944 }
 0x548   :  { %1125 = vadd.xlane.f32.xlu1 %v1124_v35  ;;  %v1127_v44 = vsel %vm695_vm7, %v6945_v43, 0.0 }
 0x54e   :  { %v6117_v37 = vpop.f32.mrb[12].mxu1 }
 0x54f   :  { %v1087_v38 = vpop.f32.mrb[13].mxu1  ;;  %v1099_v40 = vmul.f32 0.35355338, %v6117_v37 }
 0x550   :  { %v1098_v39 = vmul.f32 0.35355338, %v1087_v38 }
 0x551   :  { %v1109_v42 = vsel %vm695_vm7, %v1099_v40, -inf }
 0x552   :  { %v1106_v41 = vsel %vm695_vm7, %v1098_v39, -inf }
 0x553   :  { %1107 = vmax.xlane.f32.xlu0 %v1106_v41  ;;  %v508_v41 = vld [vmem:[%s8024_s4] sm:$0xff] }
 0x554   :  { %6140 = vmatprep.subr.mxu0 %v508_v41 }
 0x557   :  { %1110 = vmax.xlane.f32.xlu0 %v1109_v42 }
 0x559   :  { %6797 = vrot.lane.b32.xlu1 %v7334_v59, %s7114_s0 }
 0x55b   :  { %1128 = vadd.xlane.f32.xlu0 %v1127_v44 }
 0x55d   :  { %6807 = vrot.lane.b32.xlu1 %v7334_v59, %s7115_s24 }
 0x561   :  { %6812 = vrot.lane.b32.xlu1 %v7344_v62, %s7115_s24 }
 0x5d5   :  { %v1126_v45 = vpop.xlane.xlu1 %1125 }
 0x5d6   :  { %6946 = vrcp.f32 %v1126_v45 }
 0x5d9   :  { %v6798_v46 = vpop.permute.xlu1 %6797 }
 0x5da   :  { %v6800_v47 = vunpack.i.h.bf16 %v6798_v46  ;;  %v6799_v48 = vunpack.i.l.bf16 %v6798_v46 }
 0x5dc   :  { %v6528_v49 = vpack.c.bf16 %v6800_v47, %v6799_v48 }
 0x5dd   :  { %v6808_v13 = vpop.permute.xlu1 %6807 }
 0x5de   :  { %6529 = vmatprep.subr.bf16.mxu1 %v6528_v49  ;;  %v6810_v18 = vunpack.i.h.bf16 %v6808_v13  ;;  %v6809_v19 = vunpack.i.l.bf16 %v6808_v13 }
 0x5df   :  { %6531 = vmatpush3.bf16.msra.mxu1 %v6528_v49 }
 0x5e0   :  { %v6947_v50 = vpop.eup %6946  ;;  %v1108_v53 = vpop.xlane.xlu0 %1107  ;;  %v6536_v25 = vpack.c.bf16 %v6810_v18, %v6809_v19 }
 0x5e1   :  { %v1114_v54 = vsub.f32 %v1098_v39, %v1108_v53  ;;  %v1140_v63 = vmul.f32 %v6947_v50, %v6943_v33  ;;  %v6813_v14 = vpop.permute.xlu1 %6812 }
 0x5e2   :  { %v6815_v30 = vunpack.i.h.bf16 %v6813_v14  ;;  %v6814_v31 = vunpack.i.l.bf16 %v6813_v14 }
 0x5e3   :  { %v1120_v0 = vmul.f32 1.442695, %v1114_v54  ;;  %6122 = vmatprep.mubr.msk.f32.mxu1 %vm695_vm7, %v1140_v63 }
 0x5e4   :  { %v1111_v1 = vpop.xlane.xlu0 %1110  ;;  %v6542_v35 = vpack.c.bf16 %v6815_v30, %v6814_v31 }
 0x5e5   :  { %6948 = vpow2.f32 %v1120_v0  ;;  %v1115_v3 = vsub.f32 %v1099_v40, %v1111_v1 }
 0x5e7   :  { %v1122_v4 = vmul.f32 1.442695, %v1115_v3 }
 0x5e8   :  { %v1129_v5 = vpop.xlane.xlu0 %1128 }
 0x5e9   :  { %6950 = vpow2.f32 %v1122_v4 }
 0x5ea   :  { %6952 = vrcp.f32 %v1129_v5 }
 0x5ef   :  { %v6949_v6 = vpop.eup %6948 }
 0x5f0   :  { %v1130_v7 = vsel %vm695_vm7, %v6949_v6, 0.0 }
 0x5f1   :  { %1131 = vadd.xlane.f32.xlu1 %v1130_v7 }
 0x5f3   :  { %v6951_v8 = vpop.eup %6950 }
 0x5f4   :  { %v6953_v9 = vpop.eup %6952  ;;  %v1133_v10 = vsel %vm695_vm7, %v6951_v8, 0.0 }
 0x5f5   :  { %1134 = vadd.xlane.f32.xlu0 %v1133_v10  ;;  %v1141_v11 = vmul.f32 %v6953_v9, %v6945_v43 }
 0x5f7   :  { %6123 = vmatmul.mubr.msk.f32.vlgmr.msra.gmra.mrb[14].mxu1 %vm695_vm7, %v1141_v11 }
 0x602   :  { %1514 = vrot.lane.b32.xlu1 %v7326_v57, %s7116_s25 }
 0x606   :  { %1605 = vrot.lane.b32.xlu1 %v7338_v60, %s7116_s25 }
 0x60b   :  { %6802 = vrot.lane.b32.xlu0 %v7344_v62, %s7114_s0 }
 0x60f   :  { %1512 = vrot.lane.b32.xlu0 %v7328_v58, %s7116_s25 }
 0x613   :  { %1603 = vrot.lane.b32.xlu0 %v7340_v61, %s7116_s25 }
 0x67e   :  { %v1132_v15 = vpop.xlane.xlu1 %1131 }
 0x67f   :  { %6954 = vrcp.f32 %v1132_v15 }
 0x682   :  { %v1135_v16 = vpop.xlane.xlu0 %1134  ;;  %v1515_v36 = vpop.permute.xlu1 %1514 }
 0x683   :  { %6956 = vrcp.f32 %v1135_v16 }
 0x686   :  { %v6803_v17 = vpop.permute.xlu0 %6802  ;;  %v1606_v38 = vpop.permute.xlu1 %1605 }
 0x687   :  { %v6805_v20 = vunpack.i.h.bf16 %v6803_v17  ;;  %v6804_v21 = vunpack.i.l.bf16 %v6803_v17 }
 0x689   :  { %v6955_v22 = vpop.eup %6954  ;;  %v6532_v23 = vpack.c.bf16 %v6805_v20, %v6804_v21 }
 0x68a   :  { %v1142_v24 = vmul.f32 %v6955_v22, %v6949_v6  ;;  %v1513_v33 = vpop.permute.xlu0 %1512 }
 0x68b   :  { %6533 = vmatprep.subr.bf16.mxu1 %v6532_v23 }
 0x68c   :  { %6535 = vmatpush3.bf16.msra.mxu1 %v6532_v23  ;;  %6129 = vmatprep.mubr.msk.f32.mxu1 %vm695_vm7, %v1142_v24 }
 0x68d   :  { %v6957_v26 = vpop.eup %6956  ;;  %6538 = vmatprep.subr.msk.bf16.mxu1 %vm7350_vm6, %v6536_v25 }
 0x68e   :  { %v1143_v27 = vmul.f32 %v6957_v26, %v6951_v8  ;;  %v1604_v37 = vpop.permute.xlu0 %1603 }
 0x690   :  { %6130 = vmatmul.mubr.msk.f32.vlgmr.msra.gmra.mrb[16].mxu1 %vm695_vm7, %v1143_v27 }
 0x691   :  { %6152 = vmatprep.mubr.msk.f32.mxu1 %vm518_vm5, %v1513_v33 }
 0x695   :  { %6541 = vmatpush3.bf16.xpose.msk.msra.mxu1 %vm7350_vm6, %v6536_v25 }
 0x696   :  { %6544 = vmatprep.subr.msk.bf16.mxu1 %vm7350_vm6, %v6542_v35 }
 0x69c   :  { %6153 = vmatmul.mubr.msk.f32.vlgmr.msra.gmra.mrb[18].mxu1 %vm518_vm5, %v1515_v36 }
 0x69d   :  { %6547 = vmatpush3.bf16.xpose.msk.msra.mxu1 %vm7350_vm6, %v6542_v35  ;;  %6159 = vmatprep.mubr.msk.f32.mxu1 %vm518_vm5, %v1604_v37 }
 0x6a4   :  { %6160 = vmatmul.mubr.msk.f32.vlgmr.msra.gmra.mrb[20].mxu1 %vm518_vm5, %v1606_v38 }
 0x6ca   :  { %v6124_v39 = vpop.f32.mrb[14].mxu1 }
 0x6cb   :  { %v1222_v40 = vpop.f32.mrb[15].mxu1 }
 0x6cc   :  { %6134 = vmatprep.mubr.msk.f32.mxu0 %vm518_vm5, %v1222_v40 }
 0x6cd   :  { %6135 = vmatmul.mubr.msk.f32.vlgmr.msra.gmra.mrb[6].mxu0 %vm518_vm5, %v6124_v39 }
 0x6ce   :  { %6141 = vmatpush3.msra.mxu0 %v508_v41 }
 0x763   :  { %v6131_v42 = vpop.f32.mrb[16].mxu1 }
 0x764   :  { %v1309_v43 = vpop.f32.mrb[17].mxu1 }
 0x765   :  { %6137 = vmatprep.mubr.msk.f32.mxu0 %vm518_vm5, %v1309_v43 }
 0x766   :  { %6138 = vmatmul.mubr.msk.f32.gmra.mrb[8].mxu0 %vm518_vm5, %v6131_v42 }
 0x767   :  { %6142 = vmatprep.mubr.msk.f32.mxu0 %vm518_vm5, %v7412_v29 }
 0x76a   :  { %6143 = vmatmul.mubr.msk.f32.vlgmr.msra.gmra.mrb[6].mxu0 %vm518_vm5, %v7410_v28 }
 0x76b   :  { %6145 = vmatprep.mubr.msk.f32.mxu0 %vm518_vm5, %v7416_v34 }
 0x76e   :  { %6146 = vmatmul.mubr.msk.f32.gmra.mrb[8].mxu0 %vm518_vm5, %v7414_v32 }
 0x76f   :  { %v6154_v44 = vpop.f32.mrb[18].mxu1 }
 0x770   :  { %v1695_v45 = vmul.f32 0.35355338, %v6154_v44  ;;  %v1594_v46 = vpop.f32.mrb[19].mxu1 }
 0x771   :  { %v1694_v47 = vmul.f32 0.35355338, %v1594_v46 }
 0x772   :  { %v1701_v48 = vsel %vm695_vm7, %v1695_v45, -inf }
 0x773   :  { %1702 = vmax.xlane.f32.xlu1 %v1701_v48  ;;  %v1698_v49 = vsel %vm695_vm7, %v1694_v47, -inf }
 0x774   :  { %1699 = vmax.xlane.f32.xlu0 %v1698_v49 }
 0x777   :  { %v6161_v29 = vpop.f32.mrb[20].mxu1 }
 0x778   :  { %v1685_v50 = vpop.f32.mrb[21].mxu1  ;;  %v1697_v28 = vmul.f32 0.35355338, %v6161_v29 }
 0x779   :  { %v1696_v53 = vmul.f32 0.35355338, %v1685_v50 }
 0x77a   :  { %v1707_v34 = vsel %vm695_vm7, %v1697_v28, -inf }
 0x77b   :  { %v1704_v54 = vsel %vm695_vm7, %v1696_v53, -inf }
 0x77c   :  { %1705 = vmax.xlane.f32.xlu0 %v1704_v54 }
 0x780   :  { %1708 = vmax.xlane.f32.xlu0 %v1707_v34 }
 0x800   :  { %v1703_v32 = vpop.xlane.xlu1 %1702 }
 0x801   :  { %v1711_v63 = vsub.f32 %v1695_v45, %v1703_v32  ;;  %v1700_v0 = vpop.xlane.xlu0 %1699 }
 0x802   :  { %v1710_v1 = vsub.f32 %v1694_v47, %v1700_v0 }
 0x803   :  { %v1716_v3 = vmul.f32 1.442695, %v1711_v63 }
 0x804   :  { %v1714_v4 = vmul.f32 1.442695, %v1710_v1 }
 0x805   :  { %6958 = vpow2.f32 %v1716_v3 }
 0x806   :  { %6960 = vpow2.f32 %v1714_v4 }
 0x809   :  { %v1706_v5 = vpop.xlane.xlu0 %1705 }
 0x80a   :  { %v1712_v6 = vsub.f32 %v1696_v53, %v1706_v5 }
 0x80c   :  { %v1718_v7 = vmul.f32 1.442695, %v1712_v6 }
 0x80d   :  { %v1709_v8 = vpop.xlane.xlu0 %1708 }
 0x80e   :  { %6962 = vpow2.f32 %v1718_v7  ;;  %v1713_v9 = vsub.f32 %v1697_v28, %v1709_v8 }
 0x80f   :  { %v6959_v10 = vpop.eup %6958 }
 0x810   :  { %v6961_v11 = vpop.eup %6960  ;;  %v1720_v12 = vmul.f32 1.442695, %v1713_v9  ;;  %v1725_v13 = vsel %vm695_vm7, %v6959_v10, 0.0 }
 0x811   :  { %1726 = vadd.xlane.f32.xlu0 %v1725_v13  ;;  %v1722_v14 = vsel %vm695_vm7, %v6961_v11, 0.0 }
 0x812   :  { %6964 = vpow2.f32 %v1720_v12  ;;  %1723 = vadd.xlane.f32.xlu1 %v1722_v14 }
 0x818   :  { %v6963_v15 = vpop.eup %6962 }
 0x819   :  { %v1728_v16 = vsel %vm695_vm7, %v6963_v15, 0.0 }
 0x81a   :  { %1729 = vadd.xlane.f32.xlu1 %v1728_v16 }
 0x81c   :  { %v6965_v17 = vpop.eup %6964 }
 0x81d   :  { %v1731_v18 = vsel %vm695_vm7, %v6965_v17, 0.0 }
 0x81e   :  { %1732 = vadd.xlane.f32.xlu0 %v1731_v18 }
 0x82b   :  { %6817 = vrot.lane.b32.xlu1 %v7334_v59, %s7117_s29 }
 0x82f   :  { %6827 = vrot.lane.b32.xlu1 %v7334_v59, %s8040_s30 }
 0x833   :  { %2017 = vrot.lane.b32.xlu1 %v7328_v58, %s8038_s16 }
 0x834   :  { %6822 = vrot.lane.b32.xlu0 %v7344_v62, %s7117_s29 }
 0x837   :  { %2019 = vrot.lane.b32.xlu1 %v7326_v57, %s8038_s16 }
 0x838   :  { %6832 = vrot.lane.b32.xlu0 %v7344_v62, %s8040_s30 }
 0x83b   :  { %2110 = vrot.lane.b32.xlu1 %v7338_v60, %s8038_s16 }
 0x83c   :  { %2108 = vrot.lane.b32.xlu0 %v7340_v61, %s8038_s16  ;;  %v510_v61 = vld [vmem:[%s8024_s4 + $0x10] sm:$0xff] }
 0x89e   :  { %v1727_v20 = vpop.xlane.xlu0 %1726 }
 0x89f   :  { %v1724_v19 = vpop.xlane.xlu1 %1723 }
 0x8a0   :  { %6966 = vrcp.f32 %v1724_v19 }
 0x8a1   :  { %6968 = vrcp.f32 %v1727_v20 }
 0x8a7   :  { %v1730_v58 = vpop.xlane.xlu1 %1729 }
 0x8a8   :  { %6970 = vrcp.f32 %v1730_v58 }
 0x8aa   :  { %v6967_v21 = vpop.eup %6966 }
 0x8ab   :  { %v6818_v22 = vpop.permute.xlu1 %6817  ;;  %v1733_v23 = vpop.xlane.xlu0 %1732  ;;  %v1738_v24 = vmul.f32 %v6967_v21, %v6961_v11 }
 0x8ac   :  { %v6820_v57 = vunpack.i.h.bf16 %v6818_v22  ;;  %v6819_v25 = vunpack.i.l.bf16 %v6818_v22  ;;  %6972 = vrcp.f32 %v1733_v23  ;;  %v6969_v60 = vpop.eup %6968 }
 0x8ad   :  { %6166 = vmatprep.mubr.msk.f32.mxu0 %vm695_vm7, %v1738_v24  ;;  %v1739_v38 = vmul.f32 %v6969_v60, %v6959_v10 }
 0x8ae   :  { %v6548_v26 = vpack.c.bf16 %v6820_v57, %v6819_v25 }
 0x8af   :  { %v6828_v27 = vpop.permute.xlu1 %6827  ;;  %v6823_v30 = vpop.permute.xlu0 %6822 }
 0x8b0   :  { %v6830_v31 = vunpack.i.h.bf16 %v6828_v27  ;;  %v6829_v33 = vunpack.i.l.bf16 %v6828_v27  ;;  %v6825_v35 = vunpack.i.h.bf16 %v6823_v30  ;;  %v6824_v36 = vunpack.i.l.bf16 %v6823_v30  ;;  %6549 = vmatprep.subr.bf16.mxu0 %v6548_v26 }
 0x8b1   :  { %6551 = vmatpush3.bf16.msra.mxu0 %v6548_v26 }
 0x8b2   :  { %v6971_v37 = vpop.eup %6970  ;;  %v6552_v39 = vpack.c.bf16 %v6825_v35, %v6824_v36  ;;  %6176 = vmatprep.subr.mxu0 %v510_v61  ;;  %v6556_v42 = vpack.c.bf16 %v6830_v31, %v6829_v33 }
 0x8b3   :  { %v6833_v40 = vpop.permute.xlu0 %6832  ;;  %v1740_v41 = vmul.f32 %v6971_v37, %v6963_v15  ;;  %v2018_v48 = vpop.permute.xlu1 %2017 }
 0x8b4   :  { %v6835_v43 = vunpack.i.h.bf16 %v6833_v40  ;;  %v6834_v44 = vunpack.i.l.bf16 %v6833_v40  ;;  %6167 = vmatmul.mubr.msk.f32.vlgmr.msra.gmra.mrb[10].mxu0 %vm695_vm7, %v1739_v38  ;;  %6553 = vmatprep.subr.bf16.mxu1 %v6552_v39 }
 0x8b5   :  { %6555 = vmatpush3.bf16.msra.mxu1 %v6552_v39  ;;  %6173 = vmatprep.mubr.msk.f32.mxu1 %vm695_vm7, %v1740_v41 }
 0x8b6   :  { %v6973_v45 = vpop.eup %6972  ;;  %v6562_v46 = vpack.c.bf16 %v6835_v43, %v6834_v44  ;;  %6558 = vmatprep.subr.msk.bf16.mxu1 %vm7350_vm6, %v6556_v42  ;;  %6177 = vmatpush3.msra.mxu0 %v510_v61 }
 0x8b7   :  { %v1741_v47 = vmul.f32 %v6973_v45, %v6965_v17  ;;  %v2020_v49 = vpop.permute.xlu1 %2019  ;;  %v2109_v54 = vpop.permute.xlu0 %2108 }
 0x8b8   :  { %6564 = vmatprep.subr.msk.bf16.mxu0 %vm7350_vm6, %v6562_v46 }
 0x8b9   :  { %6174 = vmatmul.mubr.msk.f32.vlgmr.msra.gmra.mrb[22].mxu1 %vm695_vm7, %v1741_v47 }
 0x8ba   :  { %6188 = vmatprep.mubr.msk.f32.mxu1 %vm518_vm5, %v2018_v48 }
 0x8bb   :  { %v2111_v34 = vpop.permute.xlu1 %2110 }
 0x8be   :  { %6561 = vmatpush3.bf16.xpose.msk.msra.mxu1 %vm7350_vm6, %v6556_v42 }
 0x8c5   :  { %6189 = vmatmul.mubr.msk.f32.vlgmr.msra.gmra.mrb[24].mxu1 %vm518_vm5, %v2020_v49  ;;  %v511_v49 = vld [vmem:[%s8024_s4 + $0x18] sm:$0xff] }
 0x987   :  { %v6168_v29 = vpop.f32.mrb[10].mxu0 }
 0x988   :  { %v1820_v50 = vpop.f32.mrb[11].mxu0 }
 0x989   :  { %6178 = vmatprep.mubr.msk.f32.mxu0 %vm518_vm5, %v1820_v50 }
 0x98a   :  { %6179 = vmatmul.mubr.msk.f32.vlgmr.msra.gmra.mrb[6].mxu0 %vm518_vm5, %v6168_v29 }
 0x98b   :  { %6567 = vmatpush3.bf16.xpose.msk.msra.mxu0 %vm7350_vm6, %v6562_v46 }
 0x98c   :  { %v6175_v53 = vpop.f32.mrb[22].mxu1 }
 0x98d   :  { %v1907_v28 = vpop.f32.mrb[23].mxu1 }
 0x98e   :  { %6181 = vmatprep.mubr.msk.f32.mxu0 %vm518_vm5, %v1907_v28 }
 0x98f   :  { %6182 = vmatmul.mubr.msk.f32.gmra.mrb[8].mxu0 %vm518_vm5, %v6175_v53 }
 0x990   :  { %6195 = vmatprep.mubr.msk.f32.mxu0 %vm518_vm5, %v2109_v54 }
 0x993   :  { %6196 = vmatmul.mubr.msk.f32.vlgmr.msra.gmra.mrb[12].mxu0 %vm518_vm5, %v2111_v34 }
 0x998   :  { %v6190_v32 = vpop.f32.mrb[24].mxu1 }
 0x999   :  { %v2200_v63 = vmul.f32 0.35355338, %v6190_v32  ;;  %v2099_v0 = vpop.f32.mrb[25].mxu1 }
 0x99a   :  { %v2199_v1 = vmul.f32 0.35355338, %v2099_v0 }
 0x99b   :  { %v2206_v3 = vsel %vm695_vm7, %v2200_v63, -inf }
 0x99c   :  { %2207 = vmax.xlane.f32.xlu1 %v2206_v3  ;;  %v2203_v4 = vsel %vm695_vm7, %v2199_v1, -inf }
 0x99d   :  { %2204 = vmax.xlane.f32.xlu0 %v2203_v4 }
 0xa29   :  { %v2208_v10 = vpop.xlane.xlu1 %2207 }
 0xa2a   :  { %v2205_v5 = vpop.xlane.xlu0 %2204  ;;  %v2216_v11 = vsub.f32 %v2200_v63, %v2208_v10 }
 0xa2b   :  { %v2215_v6 = vsub.f32 %v2199_v1, %v2205_v5 }
 0xa2c   :  { %v2221_v12 = vmul.f32 1.442695, %v2216_v11 }
 0xa2d   :  { %v2219_v7 = vmul.f32 1.442695, %v2215_v6 }
 0xa2f   :  { %6974 = vpow2.f32 %v2219_v7 }
 0xa30   :  { %6976 = vpow2.f32 %v2221_v12 }
 0xa39   :  { %v6975_v8 = vpop.eup %6974 }
 0xa3a   :  { %v2227_v9 = vsel %vm695_vm7, %v6975_v8, 0.0  ;;  %v6977_v19 = vpop.eup %6976 }
 0xa3b   :  { %2228 = vadd.xlane.f32.xlu1 %v2227_v9  ;;  %v2230_v20 = vsel %vm695_vm7, %v6977_v19, 0.0 }
 0xa66   :  { %v6197_v13 = vpop.f32.mrb[12].mxu0 }
 0xa67   :  { %v2190_v14 = vpop.f32.mrb[13].mxu0  ;;  %v2202_v16 = vmul.f32 0.35355338, %v6197_v13 }
 0xa68   :  { %v2201_v15 = vmul.f32 0.35355338, %v2190_v14 }
 0xa69   :  { %v2212_v18 = vsel %vm695_vm7, %v2202_v16, -inf }
 0xa6a   :  { %v2209_v17 = vsel %vm695_vm7, %v2201_v15, -inf }
 0xa6b   :  { %2210 = vmax.xlane.f32.xlu0 %v2209_v17 }
 0xa6f   :  { %2213 = vmax.xlane.f32.xlu0 %v2212_v18 }
 0xa73   :  { %2231 = vadd.xlane.f32.xlu0 %v2230_v20 }
 0xac8   :  { %v2229_v58 = vpop.xlane.xlu1 %2228 }
 0xac9   :  { %6978 = vrcp.f32 %v2229_v58 }
 0xad3   :  { %v6979_v21 = vpop.eup %6978 }
 0xad4   :  { %v2243_v22 = vmul.f32 %v6979_v21, %v6975_v8 }
 0xad6   :  { %6202 = vmatprep.mubr.msk.f32.mxu1 %vm695_vm7, %v2243_v22 }
 0xaf8   :  { %v2211_v23 = vpop.xlane.xlu0 %2210 }
 0xaf9   :  { %v2217_v24 = vsub.f32 %v2201_v15, %v2211_v23 }
 0xafb   :  { %v2223_v57 = vmul.f32 1.442695, %v2217_v24  ;;  %v2601_v24 = vld [vmem:[%s8027_s7] sm:$0xff] }
 0xafc   :  { %v2214_v25 = vpop.xlane.xlu0 %2213 }
 0xafd   :  { %6980 = vpow2.f32 %v2223_v57  ;;  %v2218_v26 = vsub.f32 %v2202_v16, %v2214_v25  ;;  %v2602_v57 = vld [vmem:[%s8027_s7 + $0x8] sm:$0xff] }
 0xafe   :  { %v6576_v25 = vpack.c.bf16 %v2602_v57, %v2601_v24 }
 0xaff   :  { %v2225_v60 = vmul.f32 1.442695, %v2218_v26  ;;  %v2603_v26 = vld [vmem:[%s8027_s7 + $0x10] sm:$0xff] }
 0xb00   :  { %v2232_v33 = vpop.xlane.xlu0 %2231 }
 0xb01   :  { %6982 = vpow2.f32 %v2225_v60  ;;  %v2604_v60 = vld [vmem:[%s8027_s7 + $0x18] sm:$0xff] }
 0xb02   :  { %6984 = vrcp.f32 %v2232_v33 }
 0xb07   :  { %v6981_v27 = vpop.eup %6980 }
 0xb08   :  { %v2233_v30 = vsel %vm695_vm7, %v6981_v27, 0.0 }
 0xb09   :  { %2234 = vadd.xlane.f32.xlu1 %v2233_v30  ;;  %v2713_v30 = vld [vmem:[%s8029_s9] sm:$0xff] }
 0xb0b   :  { %v6983_v61 = vpop.eup %6982 }
 0xb0c   :  { %v2236_v31 = vsel %vm695_vm7, %v6983_v61, 0.0  ;;  %v6985_v41 = vpop.eup %6984 }
 0xb0d   :  { %2237 = vadd.xlane.f32.xlu0 %v2236_v31  ;;  %v2244_v45 = vmul.f32 %v6985_v41, %v6977_v19  ;;  %v2715_v31 = vld [vmem:[%s8029_s9 + $0x10] sm:$0xff] }
 0xb1a   :  { %6837 = vrot.lane.b32.xlu1 %v7334_v59, %s8036_s19 }
 0xb23   :  { %6842 = vrot.lane.b32.xlu0 %v7344_v62, %s8036_s19 }
 0xb96   :  { %v2235_v35 = vpop.xlane.xlu1 %2234 }
 0xb97   :  { %6986 = vrcp.f32 %v2235_v35  ;;  %v2716_v35 = vld [vmem:[%s8029_s9 + $0x18] sm:$0xff] }
 0xb9a   :  { %v6838_v36 = vpop.permute.xlu1 %6837  ;;  %v2238_v37 = vpop.xlane.xlu0 %2237 }
 0xb9b   :  { %v6840_v38 = vunpack.i.h.bf16 %v6838_v36  ;;  %v6839_v39 = vunpack.i.l.bf16 %v6838_v36  ;;  %6988 = vrcp.f32 %v2238_v37  ;;  %v6588_v36 = vpack.c.bf16 %v2716_v35, %v2715_v31  ;;  %v2717_v37 = vld [vmem:[%s8029_s9 + $0x20] sm:$0xff] }
 0xb9d   :  { %v6568_v40 = vpack.c.bf16 %v6840_v38, %v6839_v39  ;;  %v2718_v38 = vld [vmem:[%s8029_s9 + $0x28] sm:$0xff] }
 0xb9e   :  { %v6843_v42 = vpop.permute.xlu0 %6842  ;;  %v6592_v39 = vpack.c.bf16 %v2718_v38, %v2717_v37 }
 0xb9f   :  { %v6845_v43 = vunpack.i.h.bf16 %v6843_v42  ;;  %v6844_v44 = vunpack.i.l.bf16 %v6843_v42  ;;  %6569 = vmatprep.subr.bf16.mxu1 %v6568_v40 }
 0xba0   :  { %6571 = vmatpush3.bf16.msra.mxu1 %v6568_v40 }
 0xba1   :  { %v6987_v59 = vpop.eup %6986  ;;  %v6572_v46 = vpack.c.bf16 %v6845_v43, %v6844_v44  ;;  %6577 = vmatprep.subr.bf16.mxu1 %v6576_v25 }
 0xba2   :  { %v2245_v62 = vmul.f32 %v6987_v59, %v6981_v27  ;;  %v6580_v27 = vpack.c.bf16 %v2604_v60, %v2603_v26 }
 0xba3   :  { %6203 = vmatmul.mubr.msk.f32.vlgmr.msra.gmra.mrb[26].mxu1 %vm695_vm7, %v2244_v45  ;;  %6573 = vmatprep.subr.bf16.mxu0 %v6572_v46 }
 0xba4   :  { %6575 = vmatpush3.bf16.msra.mxu0 %v6572_v46  ;;  %6209 = vmatprep.mubr.msk.f32.mxu0 %vm695_vm7, %v2245_v62 }
 0xba5   :  { %v6989_v47 = vpop.eup %6988  ;;  %6212 = vmatprep.subr.mxu0 %v511_v49  ;;  %6579 = vmatpush3.bf16.msra.mxu1 %v6576_v25 }
 0xba6   :  { %v2246_v48 = vmul.f32 %v6989_v47, %v6983_v61  ;;  %6581 = vmatprep.subr.bf16.mxu1 %v6580_v27  ;;  %v2714_v61 = vld [vmem:[%s8029_s9 + $0x8] sm:$0xff] }
 0xba7   :  { %v6584_v33 = vpack.c.bf16 %v2714_v61, %v2713_v30 }
 0xba8   :  { %6210 = vmatmul.mubr.msk.f32.vlgmr.msra.gmra.mrb[14].mxu0 %vm695_vm7, %v2246_v48 }
 0xba9   :  { %6213 = vmatpush3.msra.mxu0 %v511_v49  ;;  %6583 = vmatpush3.bf16.msra.mxu1 %v6580_v27 }
 0xbaa   :  { %6585 = vmatprep.subr.bf16.mxu0 %v6584_v33 }
 0xc76   :  { %v6204_v29 = vpop.f32.mrb[26].mxu1 }
 0xc77   :  { %v2325_v50 = vpop.f32.mrb[27].mxu1 }
 0xc78   :  { %6214 = vmatprep.mubr.msk.f32.mxu0 %vm518_vm5, %v2325_v50  ;;  %v5628_v50 = vld [vmem:[%s8025_s5] ss:$0 sm:$0xff] }
 0xc79   :  { %6215 = vmatmul.mubr.msk.f32.vlgmr.msra.gmra.mrb[6].mxu0 %vm518_vm5, %v6204_v29 }
 0xc7a   :  { %6587 = vmatpush3.bf16.msra.mxu0 %v6584_v33 }
 0xc7b   :  { %v6211_v53 = vpop.f32.mrb[14].mxu0  ;;  %6589 = vmatprep.subr.bf16.mxu0 %v6588_v36 }
 0xc7c   :  { %v2412_v28 = vpop.f32.mrb[15].mxu0 }
 0xc7d   :  { %6217 = vmatprep.mubr.msk.f32.mxu0 %vm518_vm5, %v2412_v28 }
 0xc7e   :  { %6218 = vmatmul.mubr.msk.f32.gmra.mrb[8].mxu0 %vm518_vm5, %v6211_v53 }
 0xc7f   :  { %6591 = vmatpush3.bf16.msra.mxu0 %v6588_v36 }
 0xc80   :  { %6593 = vmatprep.subr.bf16.mxu0 %v6592_v39 }
 0xc83   :  { %6595 = vmatpush3.bf16.msra.mxu0 %v6592_v39 }
 0xd4c   :  { %v6216_v54 = vpop.f32.mrb[6].mxu0 }
 0xd4d   :  { %v2523_v34 = vadd.f32 %v6216_v54, %v7312_v52  ;;  %v2499_v32 = vpop.f32.mrb[7].mxu0 }
 0xd4e   :  { %v2522_v63 = vadd.f32 %v2499_v32, %v7310_v51 }
 0xd4f   :  { %v2531_v0 = vsel %vm410_vm4, %v2523_v34, 0.0 }
 0xd50   :  { %2532 = vadd.xlane.f32.xlu0 %v2531_v0  ;;  %v2528_v1 = vsel %vm410_vm4, %v2522_v63, 0.0 }
 0xd51   :  { %2529 = vadd.xlane.f32.xlu1 %v2528_v1  ;;  %v6219_v3 = vpop.f32.mrb[8].mxu0 }
 0xd52   :  { %v2525_v4 = vadd.f32 %v6219_v3, %v7320_v56  ;;  %v2509_v5 = vpop.f32.mrb[9].mxu0 }
 0xd53   :  { %v2524_v6 = vadd.f32 %v2509_v5, %v7318_v55 }
 0xd54   :  { %v2537_v7 = vsel %vm410_vm4, %v2525_v4, 0.0 }
 0xd55   :  { %2538 = vadd.xlane.f32.xlu0 %v2537_v7  ;;  %v2534_v52 = vsel %vm410_vm4, %v2524_v6, 0.0 }
 0xd56   :  { %2535 = vadd.xlane.f32.xlu1 %v2534_v52 }
 0xddd   :  { %v2533_v8 = vpop.xlane.xlu0 %2532 }
 0xdde   :  { %v2542_v51 = vmul.f32 0.03125, %v2533_v8  ;;  %v2530_v9 = vpop.xlane.xlu1 %2529 }
 0xddf   :  { %v2541_v10 = vmul.f32 0.03125, %v2530_v9  ;;  %v2719_v9 = vld [vmem:[%s8029_s9 + $0x30] sm:$0xff] }
 0xde0   :  { %v7552_v11 = vsub.f32 %v2523_v34, %v2542_v51  ;;  %v5629_v34 = vld [vmem:[%s8026_s6] ss:$0 sm:$0xff] }
 0xde1   :  { %v7554_v12 = vsub.f32 %v2522_v63, %v2541_v10  ;;  %v2720_v10 = vld [vmem:[%s8029_s9 + $0x38] sm:$0xff] }
 0xde2   :  { %v2539_v13 = vpop.xlane.xlu0 %2538  ;;  %v2550_v56 = vmul.f32 %v7552_v11, %v7552_v11 }
 0xde3   :  { %v2544_v14 = vmul.f32 0.03125, %v2539_v13  ;;  %v2536_v55 = vpop.xlane.xlu1 %2535  ;;  %v2549_v15 = vmul.f32 %v7554_v12, %v7554_v12 }
 0xde4   :  { %v2543_v16 = vmul.f32 0.03125, %v2536_v55  ;;  %v2556_v17 = vsel %vm410_vm4, %v2550_v56, 0.0 }
 0xde5   :  { %v7561_v18 = vsub.f32 %v2525_v4, %v2544_v14  ;;  %2557 = vadd.xlane.f32.xlu0 %v2556_v17  ;;  %v2553_v19 = vsel %vm410_vm4, %v2549_v15, 0.0 }
 0xde6   :  { %v2547_v20 = vsub.f32 %v2524_v6, %v2543_v16  ;;  %2554 = vadd.xlane.f32.xlu1 %v2553_v19 }
 0xde7   :  { %v2552_v58 = vmul.f32 %v7561_v18, %v7561_v18 }
 0xde8   :  { %v2551_v21 = vmul.f32 %v2547_v20, %v2547_v20 }
 0xde9   :  { %v2562_v22 = vsel %vm410_vm4, %v2552_v58, 0.0 }
 0xdea   :  { %2563 = vadd.xlane.f32.xlu0 %v2562_v22  ;;  %v2559_v23 = vsel %vm410_vm4, %v2551_v21, 0.0  ;;  %v5635_v22 = vld [vmem:[%s8030_s10] ss:$0 sm:$0xff] }
 0xdeb   :  { %2560 = vadd.xlane.f32.xlu1 %v2559_v23 }
 0xe72   :  { %v2558_v40 = vpop.xlane.xlu0 %2557 }
 0xe73   :  { %v2566_v41 = vmul.f32 0.03125, %v2558_v40  ;;  %v2555_v42 = vpop.xlane.xlu1 %2554 }
 0xe74   :  { %v2565_v43 = vmul.f32 0.03125, %v2555_v42 }
 0xe75   :  { %v2570_v44 = vadd.f32 1e-05, %v2566_v41 }
 0xe76   :  { %v2569_v59 = vadd.f32 1e-05, %v2565_v43 }
 0xe77   :  { %6990 = vrsqrt.f32 %v2570_v44  ;;  %v2564_v45 = vpop.xlane.xlu0 %2563 }
 0xe78   :  { %6992 = vrsqrt.f32 %v2569_v59  ;;  %v2568_v46 = vmul.f32 0.03125, %v2564_v45  ;;  %v2561_v62 = vpop.xlane.xlu1 %2560 }
 0xe79   :  { %v2567_v47 = vmul.f32 0.03125, %v2561_v62 }
 0xe7a   :  { %v2572_v48 = vadd.f32 1e-05, %v2568_v46 }
 0xe7b   :  { %v2571_v49 = vadd.f32 1e-05, %v2567_v47 }
 0xe7c   :  { %6994 = vrsqrt.f32 %v2572_v48 }
 0xe7d   :  { %6996 = vrsqrt.f32 %v2571_v49 }
 0xe81   :  { %v6991_v29 = vpop.eup %6990 }
 0xe82   :  { %v6993_v53 = vpop.eup %6992  ;;  %v2578_v28 = vmul.f32 %v6991_v29, %v7552_v11  ;;  %v6596_v11 = vpack.c.bf16 %v2720_v10, %v2719_v9 }
 0xe83   :  { %v2577_v54 = vmul.f32 %v6993_v53, %v7554_v12  ;;  %v5630_v12 = vld [vmem:[%s8028_s8] ss:$0 sm:$0xff] }
 0xe84   :  { %v2588_v32 = vmul.f32 %v5628_v50, %v2578_v28  ;;  %6597 = vmatprep.subr.bf16.mxu0 %v6596_v11 }
 0xe85   :  { %v2587_v63 = vmul.f32 %v5628_v50, %v2577_v54  ;;  %6599 = vmatpush3.bf16.msra.mxu0 %v6596_v11 }
 0xe86   :  { %v6995_v0 = vpop.eup %6994  ;;  %v2598_v5 = vadd.f32 %v5629_v34, %v2588_v32 }
 0xe87   :  { %v6997_v1 = vpop.eup %6996  ;;  %v2597_v3 = vadd.f32 %v5629_v34, %v2587_v63  ;;  %v2580_v4 = vmul.f32 %v6995_v0, %v7561_v18  ;;  %v5642_v0 = vld [vmem:[%s8023_s3 + $0x20] sm:$0xff] }
 0xe88   :  { %v2579_v6 = vmul.f32 %v6997_v1, %v2547_v20  ;;  %v5643_v1 = vld [vmem:[%s8023_s3 + $0x28] sm:$0xff] }
 0xe89   :  { %6228 = vmatprep.mubr.msk.f32.mxu1 %vm410_vm4, %v2597_v3  ;;  %v2590_v7 = vmul.f32 %v5628_v50, %v2580_v4  ;;  %v5644_v4 = vld [vmem:[%s8023_s3 + $0x30] sm:$0xff] }
 0xe8a   :  { %6229 = vmatmul.mubr.msk.f32.vlgmr.msra.gmra.mrb[28].mxu1 %vm410_vm4, %v2598_v5  ;;  %v2589_v52 = vmul.f32 %v5628_v50, %v2579_v6 }
 0xe8b   :  { %v2600_v51 = vadd.f32 %v5629_v34, %v2590_v7 }
 0xe8c   :  { %v2599_v8 = vadd.f32 %v5629_v34, %v2589_v52 }
 0xe8e   :  { %6231 = vmatprep.mubr.msk.f32.mxu1 %vm410_vm4, %v2599_v8 }
 0xe8f   :  { %6232 = vmatmul.mubr.msk.f32.gmra.mrb[30].mxu1 %vm410_vm4, %v2600_v51 }
 0xf5d   :  { %v6230_v13 = vpop.f32.mrb[28].mxu1 }
 0xf5e   :  { %v2696_v56 = vadd.f32 %v6230_v13, %v5630_v12  ;;  %v2690_v14 = vpop.f32.mrb[29].mxu1 }
 0xf5f   :  { %v2691_v55 = vadd.f32 %v5630_v12, %v2690_v14 }
 0xf60   :  { %v2710_v16 = vmax.f32 %v2696_v56, 0.0 }
 0xf61   :  { %v2709_v15 = vmax.f32 %v2691_v55, 0.0 }
 0xf62   :  { %v6233_v17 = vpop.f32.mrb[30].mxu1 }
 0xf63   :  { %v2706_v18 = vadd.f32 %v6233_v17, %v5630_v12  ;;  %v2700_v19 = vpop.f32.mrb[31].mxu1  ;;  %6250 = vmatprep.mubr.msk.f32.mxu0 %vm2728_vm8, %v2709_v15 }
 0xf64   :  { %v2701_v20 = vadd.f32 %v5630_v12, %v2700_v19  ;;  %6251 = vmatmul.mubr.msk.f32.vlgmr.msra.gmra.mrb[16].mxu0 %vm2728_vm8, %v2710_v16  ;;  %v5640_v16 = vld [vmem:[%s8031_s11] ss:$0 sm:$0xff] }
 0xf65   :  { %v2712_v21 = vmax.f32 %v2706_v18, 0.0 }
 0xf66   :  { %v2711_v58 = vmax.f32 %v2701_v20, 0.0  ;;  %v5641_v20 = vld [vmem:[%s8032_s12] ss:$0 sm:$0xff] }
 0xf68   :  { %6253 = vmatprep.mubr.msk.f32.mxu0 %vm2728_vm8, %v2711_v58 }
 0xf69   :  { %6254 = vmatmul.mubr.msk.f32.gmra.mrb[18].mxu0 %vm2728_vm8, %v2712_v21 }
0x1037   :  { %v6252_v23 = vpop.f32.mrb[16].mxu0 }
0x1038   :  { %v2813_v24 = vadd.f32 %v6252_v23, %v5635_v22  ;;  %v2807_v57 = vpop.f32.mrb[17].mxu0 }
0x1039   :  { %v2808_v25 = vadd.f32 %v5635_v22, %v2807_v57 }
0x103a   :  { %v2827_v26 = vadd.f32 %v2813_v24, %v2598_v5  ;;  %v5645_v5 = vld [vmem:[%s8023_s3 + $0x38] sm:$0xff] }
0x103b   :  { %v2826_v60 = vadd.f32 %v2808_v25, %v2597_v3  ;;  %v6600_v3 = vpack.c.bf16 %v5643_v1, %v5642_v0  ;;  %v6604_v6 = vpack.c.bf16 %v5645_v5, %v5644_v4 }
0x103c   :  { %v6255_v27 = vpop.f32.mrb[18].mxu0  ;;  %v2835_v30 = vsel %vm410_vm4, %v2827_v26, 0.0 }
0x103d   :  { %v2823_v61 = vadd.f32 %v6255_v27, %v5635_v22  ;;  %2836 = vadd.xlane.f32.xlu0 %v2835_v30  ;;  %v2817_v31 = vpop.f32.mrb[19].mxu0  ;;  %v2832_v33 = vsel %vm410_vm4, %v2826_v60, 0.0  ;;  %6601 = vmatprep.subr.bf16.mxu1 %v6600_v3 }
0x103e   :  { %v2818_v35 = vadd.f32 %v5635_v22, %v2817_v31  ;;  %2833 = vadd.xlane.f32.xlu1 %v2832_v33  ;;  %6603 = vmatpush3.bf16.msra.mxu1 %v6600_v3 }
0x103f   :  { %v2829_v36 = vadd.f32 %v2823_v61, %v2600_v51  ;;  %6605 = vmatprep.subr.bf16.mxu1 %v6604_v6 }
0x1040   :  { %v2828_v37 = vadd.f32 %v2818_v35, %v2599_v8 }
0x1041   :  { %v2841_v38 = vsel %vm410_vm4, %v2829_v36, 0.0 }
0x1042   :  { %2842 = vadd.xlane.f32.xlu0 %v2841_v38  ;;  %v2838_v39 = vsel %vm410_vm4, %v2828_v37, 0.0  ;;  %6607 = vmatpush3.bf16.msra.mxu1 %v6604_v6 }
0x1043   :  { %2839 = vadd.xlane.f32.xlu1 %v2838_v39 }
0x10ca   :  { %v2837_v40 = vpop.xlane.xlu0 %2836 }
0x10cb   :  { %v2845_v41 = vmul.f32 0.03125, %v2837_v40  ;;  %v2834_v42 = vpop.xlane.xlu1 %2833 }
0x10cc   :  { %v2844_v43 = vmul.f32 0.03125, %v2834_v42 }
0x10cd   :  { %v2849_v44 = vsub.f32 %v2827_v26, %v2845_v41 }
0x10ce   :  { %v2848_v59 = vsub.f32 %v2826_v60, %v2844_v43 }
0x10cf   :  { %v2843_v45 = vpop.xlane.xlu0 %2842  ;;  %v2853_v46 = vmul.f32 %v2849_v44, %v2849_v44 }
0x10d0   :  { %v2847_v62 = vmul.f32 0.03125, %v2843_v45  ;;  %v2840_v47 = vpop.xlane.xlu1 %2839  ;;  %v2852_v48 = vmul.f32 %v2848_v59, %v2848_v59 }
0x10d1   :  { %v2846_v49 = vmul.f32 0.03125, %v2840_v47  ;;  %v2859_v29 = vsel %vm410_vm4, %v2853_v46, 0.0 }
0x10d2   :  { %v2851_v50 = vsub.f32 %v2829_v36, %v2847_v62  ;;  %2860 = vadd.xlane.f32.xlu0 %v2859_v29  ;;  %v2856_v53 = vsel %vm410_vm4, %v2852_v48, 0.0 }
0x10d3   :  { %v2850_v28 = vsub.f32 %v2828_v37, %v2846_v49  ;;  %2857 = vadd.xlane.f32.xlu1 %v2856_v53 }
0x10d4   :  { %v2855_v54 = vmul.f32 %v2851_v50, %v2851_v50 }
0x10d5   :  { %v2854_v34 = vmul.f32 %v2850_v28, %v2850_v28 }
0x10d6   :  { %v2865_v32 = vsel %vm410_vm4, %v2855_v54, 0.0 }
0x10d7   :  { %2866 = vadd.xlane.f32.xlu0 %v2865_v32  ;;  %v2862_v63 = vsel %vm410_vm4, %v2854_v34, 0.0 }
0x10d8   :  { %2863 = vadd.xlane.f32.xlu1 %v2862_v63 }
0x115f   :  { %v2861_v7 = vpop.xlane.xlu0 %2860 }
0x1160   :  { %v2869_v52 = vmul.f32 0.03125, %v2861_v7  ;;  %v2858_v8 = vpop.xlane.xlu1 %2857 }
0x1161   :  { %v2868_v51 = vmul.f32 0.03125, %v2858_v8 }
0x1162   :  { %v2873_v9 = vadd.f32 1e-05, %v2869_v52 }
0x1163   :  { %v2872_v10 = vadd.f32 1e-05, %v2868_v51 }
0x1164   :  { %6998 = vrsqrt.f32 %v2873_v9  ;;  %v2867_v11 = vpop.xlane.xlu0 %2866 }
0x1165   :  { %7000 = vrsqrt.f32 %v2872_v10  ;;  %v2871_v12 = vmul.f32 0.03125, %v2867_v11  ;;  %v2864_v13 = vpop.xlane.xlu1 %2863 }
0x1166   :  { %v2870_v56 = vmul.f32 0.03125, %v2864_v13 }
0x1167   :  { %v2875_v14 = vadd.f32 1e-05, %v2871_v12 }
0x1168   :  { %v2874_v55 = vadd.f32 1e-05, %v2870_v56 }
0x1169   :  { %7002 = vrsqrt.f32 %v2875_v14 }
0x116a   :  { %7004 = vrsqrt.f32 %v2874_v55 }
0x116e   :  { %v6999_v15 = vpop.eup %6998 }
0x116f   :  { %v7001_v17 = vpop.eup %7000  ;;  %v2881_v18 = vmul.f32 %v6999_v15, %v2849_v44 }
0x1170   :  { %v2880_v19 = vmul.f32 %v7001_v17, %v2848_v59 }
0x1171   :  { %v2891_v58 = vmul.f32 %v5640_v16, %v2881_v18 }
0x1172   :  { %v2890_v21 = vmul.f32 %v5640_v16, %v2880_v19 }
0x1173   :  { %v7003_v22 = vpop.eup %7002  ;;  %v7655_v25 = vadd.f32 %v5641_v20, %v2891_v58 }
0x1174   :  { %v7005_v23 = vpop.eup %7004  ;;  %v7653_v24 = vadd.f32 %v5641_v20, %v2890_v21  ;;  %v2883_v57 = vmul.f32 %v7003_v22, %v2851_v50 }
0x1175   :  { %v2882_v26 = vmul.f32 %v7005_v23, %v2850_v28 }
0x1176   :  { %6264 = vmatprep.mubr.msk.f32.mxu1 %vm410_vm4, %v7653_v24  ;;  %v2893_v60 = vmul.f32 %v5640_v16, %v2883_v57 }
0x1177   :  { %6265 = vmatmul.mubr.msk.f32.vlgmr.msra.gmra.mrb[32].mxu1 %vm410_vm4, %v7655_v25  ;;  %v2892_v27 = vmul.f32 %v5640_v16, %v2882_v26 }
0x1178   :  { %v7663_v61 = vadd.f32 %v5641_v20, %v2893_v60 }
0x1179   :  { %v7661_v30 = vadd.f32 %v5641_v20, %v2892_v27 }
0x117b   :  { %6267 = vmatprep.mubr.msk.f32.mxu1 %vm410_vm4, %v7661_v30 }
0x117c   :  { %6268 = vmatmul.mubr.msk.f32.gmra.mrb[34].mxu1 %vm410_vm4, %v7663_v61 }
0x124a   :  { %v7669_v31 = vpop.f32.mrb[32].mxu1 }
0x124b   :  { %v7671_v33 = vpop.f32.mrb[33].mxu1 }
0x124c   :  { %6274 = vmatprep.mubr.msk.f32.mxu1 %vm518_vm5, %v7671_v33  ;;  %v7677_v35 = vpack.i.bf16 %v7669_v31, %v7671_v33 }
0x124e   :  { %6847 = vrot.lane.b32.xlu1 %v7677_v35, %s7110_s1 }
0x124f   :  { %v7681_v36 = vpop.f32.mrb[34].mxu1 }
0x1250   :  { %v7683_v37 = vpop.f32.mrb[35].mxu1 }
0x1251   :  { %6281 = vmatprep.mubr.msk.f32.mxu0 %vm518_vm5, %v7683_v37  ;;  %v7689_v38 = vpack.i.bf16 %v7681_v36, %v7683_v37 }
0x1253   :  { %6852 = vrot.lane.b32.xlu0 %v7689_v38, %s7110_s1 }
0x12c0   :  { %v6848_v39 = vpop.permute.xlu1 %6847 }
0x12c1   :  { %v6850_v40 = vunpack.i.h.bf16 %v6848_v39  ;;  %v6849_v41 = vunpack.i.l.bf16 %v6848_v39 }
0x12c3   :  { %v6608_v42 = vpack.c.bf16 %v6850_v40, %v6849_v41 }
0x12c5   :  { %v6853_v43 = vpop.permute.xlu0 %6852  ;;  %6610 = vmatprep.subr.msk.bf16.mxu1 %vm7350_vm6, %v6608_v42 }
0x12c6   :  { %v6855_v44 = vunpack.i.h.bf16 %v6853_v43  ;;  %v6854_v59 = vunpack.i.l.bf16 %v6853_v43  ;;  %6613 = vmatpush3.bf16.xpose.msk.msra.mxu1 %vm7350_vm6, %v6608_v42 }
0x12c8   :  { %v6614_v45 = vpack.c.bf16 %v6855_v44, %v6854_v59 }
0x12ca   :  { %6616 = vmatprep.subr.msk.bf16.mxu0 %vm7350_vm6, %v6614_v45 }
0x12cb   :  { %6619 = vmatpush3.bf16.xpose.msk.msra.mxu0 %vm7350_vm6, %v6614_v45 }
0x12cd   :  { %6275 = vmatmul.mubr.msk.f32.vlgmr.msra.gmra.mrb[36].mxu1 %vm518_vm5, %v7669_v31 }
0x12d2   :  { %6282 = vmatmul.mubr.msk.f32.vlgmr.msra.gmra.mrb[20].mxu0 %vm518_vm5, %v7681_v36 }
0x13a0   :  { %v6276_v46 = vpop.f32.mrb[36].mxu1 }
0x13a1   :  { %v3190_v62 = vmul.f32 0.35355338, %v6276_v46  ;;  %v3091_v47 = vpop.f32.mrb[37].mxu1 }
0x13a2   :  { %v3189_v48 = vmul.f32 0.35355338, %v3091_v47 }
0x13a3   :  { %v3196_v49 = vsel %vm695_vm7, %v3190_v62, -inf }
0x13a4   :  { %3197 = vmax.xlane.f32.xlu0 %v3196_v49  ;;  %v3193_v29 = vsel %vm695_vm7, %v3189_v48, -inf }
0x13a5   :  { %v6283_v50 = vpop.f32.mrb[20].mxu0  ;;  %3194 = vmax.xlane.f32.xlu1 %v3193_v29 }
0x13a6   :  { %v3192_v53 = vmul.f32 0.35355338, %v6283_v50  ;;  %v3180_v28 = vpop.f32.mrb[21].mxu0 }
0x13a7   :  { %v3191_v54 = vmul.f32 0.35355338, %v3180_v28 }
0x13a8   :  { %v3202_v34 = vsel %vm695_vm7, %v3192_v53, -inf }
0x13a9   :  { %3203 = vmax.xlane.f32.xlu0 %v3202_v34  ;;  %v3199_v32 = vsel %vm695_vm7, %v3191_v54, -inf }
0x13aa   :  { %3200 = vmax.xlane.f32.xlu1 %v3199_v32 }
0x1431   :  { %v3198_v63 = vpop.xlane.xlu0 %3197 }
0x1432   :  { %v3206_v0 = vsub.f32 %v3190_v62, %v3198_v63  ;;  %v3195_v1 = vpop.xlane.xlu1 %3194 }
0x1433   :  { %v3205_v3 = vsub.f32 %v3189_v48, %v3195_v1 }
0x1434   :  { %v3211_v4 = vmul.f32 1.442695, %v3206_v0 }
0x1435   :  { %v3209_v5 = vmul.f32 1.442695, %v3205_v3 }
0x1436   :  { %7006 = vpow2.f32 %v3211_v4  ;;  %v3204_v6 = vpop.xlane.xlu0 %3203 }
0x1437   :  { %7008 = vpow2.f32 %v3209_v5  ;;  %v3208_v7 = vsub.f32 %v3192_v53, %v3204_v6  ;;  %v3201_v13 = vpop.xlane.xlu1 %3200 }
0x1438   :  { %v3207_v56 = vsub.f32 %v3191_v54, %v3201_v13 }
0x1439   :  { %v3215_v52 = vmul.f32 1.442695, %v3208_v7 }
0x143a   :  { %v3213_v14 = vmul.f32 1.442695, %v3207_v56 }
0x143b   :  { %7010 = vpow2.f32 %v3215_v52 }
0x143c   :  { %7012 = vpow2.f32 %v3213_v14 }
0x1440   :  { %v7007_v8 = vpop.eup %7006 }
0x1441   :  { %v7009_v51 = vpop.eup %7008  ;;  %v3220_v9 = vsel %vm695_vm7, %v7007_v8, 0.0 }
0x1442   :  { %3221 = vadd.xlane.f32.xlu0 %v3220_v9  ;;  %v3217_v10 = vsel %vm695_vm7, %v7009_v51, 0.0 }
0x1443   :  { %3218 = vadd.xlane.f32.xlu1 %v3217_v10 }
0x1445   :  { %v7011_v11 = vpop.eup %7010 }
0x1446   :  { %v3226_v12 = vsel %vm695_vm7, %v7011_v11, 0.0  ;;  %v7013_v55 = vpop.eup %7012 }
0x1447   :  { %3227 = vadd.xlane.f32.xlu0 %v3226_v12  ;;  %v3223_v15 = vsel %vm695_vm7, %v7013_v55, 0.0 }
0x1454   :  { %6857 = vrot.lane.b32.xlu1 %v7677_v35, %s7111_s21 }
0x1458   :  { %6867 = vrot.lane.b32.xlu1 %v7689_v38, %s7112_s22 }
0x145d   :  { %6862 = vrot.lane.b32.xlu0 %v7689_v38, %s7111_s21 }
0x1461   :  { %3504 = vrot.lane.b32.xlu0 %v7681_v36, %s7113_s23 }
0x1465   :  { %3411 = vrot.lane.b32.xlu0 %v7671_v33, %s7113_s23 }
0x147c   :  { %3224 = vadd.xlane.f32.xlu1 %v3223_v15 }
0x148d   :  { %3502 = vrot.lane.b32.xlu1 %v7683_v37, %s7113_s23 }
0x1491   :  { %6872 = vrot.lane.b32.xlu1 %v7677_v35, %s7112_s22 }
0x1495   :  { %3413 = vrot.lane.b32.xlu1 %v7669_v31, %s7113_s23 }
0x14cf   :  { %v3222_v16 = vpop.xlane.xlu0 %3221 }
0x14d0   :  { %7014 = vrcp.f32 %v3222_v16  ;;  %v3219_v17 = vpop.xlane.xlu1 %3218 }
0x14d1   :  { %7016 = vrcp.f32 %v3219_v17 }
0x14d4   :  { %v3228_v18 = vpop.xlane.xlu0 %3227  ;;  %v6858_v19 = vpop.permute.xlu1 %6857 }
0x14d5   :  { %v6860_v20 = vunpack.i.h.bf16 %v6858_v19  ;;  %v6859_v58 = vunpack.i.l.bf16 %v6858_v19  ;;  %7018 = vrcp.f32 %v3228_v18 }
0x14d7   :  { %v6620_v21 = vpack.c.bf16 %v6860_v20, %v6859_v58 }
0x14d8   :  { %v6863_v22 = vpop.permute.xlu0 %6862  ;;  %v6868_v23 = vpop.permute.xlu1 %6867 }
0x14d9   :  { %v6865_v57 = vunpack.i.h.bf16 %v6863_v22  ;;  %v6864_v26 = vunpack.i.l.bf16 %v6863_v22  ;;  %6621 = vmatprep.subr.bf16.mxu1 %v6620_v21  ;;  %v6870_v40 = vunpack.i.h.bf16 %v6868_v23  ;;  %v6869_v41 = vunpack.i.l.bf16 %v6868_v23 }
0x14da   :  { %v7015_v60 = vpop.eup %7014  ;;  %6623 = vmatpush3.bf16.msra.mxu1 %v6620_v21 }
0x14db   :  { %v7017_v27 = vpop.eup %7016  ;;  %v6624_v39 = vpack.c.bf16 %v6865_v57, %v6864_v26  ;;  %v3234_v44 = vmul.f32 %v7015_v60, %v7007_v8  ;;  %v6634_v59 = vpack.c.bf16 %v6870_v40, %v6869_v41 }
0x14dc   :  { %v3505_v42 = vpop.permute.xlu0 %3504  ;;  %v3233_v43 = vmul.f32 %v7017_v27, %v7009_v51 }
0x14dd   :  { %6625 = vmatprep.subr.bf16.mxu1 %v6624_v39 }
0x14de   :  { %6288 = vmatprep.mubr.msk.f32.mxu1 %vm695_vm7, %v3233_v43 }
0x14df   :  { %6289 = vmatmul.mubr.msk.f32.vlgmr.msra.gmra.mrb[38].mxu1 %vm695_vm7, %v3234_v44  ;;  %v7019_v29 = vpop.eup %7018 }
0x14e0   :  { %6627 = vmatpush3.bf16.msra.mxu1 %v6624_v39  ;;  %v3412_v45 = vpop.permute.xlu0 %3411  ;;  %v3236_v54 = vmul.f32 %v7019_v29, %v7011_v11 }
0x14e1   :  { %6636 = vmatprep.subr.msk.bf16.mxu1 %vm7350_vm6, %v6634_v59  ;;  %6302 = vmatprep.mubr.msk.f32.mxu0 %vm518_vm5, %v3412_v45 }
0x1509   :  { %v3225_v46 = vpop.xlane.xlu1 %3224 }
0x150a   :  { %7020 = vrcp.f32 %v3225_v46 }
0x150d   :  { %v3503_v62 = vpop.permute.xlu1 %3502 }
0x1511   :  { %v6873_v47 = vpop.permute.xlu1 %6872 }
0x1512   :  { %v6875_v48 = vunpack.i.h.bf16 %v6873_v47  ;;  %v6874_v49 = vunpack.i.l.bf16 %v6873_v47 }
0x1514   :  { %v7021_v50 = vpop.eup %7020  ;;  %v6628_v53 = vpack.c.bf16 %v6875_v48, %v6874_v49 }
0x1515   :  { %v3235_v28 = vmul.f32 %v7021_v50, %v7013_v55  ;;  %v3414_v34 = vpop.permute.xlu1 %3413 }
0x1516   :  { %6630 = vmatprep.subr.msk.bf16.mxu0 %vm7350_vm6, %v6628_v53 }
0x1517   :  { %6295 = vmatprep.mubr.msk.f32.mxu1 %vm695_vm7, %v3235_v28  ;;  %6633 = vmatpush3.bf16.xpose.msk.msra.mxu0 %vm7350_vm6, %v6628_v53 }
0x1518   :  { %6296 = vmatmul.mubr.msk.f32.vlgmr.msra.gmra.mrb[40].mxu1 %vm695_vm7, %v3236_v54 }
0x1519   :  { %6639 = vmatpush3.bf16.xpose.msk.msra.mxu1 %vm7350_vm6, %v6634_v59  ;;  %6309 = vmatprep.mubr.msk.f32.mxu1 %vm518_vm5, %v3503_v62 }
0x151e   :  { %6303 = vmatmul.mubr.msk.f32.vlgmr.msra.gmra.mrb[22].mxu0 %vm518_vm5, %v3414_v34 }
0x1520   :  { %6310 = vmatmul.mubr.msk.f32.vlgmr.msra.gmra.mrb[42].mxu1 %vm518_vm5, %v3505_v42 }
0x15b2   :  { %v7745_v32 = vpop.f32.mrb[38].mxu1 }
0x15b3   :  { %v7747_v63 = vpop.f32.mrb[39].mxu1 }
0x15eb   :  { %v7749_v0 = vpop.f32.mrb[40].mxu1 }
0x15ec   :  { %v7751_v1 = vpop.f32.mrb[41].mxu1 }
0x15f1   :  { %v6304_v3 = vpop.f32.mrb[22].mxu0 }
0x15f2   :  { %v3493_v4 = vpop.f32.mrb[23].mxu0  ;;  %v3594_v39 = vmul.f32 0.35355338, %v6304_v3 }
0x15f3   :  { %v6311_v5 = vpop.f32.mrb[42].mxu1  ;;  %v3593_v9 = vmul.f32 0.35355338, %v3493_v4 }
0x15f4   :  { %v3596_v6 = vmul.f32 0.35355338, %v6311_v5  ;;  %v3584_v7 = vpop.f32.mrb[43].mxu1  ;;  %v3600_v40 = vsel %vm695_vm7, %v3594_v39, -inf }
0x15f5   :  { %v3595_v52 = vmul.f32 0.35355338, %v3584_v7  ;;  %v3597_v10 = vsel %vm695_vm7, %v3593_v9, -inf }
0x15f6   :  { %v3606_v8 = vsel %vm695_vm7, %v3596_v6, -inf }
0x15f7   :  { %3607 = vmax.xlane.f32.xlu1 %v3606_v8  ;;  %v3603_v51 = vsel %vm695_vm7, %v3595_v52, -inf }
0x15f8   :  { %3604 = vmax.xlane.f32.xlu0 %v3603_v51 }
0x1608   :  { %6877 = vrot.lane.b32.xlu1 %v7689_v38, %s7114_s0 }
0x160c   :  { %6887 = vrot.lane.b32.xlu1 %v7689_v38, %s7115_s24 }
0x1610   :  { %4009 = vrot.lane.b32.xlu1 %v7671_v33, %s7116_s25 }
0x1614   :  { %4100 = vrot.lane.b32.xlu1 %v7683_v37, %s7116_s25 }
0x1638   :  { %3598 = vmax.xlane.f32.xlu1 %v3597_v10 }
0x1684   :  { %v3608_v11 = vpop.xlane.xlu1 %3607 }
0x1685   :  { %v3612_v12 = vsub.f32 %v3596_v6, %v3608_v11  ;;  %v3605_v13 = vpop.xlane.xlu0 %3604 }
0x1686   :  { %v3611_v56 = vsub.f32 %v3595_v52, %v3605_v13 }
0x1687   :  { %v3619_v14 = vmul.f32 1.442695, %v3612_v12 }
0x1688   :  { %v3617_v55 = vmul.f32 1.442695, %v3611_v56  ;;  %v6878_v15 = vpop.permute.xlu1 %6877 }
0x1689   :  { %7022 = vpow2.f32 %v3619_v14  ;;  %v6880_v16 = vunpack.i.h.bf16 %v6878_v15  ;;  %v6879_v17 = vunpack.i.l.bf16 %v6878_v15 }
0x168a   :  { %7024 = vpow2.f32 %v3617_v55 }
0x168b   :  { %v6644_v18 = vpack.c.bf16 %v6880_v16, %v6879_v17 }
0x168c   :  { %v6888_v22 = vpop.permute.xlu1 %6887 }
0x168d   :  { %6645 = vmatprep.subr.bf16.mxu1 %v6644_v18  ;;  %v6890_v49 = vunpack.i.h.bf16 %v6888_v22  ;;  %v6889_v29 = vunpack.i.l.bf16 %v6888_v22 }
0x168e   :  { %6647 = vmatpush3.bf16.msra.mxu1 %v6644_v18 }
0x168f   :  { %v6654_v28 = vpack.c.bf16 %v6890_v49, %v6889_v29 }
0x1690   :  { %v4010_v23 = vpop.permute.xlu1 %4009 }
0x1693   :  { %v7023_v19 = vpop.eup %7022 }
0x1694   :  { %v3630_v20 = vsel %vm695_vm7, %v7023_v19, 0.0  ;;  %v7025_v58 = vpop.eup %7024  ;;  %v4101_v57 = vpop.permute.xlu1 %4100 }
0x1695   :  { %3631 = vadd.xlane.f32.xlu0 %v3630_v20  ;;  %v3627_v21 = vsel %vm695_vm7, %v7025_v58, 0.0 }
0x1699   :  { %3628 = vadd.xlane.f32.xlu0 %v3627_v21 }
0x16af   :  { %6882 = vrot.lane.b32.xlu0 %v7677_v35, %s7115_s24  ;;  %s8045_s24 = smov 104  }
0x16b3   :  { %4011 = vrot.lane.b32.xlu0 %v7669_v31, %s7116_s25 }
0x16b7   :  { %4102 = vrot.lane.b32.xlu0 %v7681_v36, %s7116_s25 }
0x16c5   :  { %v3599_v26 = vpop.xlane.xlu1 %3598 }
0x16c6   :  { %v3609_v60 = vsub.f32 %v3593_v9, %v3599_v26 }
0x16c8   :  { %v3613_v27 = vmul.f32 1.442695, %v3609_v60 }
0x16ca   :  { %7026 = vpow2.f32 %v3613_v27  ;;  %v5651_v27 = vld [vmem:[%s8024_s4 + $0x28] sm:$0xff] }
0x16d4   :  { %v7027_v41 = vpop.eup %7026 }
0x16d5   :  { %v3621_v42 = vsel %vm695_vm7, %v7027_v41, 0.0 }
0x16d6   :  { %3601 = vmax.xlane.f32.xlu0 %v3600_v40 }
0x16da   :  { %3622 = vadd.xlane.f32.xlu0 %v3621_v42 }
0x16f0   :  { %6892 = vrot.lane.b32.xlu0 %v7677_v35, %s7114_s0  ;;  %s8044_s0 = smov 72  }
0x1722   :  { %v3632_v43 = vpop.xlane.xlu0 %3631 }
0x1723   :  { %7028 = vrcp.f32 %v3632_v43 }
0x1726   :  { %v3629_v44 = vpop.xlane.xlu0 %3628 }
0x1727   :  { %7030 = vrcp.f32 %v3629_v44 }
0x172a   :  { %v6883_v59 = vpop.permute.xlu0 %6882 }
0x172b   :  { %v6885_v45 = vunpack.i.h.bf16 %v6883_v59  ;;  %v6884_v46 = vunpack.i.l.bf16 %v6883_v59 }
0x172d   :  { %v6648_v62 = vpack.c.bf16 %v6885_v45, %v6884_v46  ;;  %v7029_v47 = vpop.eup %7028 }
0x172e   :  { %v3640_v53 = vmul.f32 %v7029_v47, %v7023_v19  ;;  %v4012_v54 = vpop.permute.xlu0 %4011 }
0x172f   :  { %6650 = vmatprep.subr.msk.bf16.mxu1 %vm7350_vm6, %v6648_v62 }
0x1731   :  { %v7031_v48 = vpop.eup %7030 }
0x1732   :  { %v3639_v50 = vmul.f32 %v7031_v48, %v7025_v58  ;;  %v4103_v34 = vpop.permute.xlu0 %4102 }
0x1734   :  { %6323 = vmatprep.mubr.msk.f32.mxu1 %vm695_vm7, %v3639_v50 }
0x1735   :  { %6324 = vmatmul.mubr.msk.f32.vlgmr.msra.gmra.mrb[44].mxu1 %vm695_vm7, %v3640_v53 }
0x1736   :  { %6653 = vmatpush3.bf16.xpose.msk.msra.mxu1 %vm7350_vm6, %v6648_v62  ;;  %6346 = vmatprep.mubr.msk.f32.mxu1 %vm518_vm5, %v4010_v23 }
0x1737   :  { %6656 = vmatprep.subr.msk.bf16.mxu1 %vm7350_vm6, %v6654_v28 }
0x173d   :  { %6347 = vmatmul.mubr.msk.f32.vlgmr.msra.gmra.mrb[46].mxu1 %vm518_vm5, %v4012_v54 }
0x173e   :  { %6659 = vmatpush3.bf16.xpose.msk.msra.mxu1 %vm7350_vm6, %v6654_v28  ;;  %6353 = vmatprep.mubr.msk.f32.mxu1 %vm518_vm5, %v4101_v57 }
0x1745   :  { %6354 = vmatmul.mubr.msk.f32.vlgmr.msra.gmra.mrb[48].mxu1 %vm518_vm5, %v4103_v34 }
0x1763   :  { %v3602_v3 = vpop.xlane.xlu0 %3601 }
0x1764   :  { %v3610_v4 = vsub.f32 %v3594_v39, %v3602_v3  ;;  %v5650_v39 = vld [vmem:[%s8024_s4 + $0x20] sm:$0xff] }
0x1766   :  { %v3615_v5 = vmul.f32 1.442695, %v3610_v4 }
0x1767   :  { %v3623_v6 = vpop.xlane.xlu0 %3622 }
0x1768   :  { %7032 = vpow2.f32 %v3615_v5 }
0x1769   :  { %7034 = vrcp.f32 %v3623_v6 }
0x176b   :  { %v6893_v7 = vpop.permute.xlu0 %6892 }
0x176c   :  { %v6895_v52 = vunpack.i.h.bf16 %v6893_v7  ;;  %v6894_v8 = vunpack.i.l.bf16 %v6893_v7 }
0x176e   :  { %v6640_v51 = vpack.c.bf16 %v6895_v52, %v6894_v8 }
0x1770   :  { %6641 = vmatprep.subr.bf16.mxu0 %v6640_v51 }
0x1771   :  { %6643 = vmatpush3.bf16.msra.mxu0 %v6640_v51 }
0x1772   :  { %v7033_v9 = vpop.eup %7032  ;;  %6326 = vmatprep.subr.mxu0 %v5651_v27 }
0x1773   :  { %v7035_v10 = vpop.eup %7034  ;;  %v3624_v11 = vsel %vm695_vm7, %v7033_v9, 0.0 }
0x1774   :  { %3625 = vadd.xlane.f32.xlu1 %v3624_v11  ;;  %v3637_v12 = vmul.f32 %v7035_v10, %v7027_v41 }
0x1776   :  { %6316 = vmatprep.mubr.msk.f32.mxu0 %vm695_vm7, %v3637_v12  ;;  %v5652_v12 = vld [vmem:[%s8024_s4 + $0x30] sm:$0xff] }
0x1801   :  { %v3626_v13 = vpop.xlane.xlu1 %3625 }
0x1802   :  { %7036 = vrcp.f32 %v3626_v13 }
0x1808   :  { %v7792_v56 = vpop.f32.mrb[44].mxu1 }
0x1809   :  { %v7794_v14 = vpop.f32.mrb[45].mxu1 }
0x180c   :  { %v7037_v55 = vpop.eup %7036 }
0x180d   :  { %v3638_v15 = vmul.f32 %v7037_v55, %v7033_v9 }
0x180f   :  { %6317 = vmatmul.mubr.msk.f32.vlgmr.msra.gmra.mrb[24].mxu0 %vm695_vm7, %v3638_v15 }
0x1810   :  { %v6348_v16 = vpop.f32.mrb[46].mxu1  ;;  %6327 = vmatpush3.msra.mxu0 %v5651_v27 }
0x1811   :  { %v4192_v17 = vmul.f32 0.35355338, %v6348_v16  ;;  %v4091_v18 = vpop.f32.mrb[47].mxu1  ;;  %6334 = vmatprep.subr.mxu0 %v5650_v39 }
0x1812   :  { %v4191_v19 = vmul.f32 0.35355338, %v4091_v18 }
0x1813   :  { %v4198_v20 = vsel %vm695_vm7, %v4192_v17, -inf }
0x1814   :  { %4199 = vmax.xlane.f32.xlu1 %v4198_v20  ;;  %v4195_v58 = vsel %vm695_vm7, %v4191_v19, -inf }
0x1818   :  { %4196 = vmax.xlane.f32.xlu1 %v4195_v58  ;;  %v6355_v21 = vpop.f32.mrb[48].mxu1 }
0x1819   :  { %v4182_v22 = vpop.f32.mrb[49].mxu1  ;;  %v4194_v57 = vmul.f32 0.35355338, %v6355_v21 }
0x181a   :  { %v4193_v23 = vmul.f32 0.35355338, %v4182_v22 }
0x181b   :  { %v4204_v60 = vsel %vm695_vm7, %v4194_v57, -inf }
0x181c   :  { %v4201_v26 = vsel %vm695_vm7, %v4193_v23, -inf }
0x181d   :  { %4202 = vmax.xlane.f32.xlu1 %v4201_v26 }
0x1821   :  { %4205 = vmax.xlane.f32.xlu1 %v4204_v60 }
0x18a1   :  { %v4200_v40 = vpop.xlane.xlu1 %4199 }
0x18a2   :  { %v4208_v41 = vsub.f32 %v4192_v17, %v4200_v40 }
0x18a4   :  { %v4213_v42 = vmul.f32 1.442695, %v4208_v41 }
0x18a5   :  { %v4197_v43 = vpop.xlane.xlu1 %4196 }
0x18a6   :  { %7038 = vpow2.f32 %v4213_v42  ;;  %v4207_v44 = vsub.f32 %v4191_v19, %v4197_v43 }
0x18a8   :  { %v4211_v59 = vmul.f32 1.442695, %v4207_v44 }
0x18aa   :  { %7040 = vpow2.f32 %v4211_v59  ;;  %v4203_v45 = vpop.xlane.xlu1 %4202 }
0x18ab   :  { %v4209_v46 = vsub.f32 %v4193_v23, %v4203_v45 }
0x18ad   :  { %v4215_v62 = vmul.f32 1.442695, %v4209_v46 }
0x18ae   :  { %v4206_v47 = vpop.xlane.xlu1 %4205 }
0x18af   :  { %7042 = vpow2.f32 %v4215_v62  ;;  %v4210_v48 = vsub.f32 %v4194_v57, %v4206_v47 }
0x18b0   :  { %v7039_v49 = vpop.eup %7038 }
0x18b1   :  { %v4217_v29 = vmul.f32 1.442695, %v4210_v48  ;;  %v4222_v50 = vsel %vm695_vm7, %v7039_v49, 0.0 }
0x18b2   :  { %4223 = vadd.xlane.f32.xlu1 %v4222_v50 }
0x18b3   :  { %7044 = vpow2.f32 %v4217_v29 }
0x18b4   :  { %v7041_v53 = vpop.eup %7040 }
0x18b5   :  { %v4219_v28 = vsel %vm695_vm7, %v7041_v53, 0.0 }
0x18b6   :  { %4220 = vadd.xlane.f32.xlu1 %v4219_v28 }
0x18b9   :  { %v7043_v54 = vpop.eup %7042 }
0x18ba   :  { %v4225_v34 = vsel %vm695_vm7, %v7043_v54, 0.0 }
0x18bb   :  { %4226 = vadd.xlane.f32.xlu0 %v4225_v34 }
0x18bd   :  { %v7045_v3 = vpop.eup %7044 }
0x18be   :  { %v4228_v4 = vsel %vm695_vm7, %v7045_v3, 0.0 }
0x18bf   :  { %4229 = vadd.xlane.f32.xlu1 %v4228_v4 }
0x18d0   :  { %6897 = vrot.lane.b32.xlu1 %v7677_v35, %s7117_s29 }
0x18d1   :  { %6912 = vrot.lane.b32.xlu0 %v7689_v38, %s8044_s0 }
0x18d4   :  { %6902 = vrot.lane.b32.xlu1 %v7689_v38, %s7117_s29  ;;  %s7121_s29 = smov [#allocation2]  }
0x18d8   :  { %6907 = vrot.lane.b32.xlu1 %v7677_v35, %s8044_s0 }
0x18dc   :  { %4514 = vrot.lane.b32.xlu1 %v7671_v33, %s8045_s24 }
0x18e0   :  { %4516 = vrot.lane.b32.xlu1 %v7669_v31, %s8045_s24 }
0x18e2   :  { %v6318_v5 = vpop.f32.mrb[24].mxu0 }
0x18e3   :  { %v3719_v6 = vpop.f32.mrb[25].mxu0 }
0x18e4   :  { %4605 = vrot.lane.b32.xlu1 %v7683_v37, %s8045_s24  ;;  %6328 = vmatprep.mubr.msk.f32.mxu0 %vm518_vm5, %v3719_v6 }
0x18e5   :  { %6329 = vmatmul.mubr.msk.f32.vlgmr.msra.gmra.mrb[26].mxu0 %vm518_vm5, %v6318_v5 }
0x18e6   :  { %6331 = vmatprep.mubr.msk.f32.mxu0 %vm518_vm5, %v7794_v14  ;;  %6335 = vmatpush3.msra.mxu0 %v5650_v39 }
0x18e8   :  { %4607 = vrot.lane.b32.xlu1 %v7681_v36, %s8045_s24 }
0x18e9   :  { %6332 = vmatmul.mubr.msk.f32.gmra.mrb[28].mxu0 %vm518_vm5, %v7792_v56 }
0x18ea   :  { %6336 = vmatprep.mubr.msk.f32.mxu0 %vm518_vm5, %v7747_v63 }
0x18ed   :  { %6337 = vmatmul.mubr.msk.f32.vlgmr.msra.gmra.mrb[26].mxu0 %vm518_vm5, %v7745_v32 }
0x18ee   :  { %6339 = vmatprep.mubr.msk.f32.mxu0 %vm518_vm5, %v7751_v1 }
0x18f1   :  { %6340 = vmatmul.mubr.msk.f32.gmra.mrb[28].mxu0 %vm518_vm5, %v7749_v0 }
0x193f   :  { %v4224_v31 = vpop.xlane.xlu1 %4223 }
0x1943   :  { %v4221_v33 = vpop.xlane.xlu1 %4220 }
0x1944   :  { %7046 = vrcp.f32 %v4221_v33 }
0x1948   :  { %v4227_v37 = vpop.xlane.xlu0 %4226 }
0x1949   :  { %7048 = vrcp.f32 %v4227_v37 }
0x194a   :  { %7050 = vrcp.f32 %v4224_v31 }
0x194c   :  { %v4230_v36 = vpop.xlane.xlu1 %4229  ;;  %v6913_v32 = vpop.permute.xlu0 %6912 }
0x194d   :  { %7052 = vrcp.f32 %v4230_v36  ;;  %v6915_v13 = vunpack.i.h.bf16 %v6913_v32  ;;  %v6914_v56 = vunpack.i.l.bf16 %v6913_v32 }
0x194e   :  { %v7047_v7 = vpop.eup %7046 }
0x194f   :  { %v4235_v52 = vmul.f32 %v7047_v7, %v7041_v53  ;;  %v6674_v19 = vpack.c.bf16 %v6915_v13, %v6914_v56 }
0x1950   :  { %v6898_v63 = vpop.permute.xlu1 %6897 }
0x1951   :  { %v6900_v8 = vunpack.i.h.bf16 %v6898_v63  ;;  %v6899_v51 = vunpack.i.l.bf16 %v6898_v63  ;;  %6360 = vmatprep.mubr.msk.f32.mxu0 %vm695_vm7, %v4235_v52 }
0x1953   :  { %v7049_v1 = vpop.eup %7048  ;;  %v6660_v9 = vpack.c.bf16 %v6900_v8, %v6899_v51 }
0x1954   :  { %v7051_v10 = vpop.eup %7050  ;;  %v6903_v0 = vpop.permute.xlu1 %6902  ;;  %v4237_v11 = vmul.f32 %v7049_v1, %v7043_v54 }
0x1955   :  { %v6905_v14 = vunpack.i.h.bf16 %v6903_v0  ;;  %v6904_v55 = vunpack.i.l.bf16 %v6903_v0  ;;  %6661 = vmatprep.subr.bf16.mxu0 %v6660_v9  ;;  %v4236_v15 = vmul.f32 %v7051_v10, %v7039_v49 }
0x1956   :  { %6663 = vmatpush3.bf16.msra.mxu0 %v6660_v9  ;;  %6367 = vmatprep.mubr.msk.f32.mxu1 %vm695_vm7, %v4237_v11 }
0x1957   :  { %v6664_v16 = vpack.c.bf16 %v6905_v14, %v6904_v55  ;;  %6370 = vmatprep.subr.mxu0 %v5652_v12  ;;  %v7053_v17 = vpop.eup %7052 }
0x1958   :  { %v6908_v18 = vpop.permute.xlu1 %6907  ;;  %v4238_v21 = vmul.f32 %v7053_v17, %v7045_v3 }
0x1959   :  { %v6910_v20 = vunpack.i.h.bf16 %v6908_v18  ;;  %v6909_v58 = vunpack.i.l.bf16 %v6908_v18  ;;  %6361 = vmatmul.mubr.msk.f32.vlgmr.msra.gmra.mrb[30].mxu0 %vm695_vm7, %v4236_v15  ;;  %6665 = vmatprep.subr.bf16.mxu1 %v6664_v16 }
0x195a   :  { %6667 = vmatpush3.bf16.msra.mxu1 %v6664_v16  ;;  %6371 = vmatpush3.msra.mxu0 %v5652_v12 }
0x195b   :  { %v6668_v22 = vpack.c.bf16 %v6910_v20, %v6909_v58  ;;  %6676 = vmatprep.subr.msk.bf16.mxu0 %vm7350_vm6, %v6674_v19 }
0x195c   :  { %v4515_v23 = vpop.permute.xlu1 %4514 }
0x195d   :  { %6368 = vmatmul.mubr.msk.f32.vlgmr.msra.gmra.mrb[50].mxu1 %vm695_vm7, %v4238_v21  ;;  %6670 = vmatprep.subr.msk.bf16.mxu1 %vm7350_vm6, %v6668_v22 }
0x195e   :  { %6382 = vmatprep.mubr.msk.f32.mxu1 %vm518_vm5, %v4515_v23  ;;  %v5653_v23 = vld [vmem:[%s8024_s4 + $0x38] sm:$0xff] }
0x1960   :  { %v4517_v57 = vpop.permute.xlu1 %4516 }
0x1963   :  { %6673 = vmatpush3.bf16.xpose.msk.msra.mxu1 %vm7350_vm6, %v6668_v22 }
0x1964   :  { %v4606_v27 = vpop.permute.xlu1 %4605 }
0x1968   :  { %v4608_v41 = vpop.permute.xlu1 %4607 }
0x196a   :  { %6383 = vmatmul.mubr.msk.f32.vlgmr.msra.gmra.mrb[52].mxu1 %vm518_vm5, %v4517_v57 }
0x1a2c   :  { %v6362_v26 = vpop.f32.mrb[30].mxu0 }
0x1a2d   :  { %v4317_v60 = vpop.f32.mrb[31].mxu0 }
0x1a2e   :  { %6372 = vmatprep.mubr.msk.f32.mxu0 %vm518_vm5, %v4317_v60 }
0x1a2f   :  { %6373 = vmatmul.mubr.msk.f32.vlgmr.msra.gmra.mrb[26].mxu0 %vm518_vm5, %v6362_v26 }
0x1a30   :  { %6679 = vmatpush3.bf16.xpose.msk.msra.mxu0 %vm7350_vm6, %v6674_v19  ;;  %v6369_v39 = vpop.f32.mrb[50].mxu1 }
0x1a31   :  { %v4404_v40 = vpop.f32.mrb[51].mxu1 }
0x1a32   :  { %6375 = vmatprep.mubr.msk.f32.mxu0 %vm518_vm5, %v4404_v40 }
0x1a33   :  { %6376 = vmatmul.mubr.msk.f32.gmra.mrb[28].mxu0 %vm518_vm5, %v6369_v39 }
0x1a34   :  { %6389 = vmatprep.mubr.msk.f32.mxu0 %vm518_vm5, %v4606_v27 }
0x1a37   :  { %6390 = vmatmul.mubr.msk.f32.vlgmr.msra.gmra.mrb[32].mxu0 %vm518_vm5, %v4608_v41 }
0x1a3d   :  { %v6384_v42 = vpop.f32.mrb[52].mxu1 }
0x1a3e   :  { %v4697_v43 = vmul.f32 0.35355338, %v6384_v42  ;;  %v4596_v44 = vpop.f32.mrb[53].mxu1 }
0x1a3f   :  { %v4696_v59 = vmul.f32 0.35355338, %v4596_v44 }
0x1a40   :  { %v4703_v45 = vsel %vm695_vm7, %v4697_v43, -inf }
0x1a41   :  { %4704 = vmax.xlane.f32.xlu0 %v4703_v45  ;;  %v4700_v2 = vsel %vm695_vm7, %v4696_v59, -inf }
0x1a42   :  { %4701 = vmax.xlane.f32.xlu1 %v4700_v2 }
0x1ace   :  { %v4705_v46 = vpop.xlane.xlu0 %4704 }
0x1acf   :  { %v4702_v62 = vpop.xlane.xlu1 %4701  ;;  %v4713_v47 = vsub.f32 %v4697_v43, %v4705_v46 }
0x1ad0   :  { %v4712_v48 = vsub.f32 %v4696_v59, %v4702_v62 }
0x1ad1   :  { %v4718_v49 = vmul.f32 1.442695, %v4713_v47 }
0x1ad2   :  { %v4716_v29 = vmul.f32 1.442695, %v4712_v48 }
0x1ad3   :  { %7054 = vpow2.f32 %v4718_v49 }
0x1ad4   :  { %7056 = vpow2.f32 %v4716_v29 }
0x1add   :  { %v7055_v3 = vpop.eup %7054 }
0x1ade   :  { %v7057_v5 = vpop.eup %7056  ;;  %v4727_v6 = vsel %vm695_vm7, %v7055_v3, 0.0 }
0x1adf   :  { %v4724_v31 = vsel %vm695_vm7, %v7057_v5, 0.0 }
0x1b0a   :  { %v6391_v50 = vpop.f32.mrb[32].mxu0 }
0x1b0b   :  { %v4699_v53 = vmul.f32 0.35355338, %v6391_v50  ;;  %v4687_v28 = vpop.f32.mrb[33].mxu0 }
0x1b0c   :  { %v4698_v54 = vmul.f32 0.35355338, %v4687_v28 }
0x1b0d   :  { %v4709_v34 = vsel %vm695_vm7, %v4699_v53, -inf }
0x1b0e   :  { %4710 = vmax.xlane.f32.xlu1 %v4709_v34  ;;  %v4706_v4 = vsel %vm695_vm7, %v4698_v54, -inf }
0x1b0f   :  { %4707 = vmax.xlane.f32.xlu0 %v4706_v4 }
0x1b12   :  { %4728 = vadd.xlane.f32.xlu1 %v4727_v6 }
0x1b13   :  { %4725 = vadd.xlane.f32.xlu0 %v4724_v31 }
0x1b9b   :  { %v4711_v33 = vpop.xlane.xlu1 %4710 }
0x1b9c   :  { %v4715_v37 = vsub.f32 %v4699_v53, %v4711_v33  ;;  %v4708_v36 = vpop.xlane.xlu0 %4707 }
0x1b9d   :  { %v4714_v7 = vsub.f32 %v4698_v54, %v4708_v36 }
0x1b9e   :  { %v4722_v52 = vmul.f32 1.442695, %v4715_v37 }
0x1b9f   :  { %v4720_v63 = vmul.f32 1.442695, %v4714_v7  ;;  %v4729_v11 = vpop.xlane.xlu1 %4728  ;;  %v5722_v7 = vld [vmem:[%s8027_s7 + $0x20] sm:$0xff] }
0x1ba0   :  { %7058 = vpow2.f32 %v4722_v52  ;;  %v4726_v8 = vpop.xlane.xlu0 %4725  ;;  %v5723_v52 = vld [vmem:[%s8027_s7 + $0x28] sm:$0xff] }
0x1ba1   :  { %7060 = vpow2.f32 %v4720_v63  ;;  %v6688_v63 = vpack.c.bf16 %v5723_v52, %v5722_v7 }
0x1ba2   :  { %7062 = vrcp.f32 %v4726_v8  ;;  %v5724_v8 = vld [vmem:[%s8027_s7 + $0x30] sm:$0xff] }
0x1ba3   :  { %7064 = vrcp.f32 %v4729_v11  ;;  %v5735_v11 = vld [vmem:[%s8029_s9 + $0x58] sm:$0xff] }
0x1baa   :  { %v7059_v51 = vpop.eup %7058 }
0x1bab   :  { %v7061_v32 = vpop.eup %7060  ;;  %v4733_v1 = vsel %vm695_vm7, %v7059_v51, 0.0 }
0x1bac   :  { %4734 = vadd.xlane.f32.xlu1 %v4733_v1  ;;  %v4730_v9 = vsel %vm695_vm7, %v7061_v32, 0.0  ;;  %v7063_v10 = vpop.eup %7062  ;;  %v5732_v1 = vld [vmem:[%s8029_s9 + $0x40] sm:$0xff] }
0x1bad   :  { %4731 = vadd.xlane.f32.xlu0 %v4730_v9  ;;  %v4740_v0 = vmul.f32 %v7063_v10, %v7057_v5  ;;  %v7065_v20 = vpop.eup %7064  ;;  %v5733_v9 = vld [vmem:[%s8029_s9 + $0x48] sm:$0xff]  ;;  %v5734_v10 = vld [vmem:[%s8029_s9 + $0x50] sm:$0xff] }
0x1bae   :  { %v4741_v58 = vmul.f32 %v7065_v20, %v7055_v3 }
0x1baf   :  { %6396 = vmatprep.mubr.msk.f32.mxu1 %vm695_vm7, %v4740_v0  ;;  %v6696_v0 = vpack.c.bf16 %v5733_v9, %v5732_v1 }
0x1bbd   :  { %6922 = vrot.lane.b32.xlu1 %v7689_v38, %s8046_s17 }
0x1bc3   :  { %6917 = vrot.lane.b32.xlu0 %v7677_v35, %s8046_s17  ;;  %s5524_s17 = sshll.u32 %s7121_s29, 4  ;;  %s5525_s17 = int_to_ptr.vmem [resolvable:$true] %s5524_s17 }
0x1bc4   :  { %s7086_s18 = scalar_lea.vmem %s5525_s17, 512  ;;  %p7091_p1 = scmp.lt.s32.totalorder %s5525_s17, %s5525_s17 }
0x1bc5   :  { %p7087_p0 = scmp.ne.s32.totalorder %s5525_s17, %s7086_s18  ;;  %p7092_p2 = scmp.lt.s32.totalorder %s7086_s18, %s7086_s18 }
0x1bc7   :  { %p7093_p3 = por %p7092_p2, %p7091_p1 }
0x1bc9   :  { %p7094_p4 = pnand %p7093_p3, %p7087_p0 }
0x1c39   :  { %v4735_v12 = vpop.xlane.xlu1 %4734 }
0x1c3a   :  { %7066 = vrcp.f32 %v4735_v12  ;;  %v4732_v13 = vpop.xlane.xlu0 %4731  ;;  %v6700_v12 = vpack.c.bf16 %v5735_v11, %v5734_v10 }
0x1c3b   :  { %7068 = vrcp.f32 %v4732_v13  ;;  %v5736_v13 = vld [vmem:[%s8029_s9 + $0x60] sm:$0xff] }
0x1c3d   :  { %v6923_v56 = vpop.permute.xlu1 %6922 }
0x1c3e   :  { %v6925_v14 = vunpack.i.h.bf16 %v6923_v56  ;;  %v6924_v55 = vunpack.i.l.bf16 %v6923_v56  ;;  %v6918_v15 = vpop.permute.xlu0 %6917  ;;  %v5737_v56 = vld [vmem:[%s8029_s9 + $0x68] sm:$0xff] }
0x1c3f   :  { %v6920_v16 = vunpack.i.h.bf16 %v6918_v15  ;;  %v6919_v17 = vunpack.i.l.bf16 %v6918_v15 }
0x1c40   :  { %v6684_v18 = vpack.c.bf16 %v6925_v14, %v6924_v55  ;;  %v6704_v14 = vpack.c.bf16 %v5737_v56, %v5736_v13 }
0x1c41   :  { %v6680_v19 = vpack.c.bf16 %v6920_v16, %v6919_v17 }
0x1c42   :  { %6685 = vmatprep.subr.bf16.mxu0 %v6684_v18 }
0x1c43   :  { %6681 = vmatprep.subr.bf16.mxu1 %v6680_v19  ;;  %6687 = vmatpush3.bf16.msra.mxu0 %v6684_v18 }
0x1c44   :  { %v7067_v38 = vpop.eup %7066  ;;  %6683 = vmatpush3.bf16.msra.mxu1 %v6680_v19  ;;  %6406 = vmatprep.subr.mxu0 %v5653_v23 }
0x1c45   :  { %v7069_v35 = vpop.eup %7068  ;;  %v4743_v22 = vmul.f32 %v7067_v38, %v7059_v51  ;;  %v5725_v51 = vld [vmem:[%s8027_s7 + $0x38] sm:$0xff]  ;;  %6689 = vmatprep.subr.bf16.mxu1 %v6688_v63 }
0x1c46   :  { %v4742_v21 = vmul.f32 %v7069_v35, %v7061_v32  ;;  %v6692_v32 = vpack.c.bf16 %v5725_v51, %v5724_v8 }
0x1c47   :  { %6397 = vmatmul.mubr.msk.f32.vlgmr.msra.gmra.mrb[54].mxu1 %vm695_vm7, %v4741_v58 }
0x1c48   :  { %6403 = vmatprep.mubr.msk.f32.mxu0 %vm695_vm7, %v4742_v21  ;;  %6691 = vmatpush3.bf16.msra.mxu1 %v6688_v63 }
0x1c49   :  { %6404 = vmatmul.mubr.msk.f32.vlgmr.msra.gmra.mrb[34].mxu0 %vm695_vm7, %v4743_v22  ;;  %6693 = vmatprep.subr.bf16.mxu1 %v6692_v32 }
0x1c4a   :  { %6407 = vmatpush3.msra.mxu0 %v5653_v23 }
0x1c4b   :  { %6697 = vmatprep.subr.bf16.mxu0 %v6696_v0 }
0x1c4c   :  { %6695 = vmatpush3.bf16.msra.mxu1 %v6692_v32 }
0x1d1a   :  { %v6398_v57 = vpop.f32.mrb[54].mxu1 }
0x1d1b   :  { %v4822_v26 = vpop.f32.mrb[55].mxu1 }
0x1d1c   :  { %v6405_v60 = vpop.f32.mrb[34].mxu0  ;;  %6408 = vmatprep.mubr.msk.f32.mxu0 %vm518_vm5, %v4822_v26 }
0x1d1d   :  { %v4909_v27 = vpop.f32.mrb[35].mxu0  ;;  %6409 = vmatmul.mubr.msk.f32.vlgmr.msra.gmra.mrb[26].mxu0 %vm518_vm5, %v6398_v57  ;;  %v5720_v57 = vld [vmem:[%s8025_s5 + $0x1] ss:$0 sm:$0xff] }
0x1d1e   :  { %6411 = vmatprep.mubr.msk.f32.mxu0 %vm518_vm5, %v4909_v27  ;;  %6699 = vmatpush3.bf16.msra.mxu0 %v6696_v0 }
0x1d1f   :  { %6701 = vmatprep.subr.bf16.mxu0 %v6700_v12 }
0x1d21   :  { %6412 = vmatmul.mubr.msk.f32.gmra.mrb[28].mxu0 %vm518_vm5, %v6405_v60 }
0x1d22   :  { %6703 = vmatpush3.bf16.msra.mxu0 %v6700_v12 }
0x1d23   :  { %6705 = vmatprep.subr.bf16.mxu0 %v6704_v14 }
0x1d26   :  { %6707 = vmatpush3.bf16.msra.mxu0 %v6704_v14 }
0x1df0   :  { %v6410_v39 = vpop.f32.mrb[26].mxu0 }
0x1df1   :  { %v5020_v40 = vadd.f32 %v6410_v39, %v7655_v25  ;;  %v4996_v41 = vpop.f32.mrb[27].mxu0  ;;  %v5721_v39 = vld [vmem:[%s8026_s6 + $0x1] ss:$0 sm:$0xff] }
0x1df2   :  { %v5019_v42 = vadd.f32 %v4996_v41, %v7653_v24 }
0x1df3   :  { %v5030_v43 = vsel %vm410_vm4, %v5020_v40, 0.0 }
0x1df4   :  { %5031 = vadd.xlane.f32.xlu0 %v5030_v43  ;;  %v6413_v44 = vpop.f32.mrb[28].mxu0  ;;  %v5027_v59 = vsel %vm410_vm4, %v5019_v42, 0.0 }
0x1df5   :  { %v5022_v45 = vadd.f32 %v6413_v44, %v7663_v61  ;;  %5028 = vadd.xlane.f32.xlu1 %v5027_v59  ;;  %v5006_v2 = vpop.f32.mrb[29].mxu0 }
0x1df6   :  { %v5021_v46 = vadd.f32 %v5006_v2, %v7661_v30 }
0x1df7   :  { %v5036_v62 = vsel %vm410_vm4, %v5022_v45, 0.0 }
0x1df8   :  { %v5033_v47 = vsel %vm410_vm4, %v5021_v46, 0.0 }
0x1df9   :  { %5037 = vadd.xlane.f32.xlu1 %v5036_v62  ;;  %5034 = vadd.xlane.f32.xlu0 %v5033_v47 }
0x1e81   :  { %v5032_v25 = vpop.xlane.xlu0 %5031 }
0x1e82   :  { %v5040_v24 = vmul.f32 0.03125, %v5032_v25  ;;  %v5029_v48 = vpop.xlane.xlu1 %5028 }
0x1e83   :  { %v5039_v49 = vmul.f32 0.03125, %v5029_v48  ;;  %v5739_v48 = vld [vmem:[%s8029_s9 + $0x78] sm:$0xff] }
0x1e84   :  { %v7895_v29 = vsub.f32 %v5020_v40, %v5040_v24  ;;  %v5738_v24 = vld [vmem:[%s8029_s9 + $0x70] sm:$0xff] }
0x1e85   :  { %v7897_v50 = vsub.f32 %v5019_v42, %v5039_v49  ;;  %v6708_v49 = vpack.c.bf16 %v5739_v48, %v5738_v24 }
0x1e86   :  { %v5038_v53 = vpop.xlane.xlu1 %5037  ;;  %v5035_v61 = vpop.xlane.xlu0 %5034  ;;  %v5048_v28 = vmul.f32 %v7895_v29, %v7895_v29 }
0x1e87   :  { %v5042_v30 = vmul.f32 0.03125, %v5038_v53  ;;  %v5041_v54 = vmul.f32 0.03125, %v5035_v61  ;;  %v5047_v34 = vmul.f32 %v7897_v50, %v7897_v50  ;;  %6709 = vmatprep.subr.bf16.mxu0 %v6708_v49 }
0x1e88   :  { %v5054_v3 = vsel %vm410_vm4, %v5048_v28, 0.0  ;;  %6711 = vmatpush3.bf16.msra.mxu0 %v6708_v49 }
0x1e89   :  { %v7904_v4 = vsub.f32 %v5022_v45, %v5042_v30  ;;  %v7906_v5 = vsub.f32 %v5021_v46, %v5041_v54  ;;  %5055 = vadd.xlane.f32.xlu1 %v5054_v3  ;;  %v5051_v6 = vsel %vm410_vm4, %v5047_v34, 0.0 }
0x1e8a   :  { %5052 = vadd.xlane.f32.xlu0 %v5051_v6 }
0x1e8b   :  { %v5050_v31 = vmul.f32 %v7904_v4, %v7904_v4  ;;  %v5049_v33 = vmul.f32 %v7906_v5, %v7906_v5 }
0x1e8d   :  { %v5060_v37 = vsel %vm410_vm4, %v5050_v31, 0.0  ;;  %v5057_v36 = vsel %vm410_vm4, %v5049_v33, 0.0  ;;  %v5741_v33 = vld [vmem:[%s8030_s10 + $0x1] ss:$0 sm:$0xff] }
0x1e8e   :  { %5061 = vadd.xlane.f32.xlu1 %v5060_v37  ;;  %5058 = vadd.xlane.f32.xlu0 %v5057_v36 }
0x1f16   :  { %v5056_v55 = vpop.xlane.xlu1 %5055 }
0x1f17   :  { %v5064_v15 = vmul.f32 0.03125, %v5056_v55  ;;  %v5053_v16 = vpop.xlane.xlu0 %5052 }
0x1f18   :  { %v5063_v17 = vmul.f32 0.03125, %v5053_v16 }
0x1f19   :  { %v5068_v18 = vadd.f32 1e-05, %v5064_v15 }
0x1f1a   :  { %v5067_v19 = vadd.f32 1e-05, %v5063_v17 }
0x1f1b   :  { %7070 = vrsqrt.f32 %v5068_v18  ;;  %v5062_v20 = vpop.xlane.xlu1 %5061  ;;  %v5059_v38 = vpop.xlane.xlu0 %5058 }
0x1f1c   :  { %7072 = vrsqrt.f32 %v5067_v19  ;;  %v5066_v35 = vmul.f32 0.03125, %v5062_v20  ;;  %v5065_v58 = vmul.f32 0.03125, %v5059_v38 }
0x1f1e   :  { %v5070_v21 = vadd.f32 1e-05, %v5066_v35  ;;  %v5069_v22 = vadd.f32 1e-05, %v5065_v58 }
0x1f20   :  { %7074 = vrsqrt.f32 %v5070_v21 }
0x1f21   :  { %7076 = vrsqrt.f32 %v5069_v22 }
0x1f25   :  { %v7071_v23 = vpop.eup %7070 }
0x1f26   :  { %v7073_v26 = vpop.eup %7072  ;;  %v5076_v60 = vmul.f32 %v7071_v23, %v7895_v29  ;;  %v5727_v29 = vld [vmem:[%s8028_s8 + $0x1] ss:$0 sm:$0xff] }
0x1f27   :  { %v5075_v27 = vmul.f32 %v7073_v26, %v7897_v50 }
0x1f28   :  { %v5086_v40 = vmul.f32 %v5720_v57, %v5076_v60 }
0x1f29   :  { %v5085_v41 = vmul.f32 %v5720_v57, %v5075_v27 }
0x1f2a   :  { %v7075_v42 = vpop.eup %7074  ;;  %v5096_v45 = vadd.f32 %v5721_v39, %v5086_v40 }
0x1f2b   :  { %v7077_v43 = vpop.eup %7076  ;;  %v5095_v44 = vadd.f32 %v5721_v39, %v5085_v41  ;;  %v5078_v59 = vmul.f32 %v7075_v42, %v7904_v4  ;;  %v5407_v41 = vld [vmem:[%s8033_s13] sm:$0xff]  ;;  %v5408_v42 = vld [vmem:[%s8033_s13 + $0x8] sm:$0xff] }
0x1f2c   :  { %v5077_v2 = vmul.f32 %v7077_v43, %v7906_v5  ;;  %v6712_v43 = vpack.c.bf16 %v5408_v42, %v5407_v41 }
0x1f2d   :  { %6422 = vmatprep.mubr.msk.f32.mxu1 %vm410_vm4, %v5095_v44  ;;  %v5088_v46 = vmul.f32 %v5720_v57, %v5078_v59  ;;  %v5410_v59 = vld [vmem:[%s8033_s13 + $0x18] sm:$0xff] }
0x1f2e   :  { %6423 = vmatmul.mubr.msk.f32.vlgmr.msra.gmra.mrb[56].mxu1 %vm410_vm4, %v5096_v45  ;;  %v5087_v62 = vmul.f32 %v5720_v57, %v5077_v2  ;;  %6713 = vmatprep.subr.bf16.mxu1 %v6712_v43 }
0x1f2f   :  { %v5098_v47 = vadd.f32 %v5721_v39, %v5088_v46  ;;  %6715 = vmatpush3.bf16.msra.mxu1 %v6712_v43 }
0x1f30   :  { %v5097_v25 = vadd.f32 %v5721_v39, %v5087_v62 }
0x1f32   :  { %6425 = vmatprep.mubr.msk.f32.mxu1 %vm410_vm4, %v5097_v25 }
0x1f33   :  { %6426 = vmatmul.mubr.msk.f32.gmra.mrb[58].mxu1 %vm410_vm4, %v5098_v47 }
0x2001   :  { %v6424_v50 = vpop.f32.mrb[56].mxu1 }
0x2002   :  { %v5196_v53 = vadd.f32 %v6424_v50, %v5727_v29  ;;  %v5190_v61 = vpop.f32.mrb[57].mxu1 }
0x2003   :  { %v5191_v28 = vadd.f32 %v5727_v29, %v5190_v61 }
0x2004   :  { %v5210_v54 = vmax.f32 %v5196_v53, 0.0 }
0x2005   :  { %v5209_v30 = vmax.f32 %v5191_v28, 0.0 }
0x2006   :  { %v6427_v34 = vpop.f32.mrb[58].mxu1 }
0x2007   :  { %v5206_v3 = vadd.f32 %v6427_v34, %v5727_v29  ;;  %v5200_v4 = vpop.f32.mrb[59].mxu1  ;;  %6444 = vmatprep.mubr.msk.f32.mxu0 %vm2728_vm8, %v5209_v30  ;;  %v5748_v30 = vld [vmem:[%s8031_s11 + $0x1] ss:$0 sm:$0xff] }
0x2008   :  { %v5201_v5 = vadd.f32 %v5727_v29, %v5200_v4  ;;  %6445 = vmatmul.mubr.msk.f32.vlgmr.msra.gmra.mrb[36].mxu0 %vm2728_vm8, %v5210_v54  ;;  %v5749_v4 = vld [vmem:[%s8032_s12 + $0x1] ss:$0 sm:$0xff] }
0x2009   :  { %v5212_v31 = vmax.f32 %v5206_v3, 0.0 }
0x200a   :  { %v5211_v6 = vmax.f32 %v5201_v5, 0.0 }
0x200c   :  { %6447 = vmatprep.mubr.msk.f32.mxu0 %vm2728_vm8, %v5211_v6 }
0x200d   :  { %6448 = vmatmul.mubr.msk.f32.gmra.mrb[38].mxu0 %vm2728_vm8, %v5212_v31 }
0x20db   :  { %v6446_v37 = vpop.f32.mrb[36].mxu0 }
0x20dc   :  { %v5314_v36 = vadd.f32 %v6446_v37, %v5741_v33  ;;  %v5308_v7 = vpop.f32.mrb[37].mxu0 }
0x20dd   :  { %v5309_v52 = vadd.f32 %v5741_v33, %v5308_v7 }
0x20de   :  { %v5328_v63 = vadd.f32 %v5314_v36, %v5096_v45 }
0x20df   :  { %v5327_v8 = vadd.f32 %v5309_v52, %v5095_v44  ;;  %v5409_v44 = vld [vmem:[%s8033_s13 + $0x10] sm:$0xff] }
0x20e0   :  { %v6449_v51 = vpop.f32.mrb[38].mxu0  ;;  %v5338_v32 = vsel %vm410_vm4, %v5328_v63, 0.0  ;;  %v6716_v45 = vpack.c.bf16 %v5410_v59, %v5409_v44 }
0x20e1   :  { %v5324_v1 = vadd.f32 %v6449_v51, %v5741_v33  ;;  %v5318_v9 = vpop.f32.mrb[39].mxu0  ;;  %5339 = vadd.xlane.f32.xlu1 %v5338_v32  ;;  %v5335_v10 = vsel %vm410_vm4, %v5327_v8, 0.0 }
0x20e2   :  { %v5319_v0 = vadd.f32 %v5741_v33, %v5318_v9  ;;  %5336 = vadd.xlane.f32.xlu0 %v5335_v10  ;;  %6717 = vmatprep.subr.bf16.mxu1 %v6716_v45 }
0x20e3   :  { %v5330_v11 = vadd.f32 %v5324_v1, %v5098_v47  ;;  %6719 = vmatpush3.bf16.msra.mxu1 %v6716_v45  ;;  %v5750_v1 = vld [vmem:[%s8034_s14] ss:$0 sm:$0xff] }
0x20e4   :  { %v5329_v12 = vadd.f32 %v5319_v0, %v5097_v25 }
0x20e5   :  { %v5344_v13 = vsel %vm410_vm4, %v5330_v11, 0.0 }
0x20e6   :  { %5345 = vadd.xlane.f32.xlu1 %v5344_v13  ;;  %v5341_v56 = vsel %vm410_vm4, %v5329_v12, 0.0 }
0x20e7   :  { %5342 = vadd.xlane.f32.xlu0 %v5341_v56 }
0x216e   :  { %v5340_v14 = vpop.xlane.xlu1 %5339 }
0x216f   :  { %v5348_v55 = vmul.f32 0.03125, %v5340_v14  ;;  %v5337_v15 = vpop.xlane.xlu0 %5336 }
0x2170   :  { %v5347_v16 = vmul.f32 0.03125, %v5337_v15 }
0x2171   :  { %v5352_v17 = vsub.f32 %v5328_v63, %v5348_v55 }
0x2172   :  { %v5351_v18 = vsub.f32 %v5327_v8, %v5347_v16 }
0x2173   :  { %v5346_v19 = vpop.xlane.xlu1 %5345  ;;  %v5356_v20 = vmul.f32 %v5352_v17, %v5352_v17 }
0x2174   :  { %v5350_v38 = vmul.f32 0.03125, %v5346_v19  ;;  %v5343_v35 = vpop.xlane.xlu0 %5342  ;;  %v5355_v58 = vmul.f32 %v5351_v18, %v5351_v18 }
0x2175   :  { %v5349_v21 = vmul.f32 0.03125, %v5343_v35  ;;  %v5362_v22 = vsel %vm410_vm4, %v5356_v20, 0.0 }
0x2176   :  { %v5354_v23 = vsub.f32 %v5330_v11, %v5350_v38  ;;  %5363 = vadd.xlane.f32.xlu1 %v5362_v22  ;;  %v5359_v57 = vsel %vm410_vm4, %v5355_v58, 0.0 }
0x2177   :  { %v5353_v26 = vsub.f32 %v5329_v12, %v5349_v21  ;;  %5360 = vadd.xlane.f32.xlu0 %v5359_v57 }
0x2178   :  { %v5358_v60 = vmul.f32 %v5354_v23, %v5354_v23 }
0x2179   :  { %v5357_v27 = vmul.f32 %v5353_v26, %v5353_v26 }
0x217a   :  { %v5368_v39 = vsel %vm410_vm4, %v5358_v60, 0.0 }
0x217b   :  { %5369 = vadd.xlane.f32.xlu1 %v5368_v39  ;;  %v5365_v40 = vsel %vm410_vm4, %v5357_v27, 0.0 }
0x217c   :  { %5366 = vadd.xlane.f32.xlu0 %v5365_v40 }
0x2203   :  { %v5364_v2 = vpop.xlane.xlu1 %5363 }
0x2204   :  { %v5372_v46 = vmul.f32 0.03125, %v5364_v2  ;;  %v5361_v62 = vpop.xlane.xlu0 %5360 }
0x2205   :  { %v5371_v47 = vmul.f32 0.03125, %v5361_v62 }
0x2206   :  { %v5376_v25 = vadd.f32 1e-05, %v5372_v46 }
0x2207   :  { %v5375_v24 = vadd.f32 1e-05, %v5371_v47 }
0x2208   :  { %7078 = vrsqrt.f32 %v5376_v25  ;;  %v5370_v48 = vpop.xlane.xlu1 %5369 }
0x2209   :  { %7080 = vrsqrt.f32 %v5375_v24  ;;  %v5374_v49 = vmul.f32 0.03125, %v5370_v48  ;;  %v5367_v29 = vpop.xlane.xlu0 %5366 }
0x220a   :  { %v5373_v50 = vmul.f32 0.03125, %v5367_v29 }
0x220b   :  { %v5378_v53 = vadd.f32 1e-05, %v5374_v49 }
0x220c   :  { %v5377_v61 = vadd.f32 1e-05, %v5373_v50 }
0x220d   :  { %7082 = vrsqrt.f32 %v5378_v53 }
0x220e   :  { %7084 = vrsqrt.f32 %v5377_v61 }
0x2212   :  { %v7079_v28 = vpop.eup %7078 }
0x2213   :  { %v7081_v54 = vpop.eup %7080  ;;  %v5384_v34 = vmul.f32 %v7079_v28, %v5352_v17 }
0x2214   :  { %v5383_v3 = vmul.f32 %v7081_v54, %v5351_v18 }
0x2215   :  { %v5394_v5 = vmul.f32 %v5748_v30, %v5384_v34 }
0x2216   :  { %v5393_v6 = vmul.f32 %v5748_v30, %v5383_v3 }
0x2217   :  { %v7083_v31 = vpop.eup %7082  ;;  %v5404_v7 = vadd.f32 %v5749_v4, %v5394_v5 }
0x2218   :  { %v7085_v33 = vpop.eup %7084  ;;  %v5403_v37 = vadd.f32 %v5749_v4, %v5393_v6  ;;  %v5386_v36 = vmul.f32 %v7083_v31, %v5354_v23 }
0x2219   :  { %v5385_v52 = vmul.f32 %v7085_v33, %v5353_v26 }
0x221a   :  { %6458 = vmatprep.mubr.msk.f32.mxu1 %vm410_vm4, %v5403_v37  ;;  %v5396_v63 = vmul.f32 %v5748_v30, %v5386_v36 }
0x221b   :  { %6459 = vmatmul.mubr.msk.f32.vlgmr.msra.gmra.mrb[60].mxu1 %vm410_vm4, %v5404_v7  ;;  %v5395_v8 = vmul.f32 %v5748_v30, %v5385_v52 }
0x221c   :  { %v5406_v32 = vadd.f32 %v5749_v4, %v5396_v63 }
0x221d   :  { %v5405_v51 = vadd.f32 %v5749_v4, %v5395_v8 }
0x221f   :  { %6461 = vmatprep.mubr.msk.f32.mxu1 %vm410_vm4, %v5405_v51 }
0x2220   :  { %6462 = vmatmul.mubr.msk.f32.gmra.mrb[62].mxu1 %vm410_vm4, %v5406_v32 }
0x22ee   :  { %v6460_v9 = vpop.f32.mrb[60].mxu1 }
0x22ef   :  { %v5502_v10 = vadd.f32 %v6460_v9, %v5750_v1  ;;  %v5496_v0 = vpop.f32.mrb[61].mxu1 }
0x22f0   :  { %v5497_v11 = vadd.f32 %v5750_v1, %v5496_v0 }
0x22f1   :  { %5516 = vst [vmem:[#allocation2 + $0x8] sm:$0xff] %v5502_v10 }
0x22f2   :  { %5515 = vst [vmem:[#allocation2] sm:$0xff] %v5497_v11 }
0x22f3   :  { %v6463_v12 = vpop.f32.mrb[62].mxu1 }
0x22f4   :  { %v5512_v13 = vadd.f32 %v6463_v12, %v5750_v1  ;;  %v5506_v56 = vpop.f32.mrb[63].mxu1 }
0x22f5   :  { %v5507_v14 = vadd.f32 %v5750_v1, %v5506_v56 }
0x22f6   :  { %5518 = vst [vmem:[#allocation2 + $0x18] sm:$0xff] %v5512_v13 }
0x22f7   :  { %5517 = vst [vmem:[#allocation2 + $0x10] sm:$0xff] %v5507_v14 }
0x22f8   :  { %7097 = shalt.err (!%p7094_p4)
}
0x22f9   :  { %s7098_s4 = scalar_lea.hbm %s8035_s15, 512 }
0x22fa   :  { %p7099_p5 = scmp.ne.s32.totalorder %s8035_s15, %s7098_s4  ;;  %p7102_p6 = scmp.lt.u32.totalorder %s7098_s4, %s8035_s15 }
0x22fc   :  { %p7104_p7 = pnand %p7102_p6, %p7099_p5 }
0x22fe   :  { %7107 = shalt.err (!%p7104_p7)
}
0x22ff   :  { %s7122_s27 = smov 128   ;;  %s7123_s28 = smov 8  }
0x2300   :  { %5530 = dma.vmem_to_hbm [thread:$0]  %s5525_s17, 512, %s8035_s15, [#allocation3], %s7122_s27, %s7122_s27, %s7123_s28  }
0x2301   :  { %7108 = dma.done.wait [#allocation3], 512  }
0x2302   :  { %7109 = vsyncadd [#allocation3], 4294966784 }
0x2303   :  { %5534 = vsyncpa [#allocation3], 1 }

</bundles_post_ra>
